<compile_context>
chip_gen: v5e
topology: v5e:2x2
jax: 0.10.0
libtpu: 0.0.40
codegen_flags: <defaults>
</compile_context>

<pallas_src>
import functools

import jax
import jax.numpy as jnp
from jax import lax
from jax.experimental import pallas as pl
from jax.experimental.pallas import tpu as pltpu

W = 5     # wavelengths: 412.5, 442.5, 490, 510, 555 nm
C = 3     # constituents: chla, nap, cdom
F = 5     # per-wavelength inputs: E_dir, E_dif, lambda, zenith, PAR
NPF = 14  # number of perturbation factors (the module's nn.Parameter)

# ---- deterministic synthetic constants (stand-ins for diimpy's `constant`,
# ---- loss_fn.x_a / s_a^-1 / s_e^-1 and the kd/bbp bio-optical tables) -------
XA = (0.3, 0.1, 0.05)                                              # prior mean x_a
SA_INV = ((4.0, 0.5, 0.2), (0.5, 10.0, 0.3), (0.2, 0.3, 25.0))     # s_a^{-1}
SE_INV = tuple(tuple(400.0 if i == j else 20.0 for j in range(W))  # s_e^{-1}
               for i in range(W))
KD0 = (0.050, 0.045, 0.040, 0.042, 0.060)
KD_M = tuple(tuple(0.02 * (w + 1) + 0.01 * (c + 1) for c in range(C))
             for w in range(W))
BBP0 = (0.0010, 0.0012, 0.0015)
BBP_M = tuple(tuple(0.005 * (j + 1) + 0.002 * (c + 1) for c in range(C))
              for j in range(3))

# s_e^{-1} here is diagonal-plus-rank-one: SE_INV = SE_EXTRA*I + SE_OFF*1*1^T.
# The prologue exploits this (3x fewer VALU ops, ~20 fewer live vregs).
assert all(SE_INV[i][j] == (SE_INV[0][0] if i == j else SE_INV[0][1])
           for i in range(W) for j in range(W))
SE_OFF = SE_INV[0][1]                  # 20.0
SE_EXTRA = SE_INV[0][0] - SE_OFF       # 380.0

# Adam hyper-parameters (the pytorch optimizer passed into train_loop)
LR, B1, B2, EPS = 1e-2, 0.9, 0.999, 1e-8

UNROLL = 4   # amortize fori_loop overhead (steps are serially dependent)


def _inversion_kernel(pf_ref, x_ref, y_ref, out_ref, *, n_iter, use_closed_form):
    """pf_ref: (14,) f32 SMEM; x_ref: (W*C, bs, 128); y_ref: (W, bs, 128);
    out_ref: (9, bs, 128) where bs is the sublane rows of the batch tile."""
    f32 = jnp.float32
    vshape = out_ref.shape[1:]   # (TILE_BS, 128): densely packed vregs per value

    # perturbation factors multiply the forward-model "constants"
    pf_scale = (pf_ref[0], pf_ref[13], pf_ref[5])   # eps_{a,ph}, eps_{b,nap}, eps_{a,cdom}

    # TODO(synk): the real diimpy bio-optical RRS forward model (fm) is not
    # available; a deterministic linear surrogate pred[w] = sum_c M[w,c]*ch[c]
    # (M built from the first 3 irradiance features of X, scaled by the
    # perturbation factors) preserves only the inversion structure.

    # ---- hoisted, loop-invariant normal-equation terms ----------------------
    # Bayesian loss gradient  g = -2 M^T Se^-1 (Y - M ch) + 2 Sa^-1 (ch - x_a)
    #                           = 2 * (H ch - b)
    # With Se^-1 = SE_EXTRA*I + SE_OFF*1*1^T:
    #   H[c,cp] = SE_EXTRA*sum_w M[w,c]M[w,cp] + SE_OFF*S[c]*S[cp] + Sa^-1[c,cp]
    #   b[c]    = SE_EXTRA*sum_w M[w,c]Y[w]    + SE_OFF*S[c]*S_Y   + (Sa^-1 x_a)[c]
    # where S[c] = sum_w M[w,c], S_Y = sum_w Y[w].  Streamed over w so only the
    # accumulators stay live (keeps the prologue spill-free at 2 vregs/value).
    zeros = jnp.zeros(vshape, f32)
    S = [zeros] * C
    MY = [zeros] * C
    MM = {(c, cp): zeros for c in range(C) for cp in range(c, C)}
    SY = zeros
    for w in range(W):
        Mw = [x_ref[C * w + c] * pf_scale[c] for c in range(C)]
        Yw = y_ref[w]
        SY = SY + Yw
        for c in range(C):
            S[c] = S[c] + Mw[c]
            MY[c] = MY[c] + Mw[c] * Yw
            for cp in range(c, C):
                MM[(c, cp)] = MM[(c, cp)] + Mw[c] * Mw[cp]

    # The factor 2 of the gradient is folded into H2/b2 (numerically identical).
    H2 = [[None] * C for _ in range(C)]
    for c in range(C):
        for cp in range(c, C):
            h = SE_EXTRA * MM[(c, cp)] + SE_OFF * (S[c] * S[cp]) + SA_INV[c][cp]
            H2[c][cp] = 2.0 * h
            H2[cp][c] = H2[c][cp]
    sa_xa = tuple(sum(SA_INV[c][cp] * XA[cp] for cp in range(C)) for c in range(C))
    b2 = [2.0 * (SE_EXTRA * MY[c] + SE_OFF * (S[c] * SY) + sa_xa[c])
          for c in range(C)]

    if use_closed_form:
        # Semantics-changing fast path (behind a flag, default OFF): the
        # surrogate is linear and the loss quadratic, so the Adam fixed point
        # is the 3x3 normal-equation solution H2 ch = b2 (Cramer's rule).
        a00, a01, a02 = H2[0][0], H2[0][1], H2[0][2]
        a11, a12, a22 = H2[1][1], H2[1][2], H2[2][2]
        c00 = a11 * a22 - a12 * a12
        c01 = a02 * a12 - a01 * a22
        c02 = a01 * a12 - a02 * a11
        c11 = a00 * a22 - a02 * a02
        c12 = a01 * a02 - a00 * a12
        c22 = a00 * a11 - a01 * a01
        det = a00 * c00 + a01 * c01 + a02 * c02
        inv_det = pl.reciprocal(det, approx=False)
        ch = ((c00 * b2[0] + c01 * b2[1] + c02 * b2[2]) * inv_det,
              (c01 * b2[0] + c11 * b2[1] + c12 * b2[2]) * inv_det,
              (c02 * b2[0] + c12 * b2[1] + c22 * b2[2]) * inv_det)
    else:
        # ---- Adam loop (optimizer.step() x n_iter) --------------------------
        def adam_step(carry):
            ch, m, v, pow1, pow2 = carry
            pow1 = pow1 * B1                  # B1^t carried, no per-step pow()
            pow2 = pow2 * B2
            inv_bc1 = 1.0 / (1.0 - pow1)      # scalar per step
            inv_bc2 = 1.0 / (1.0 - pow2)
            lr_bc1 = LR * inv_bc1
            g = [H2[c][0] * ch[0] + H2[c][1] * ch[1] + H2[c][2] * ch[2] - b2[c]
                 for c in range(C)]
            ch_n, m_n, v_n = [], [], []
            for c in range(C):
                mc = B1 * m[c] + (1.0 - B1) * g[c]
                vc = B2 * v[c] + (1.0 - B2) * (g[c] * g[c])
                # single EUP op on the critical path; eps inside the sqrt
                # (vs torch's sqrt(v_hat)+eps): drift is O(eps/sqrt(v_hat)),
                # and it protects padded days (g==0 => m==0) from 0*inf.
                r = lax.rsqrt(vc * inv_bc2 + EPS * EPS)
                ch_n.append(ch[c] - lr_bc1 * mc * r)
                m_n.append(mc)
                v_n.append(vc)
            return tuple(ch_n), tuple(m_n), tuple(v_n), pow1, pow2

        ch0 = tuple(jnp.full(vshape, XA[c], f32) for c in range(C))
        carry = (ch0, (zeros, zeros, zeros), (zeros, zeros, zeros),
                 jnp.float32(1.0), jnp.float32(1.0))

        # TODO(synk): the torch while-loop has a data-dependent early-stop
        # criterion and an optional ReduceLROnPlateau scheduler; with
        # scheduler=False and N<=100 it effectively always runs N iterations,
        # so a fixed-count loop (manually unrolled x4) is used.
        def body(_, c):
            for _ in range(UNROLL):
                c = adam_step(c)
            return c

        n_main, n_rem = divmod(n_iter, UNROLL)
        if n_main > 0:
            carry = lax.fori_loop(0, n_main, body, carry)
        for _ in range(n_rem):
            carry = adam_step(carry)
        ch = carry[0]

    # output[:, 0] = chlorophyll (chparam[:, 0, 0] at the last iteration)
    out_ref[0] = ch[0]
    # output[:, 1:6] = kd(lambda)   -- synthetic kd_der surrogate
    for w in range(W):
        out_ref[1 + w] = pf_ref[9] * (KD0[w] + KD_M[w][0] * ch[0]
                                      + KD_M[w][1] * ch[1] + KD_M[w][2] * ch[2])
    # output[:, 6:9] = bbp          -- synthetic bbp_der surrogate
    for j in range(3):
        out_ref[6 + j] = BBP0[j] + pf_ref[3] * (BBP_M[j][0] * ch[0]
                                                + BBP_M[j][1] * ch[1]
                                                + BBP_M[j][2] * ch[2])


def parameter_estimator_forward(X, Y, perturbation_factors, num_iterations=100,
                                use_closed_form=False):
    """Pallas equivalent of Parameter_Estimator.forward(...) -> (num_days, 9) f32:
    column 0 = chla, columns 1:6 = kd, columns 6:9 = bbp."""
    B = X.shape[0]
    assert X.shape == (B, W, F) and Y.shape == (B, W)

    # Tile choice: 16 sublane rows (2048 days/tile) by default so every value
    # is 2 vregs (6 independent chains hide EUP/VALU latency of the serial
    # Adam steps).  If that would leave a single tile while more than 1024
    # real days exist, drop to 8-row tiles so the "parallel" grid has >= 2
    # tiles and both v7x TensorCores are busy.  (For B <= 1024 a second tile
    # would be all padding, so it stays single-tile.)
    tile_bs = 16
    if 8 * 128 < B <= 16 * 128:
        tile_bs = 8
    tile_b = tile_bs * 128
    n_tiles = -(-B // tile_b)
    Bp = n_tiles * tile_b
    bs = Bp // 128   # total sublane rows

    # Only the first C=3 per-wavelength features are read by the kernel's
    # surrogate -> slice before the DMA (drops 40% of input traffic).
    # (B, W, C) -> (W*C, B) with row = C*w + c, pad the batch to Bp, then pack
    # the batch onto (sublane, lane) = (Bp//128, 128): day b -> (b//128, b%128).
    x_t = jnp.transpose(X[:, :, :C].astype(jnp.float32), (1, 2, 0)).reshape(W * C, B)
    y_t = jnp.transpose(Y.astype(jnp.float32), (1, 0))
    x_t = jnp.pad(x_t, ((0, 0), (0, Bp - B))).reshape(W * C, bs, 128)
    y_t = jnp.pad(y_t, ((0, 0), (0, Bp - B))).reshape(W, bs, 128)
    pf = perturbation_factors.astype(jnp.float32)

    n_iter = int(num_iterations)
    cost = pl.CostEstimate(
        flops=(60 * n_iter + 150) * Bp,            # ~50-60 VALU ops/day/step + prologue
        transcendentals=3 * n_iter * Bp,           # one rsqrt per constituent per step
        bytes_accessed=4 * (x_t.size + y_t.size + 9 * Bp + NPF),
    )

    kernel = functools.partial(_inversion_kernel, n_iter=n_iter,
                               use_closed_form=use_closed_form)
    out_t = pl.pallas_call(
        kernel,
        out_shape=jax.ShapeDtypeStruct((9, bs, 128), jnp.float32),
        grid=(n_tiles,),
        in_specs=[
            pl.BlockSpec(memory_space=pltpu.MemorySpace.SMEM),             # pf (14,)
            pl.BlockSpec((W * C, tile_bs, 128), lambda i: (0, i, 0)),      # X tile
            pl.BlockSpec((W, tile_bs, 128), lambda i: (0, i, 0)),          # Y tile
        ],
        out_specs=pl.BlockSpec((9, tile_bs, 128), lambda i: (0, i, 0)),
        compiler_params=pltpu.CompilerParams(
            dimension_semantics=("parallel",)),   # megacore sharding on v7x
        cost_estimate=cost,
    )(pf, x_t, y_t)

    out = out_t.reshape(9, Bp)[:, :B]   # drop the padded days
    return out.T                        # (num_days, 9), PyTorch output convention


if __name__ == "__main__":
    key = jax.random.PRNGKey(0)
    k1, k2 = jax.random.split(key, 2)
    B = 8  # num_days

    # X: (num_days, 5, 5) irradiance-like inputs; Y: (num_days, 5) "satellite RRS"
    X = jax.random.uniform(k1, (B, W, F), jnp.float32, minval=0.5, maxval=1.5)
    ch_true = jnp.array([0.45, 0.12, 0.06], jnp.float32)
    Y = jnp.einsum("bwc,c->bw", X[:, :, :C], ch_true) \
        + 0.01 * jax.random.normal(k2, (B, W), jnp.float32)

    # The module's learnable parameter: perturbation_factors = ones(14)
    perturbation_factors = jnp.ones((NPF,), jnp.float32)

    out = parameter_estimator_forward(X, Y, perturbation_factors, num_iterations=100)
    out = jax.block_until_ready(out)
    assert out.shape == (B, 9) and out.dtype == jnp.float32
    assert bool(jnp.all(jnp.isfinite(out)))
    print("KERNEL_OK")
</pallas_src>

<mosaic_0001>
module attributes {stable_mosaic.version = 11 : i64} {
  func.func @_inversion_kernel(%arg0: i32, %arg1: memref<14xf32, #tpu.memory_space<smem>>, %arg2: memref<15x16x128xf32, #tpu.memory_space<vmem>>, %arg3: memref<5x16x128xf32, #tpu.memory_space<vmem>>, %arg4: memref<9x16x128xf32, #tpu.memory_space<vmem>>) attributes {dimension_semantics = [#tpu.dimension_semantics<parallel>], iteration_bounds = array<i64: 1>, scalar_prefetch = 0 : i64, scratch_operands = 0 : i64, tpu.core_type = #tpu.core_type<tc>, window_params = [{transform_indices = @transform_0, window_bounds = array<i64: 14>}, {transform_indices = @transform_1, window_bounds = array<i64: 15, 16, 128>}, {transform_indices = @transform_2, window_bounds = array<i64: 5, 16, 128>}, {transform_indices = @transform_3, window_bounds = array<i64: 9, 16, 128>}]} {
    %c0 = arith.constant 0 : index
    %0 = memref.load %arg1[%c0] : memref<14xf32, #tpu.memory_space<smem>>
    %c13 = arith.constant 13 : index
    %1 = memref.load %arg1[%c13] : memref<14xf32, #tpu.memory_space<smem>>
    %c5 = arith.constant 5 : index
    %2 = memref.load %arg1[%c5] : memref<14xf32, #tpu.memory_space<smem>>
    %cst = arith.constant 0.000000e+00 : f32
    %3 = vector.broadcast %cst : f32 to vector<16x128xf32>
    %c0_0 = arith.constant 0 : index
    %c0_1 = arith.constant 0 : index
    %c0_2 = arith.constant 0 : index
    %4 = vector.load %arg2[%c0_0, %c0_1, %c0_2] : memref<15x16x128xf32, #tpu.memory_space<vmem>>, vector<1x16x128xf32>
    %5 = vector.shape_cast %4 : vector<1x16x128xf32> to vector<16x128xf32>
    %6 = vector.broadcast %0 : f32 to vector<16x128xf32>
    %7 = arith.mulf %5, %6 : vector<16x128xf32>
    %c1 = arith.constant 1 : index
    %c0_3 = arith.constant 0 : index
    %c0_4 = arith.constant 0 : index
    %8 = vector.load %arg2[%c1, %c0_3, %c0_4] : memref<15x16x128xf32, #tpu.memory_space<vmem>>, vector<1x16x128xf32>
    %9 = vector.shape_cast %8 : vector<1x16x128xf32> to vector<16x128xf32>
    %10 = vector.broadcast %1 : f32 to vector<16x128xf32>
    %11 = arith.mulf %9, %10 : vector<16x128xf32>
    %c2 = arith.constant 2 : index
    %c0_5 = arith.constant 0 : index
    %c0_6 = arith.constant 0 : index
    %12 = vector.load %arg2[%c2, %c0_5, %c0_6] : memref<15x16x128xf32, #tpu.memory_space<vmem>>, vector<1x16x128xf32>
    %13 = vector.shape_cast %12 : vector<1x16x128xf32> to vector<16x128xf32>
    %14 = vector.broadcast %2 : f32 to vector<16x128xf32>
    %15 = arith.mulf %13, %14 : vector<16x128xf32>
    %c0_7 = arith.constant 0 : index
    %c0_8 = arith.constant 0 : index
    %c0_9 = arith.constant 0 : index
    %16 = vector.load %arg3[%c0_7, %c0_8, %c0_9] : memref<5x16x128xf32, #tpu.memory_space<vmem>>, vector<1x16x128xf32>
    %17 = vector.shape_cast %16 : vector<1x16x128xf32> to vector<16x128xf32>
    %18 = arith.addf %3, %17 : vector<16x128xf32>
    %19 = arith.addf %3, %7 : vector<16x128xf32>
    %20 = arith.mulf %7, %17 : vector<16x128xf32>
    %21 = arith.addf %3, %20 : vector<16x128xf32>
    %22 = arith.mulf %7, %7 : vector<16x128xf32>
    %23 = arith.addf %3, %22 : vector<16x128xf32>
    %24 = arith.mulf %7, %11 : vector<16x128xf32>
    %25 = arith.addf %3, %24 : vector<16x128xf32>
    %26 = arith.mulf %7, %15 : vector<16x128xf32>
    %27 = arith.addf %3, %26 : vector<16x128xf32>
    %28 = arith.addf %3, %11 : vector<16x128xf32>
    %29 = arith.mulf %11, %17 : vector<16x128xf32>
    %30 = arith.addf %3, %29 : vector<16x128xf32>
    %31 = arith.mulf %11, %11 : vector<16x128xf32>
    %32 = arith.addf %3, %31 : vector<16x128xf32>
    %33 = arith.mulf %11, %15 : vector<16x128xf32>
    %34 = arith.addf %3, %33 : vector<16x128xf32>
    %35 = arith.addf %3, %15 : vector<16x128xf32>
    %36 = arith.mulf %15, %17 : vector<16x128xf32>
    %37 = arith.addf %3, %36 : vector<16x128xf32>
    %38 = arith.mulf %15, %15 : vector<16x128xf32>
    %39 = arith.addf %3, %38 : vector<16x128xf32>
    %c3 = arith.constant 3 : index
    %c0_10 = arith.constant 0 : index
    %c0_11 = arith.constant 0 : index
    %40 = vector.load %arg2[%c3, %c0_10, %c0_11] : memref<15x16x128xf32, #tpu.memory_space<vmem>>, vector<1x16x128xf32>
    %41 = vector.shape_cast %40 : vector<1x16x128xf32> to vector<16x128xf32>
    %42 = vector.broadcast %0 : f32 to vector<16x128xf32>
    %43 = arith.mulf %41, %42 : vector<16x128xf32>
    %c4 = arith.constant 4 : index
    %c0_12 = arith.constant 0 : index
    %c0_13 = arith.constant 0 : index
    %44 = vector.load %arg2[%c4, %c0_12, %c0_13] : memref<15x16x128xf32, #tpu.memory_space<vmem>>, vector<1x16x128xf32>
    %45 = vector.shape_cast %44 : vector<1x16x128xf32> to vector<16x128xf32>
    %46 = vector.broadcast %1 : f32 to vector<16x128xf32>
    %47 = arith.mulf %45, %46 : vector<16x128xf32>
    %c5_14 = arith.constant 5 : index
    %c0_15 = arith.constant 0 : index
    %c0_16 = arith.constant 0 : index
    %48 = vector.load %arg2[%c5_14, %c0_15, %c0_16] : memref<15x16x128xf32, #tpu.memory_space<vmem>>, vector<1x16x128xf32>
    %49 = vector.shape_cast %48 : vector<1x16x128xf32> to vector<16x128xf32>
    %50 = vector.broadcast %2 : f32 to vector<16x128xf32>
    %51 = arith.mulf %49, %50 : vector<16x128xf32>
    %c1_17 = arith.constant 1 : index
    %c0_18 = arith.constant 0 : index
    %c0_19 = arith.constant 0 : index
    %52 = vector.load %arg3[%c1_17, %c0_18, %c0_19] : memref<5x16x128xf32, #tpu.memory_space<vmem>>, vector<1x16x128xf32>
    %53 = vector.shape_cast %52 : vector<1x16x128xf32> to vector<16x128xf32>
    %54 = arith.addf %18, %53 : vector<16x128xf32>
    %55 = arith.addf %19, %43 : vector<16x128xf32>
    %56 = arith.mulf %43, %53 : vector<16x128xf32>
    %57 = arith.addf %21, %56 : vector<16x128xf32>
    %58 = arith.mulf %43, %43 : vector<16x128xf32>
    %59 = arith.addf %23, %58 : vector<16x128xf32>
    %60 = arith.mulf %43, %47 : vector<16x128xf32>
    %61 = arith.addf %25, %60 : vector<16x128xf32>
    %62 = arith.mulf %43, %51 : vector<16x128xf32>
    %63 = arith.addf %27, %62 : vector<16x128xf32>
    %64 = arith.addf %28, %47 : vector<16x128xf32>
    %65 = arith.mulf %47, %53 : vector<16x128xf32>
    %66 = arith.addf %30, %65 : vector<16x128xf32>
    %67 = arith.mulf %47, %47 : vector<16x128xf32>
    %68 = arith.addf %32, %67 : vector<16x128xf32>
    %69 = arith.mulf %47, %51 : vector<16x128xf32>
    %70 = arith.addf %34, %69 : vector<16x128xf32>
    %71 = arith.addf %35, %51 : vector<16x128xf32>
    %72 = arith.mulf %51, %53 : vector<16x128xf32>
    %73 = arith.addf %37, %72 : vector<16x128xf32>
    %74 = arith.mulf %51, %51 : vector<16x128xf32>
    %75 = arith.addf %39, %74 : vector<16x128xf32>
    %c6 = arith.constant 6 : index
    %c0_20 = arith.constant 0 : index
    %c0_21 = arith.constant 0 : index
    %76 = vector.load %arg2[%c6, %c0_20, %c0_21] : memref<15x16x128xf32, #tpu.memory_space<vmem>>, vector<1x16x128xf32>
    %77 = vector.shape_cast %76 : vector<1x16x128xf32> to vector<16x128xf32>
    %78 = vector.broadcast %0 : f32 to vector<16x128xf32>
    %79 = arith.mulf %77, %78 : vector<16x128xf32>
    %c7 = arith.constant 7 : index
    %c0_22 = arith.constant 0 : index
    %c0_23 = arith.constant 0 : index
    %80 = vector.load %arg2[%c7, %c0_22, %c0_23] : memref<15x16x128xf32, #tpu.memory_space<vmem>>, vector<1x16x128xf32>
    %81 = vector.shape_cast %80 : vector<1x16x128xf32> to vector<16x128xf32>
    %82 = vector.broadcast %1 : f32 to vector<16x128xf32>
    %83 = arith.mulf %81, %82 : vector<16x128xf32>
    %c8 = arith.constant 8 : index
    %c0_24 = arith.constant 0 : index
    %c0_25 = arith.constant 0 : index
    %84 = vector.load %arg2[%c8, %c0_24, %c0_25] : memref<15x16x128xf32, #tpu.memory_space<vmem>>, vector<1x16x128xf32>
    %85 = vector.shape_cast %84 : vector<1x16x128xf32> to vector<16x128xf32>
    %86 = vector.broadcast %2 : f32 to vector<16x128xf32>
    %87 = arith.mulf %85, %86 : vector<16x128xf32>
    %c2_26 = arith.constant 2 : index
    %c0_27 = arith.constant 0 : index
    %c0_28 = arith.constant 0 : index
    %88 = vector.load %arg3[%c2_26, %c0_27, %c0_28] : memref<5x16x128xf32, #tpu.memory_space<vmem>>, vector<1x16x128xf32>
    %89 = vector.shape_cast %88 : vector<1x16x128xf32> to vector<16x128xf32>
    %90 = arith.addf %54, %89 : vector<16x128xf32>
    %91 = arith.addf %55, %79 : vector<16x128xf32>
    %92 = arith.mulf %79, %89 : vector<16x128xf32>
    %93 = arith.addf %57, %92 : vector<16x128xf32>
    %94 = arith.mulf %79, %79 : vector<16x128xf32>
    %95 = arith.addf %59, %94 : vector<16x128xf32>
    %96 = arith.mulf %79, %83 : vector<16x128xf32>
    %97 = arith.addf %61, %96 : vector<16x128xf32>
    %98 = arith.mulf %79, %87 : vector<16x128xf32>
    %99 = arith.addf %63, %98 : vector<16x128xf32>
    %100 = arith.addf %64, %83 : vector<16x128xf32>
    %101 = arith.mulf %83, %89 : vector<16x128xf32>
    %102 = arith.addf %66, %101 : vector<16x128xf32>
    %103 = arith.mulf %83, %83 : vector<16x128xf32>
    %104 = arith.addf %68, %103 : vector<16x128xf32>
    %105 = arith.mulf %83, %87 : vector<16x128xf32>
    %106 = arith.addf %70, %105 : vector<16x128xf32>
    %107 = arith.addf %71, %87 : vector<16x128xf32>
    %108 = arith.mulf %87, %89 : vector<16x128xf32>
    %109 = arith.addf %73, %108 : vector<16x128xf32>
    %110 = arith.mulf %87, %87 : vector<16x128xf32>
    %111 = arith.addf %75, %110 : vector<16x128xf32>
    %c9 = arith.constant 9 : index
    %c0_29 = arith.constant 0 : index
    %c0_30 = arith.constant 0 : index
    %112 = vector.load %arg2[%c9, %c0_29, %c0_30] : memref<15x16x128xf32, #tpu.memory_space<vmem>>, vector<1x16x128xf32>
    %113 = vector.shape_cast %112 : vector<1x16x128xf32> to vector<16x128xf32>
    %114 = vector.broadcast %0 : f32 to vector<16x128xf32>
    %115 = arith.mulf %113, %114 : vector<16x128xf32>
    %c10 = arith.constant 10 : index
    %c0_31 = arith.constant 0 : index
    %c0_32 = arith.constant 0 : index
    %116 = vector.load %arg2[%c10, %c0_31, %c0_32] : memref<15x16x128xf32, #tpu.memory_space<vmem>>, vector<1x16x128xf32>
    %117 = vector.shape_cast %116 : vector<1x16x128xf32> to vector<16x128xf32>
    %118 = vector.broadcast %1 : f32 to vector<16x128xf32>
    %119 = arith.mulf %117, %118 : vector<16x128xf32>
    %c11 = arith.constant 11 : index
    %c0_33 = arith.constant 0 : index
    %c0_34 = arith.constant 0 : index
    %120 = vector.load %arg2[%c11, %c0_33, %c0_34] : memref<15x16x128xf32, #tpu.memory_space<vmem>>, vector<1x16x128xf32>
    %121 = vector.shape_cast %120 : vector<1x16x128xf32> to vector<16x128xf32>
    %122 = vector.broadcast %2 : f32 to vector<16x128xf32>
    %123 = arith.mulf %121, %122 : vector<16x128xf32>
    %c3_35 = arith.constant 3 : index
    %c0_36 = arith.constant 0 : index
    %c0_37 = arith.constant 0 : index
    %124 = vector.load %arg3[%c3_35, %c0_36, %c0_37] : memref<5x16x128xf32, #tpu.memory_space<vmem>>, vector<1x16x128xf32>
    %125 = vector.shape_cast %124 : vector<1x16x128xf32> to vector<16x128xf32>
    %126 = arith.addf %90, %125 : vector<16x128xf32>
    %127 = arith.addf %91, %115 : vector<16x128xf32>
    %128 = arith.mulf %115, %125 : vector<16x128xf32>
    %129 = arith.addf %93, %128 : vector<16x128xf32>
    %130 = arith.mulf %115, %115 : vector<16x128xf32>
    %131 = arith.addf %95, %130 : vector<16x128xf32>
    %132 = arith.mulf %115, %119 : vector<16x128xf32>
    %133 = arith.addf %97, %132 : vector<16x128xf32>
    %134 = arith.mulf %115, %123 : vector<16x128xf32>
    %135 = arith.addf %99, %134 : vector<16x128xf32>
    %136 = arith.addf %100, %119 : vector<16x128xf32>
    %137 = arith.mulf %119, %125 : vector<16x128xf32>
    %138 = arith.addf %102, %137 : vector<16x128xf32>
    %139 = arith.mulf %119, %119 : vector<16x128xf32>
    %140 = arith.addf %104, %139 : vector<16x128xf32>
    %141 = arith.mulf %119, %123 : vector<16x128xf32>
    %142 = arith.addf %106, %141 : vector<16x128xf32>
    %143 = arith.addf %107, %123 : vector<16x128xf32>
    %144 = arith.mulf %123, %125 : vector<16x128xf32>
    %145 = arith.addf %109, %144 : vector<16x128xf32>
    %146 = arith.mulf %123, %123 : vector<16x128xf32>
    %147 = arith.addf %111, %146 : vector<16x128xf32>
    %c12 = arith.constant 12 : index
    %c0_38 = arith.constant 0 : index
    %c0_39 = arith.constant 0 : index
    %148 = vector.load %arg2[%c12, %c0_38, %c0_39] : memref<15x16x128xf32, #tpu.memory_space<vmem>>, vector<1x16x128xf32>
    %149 = vector.shape_cast %148 : vector<1x16x128xf32> to vector<16x128xf32>
    %150 = vector.broadcast %0 : f32 to vector<16x128xf32>
    %151 = arith.mulf %149, %150 : vector<16x128xf32>
    %c13_40 = arith.constant 13 : index
    %c0_41 = arith.constant 0 : index
    %c0_42 = arith.constant 0 : index
    %152 = vector.load %arg2[%c13_40, %c0_41, %c0_42] : memref<15x16x128xf32, #tpu.memory_space<vmem>>, vector<1x16x128xf32>
    %153 = vector.shape_cast %152 : vector<1x16x128xf32> to vector<16x128xf32>
    %154 = vector.broadcast %1 : f32 to vector<16x128xf32>
    %155 = arith.mulf %153, %154 : vector<16x128xf32>
    %c14 = arith.constant 14 : index
    %c0_43 = arith.constant 0 : index
    %c0_44 = arith.constant 0 : index
    %156 = vector.load %arg2[%c14, %c0_43, %c0_44] : memref<15x16x128xf32, #tpu.memory_space<vmem>>, vector<1x16x128xf32>
    %157 = vector.shape_cast %156 : vector<1x16x128xf32> to vector<16x128xf32>
    %158 = vector.broadcast %2 : f32 to vector<16x128xf32>
    %159 = arith.mulf %157, %158 : vector<16x128xf32>
    %c4_45 = arith.constant 4 : index
    %c0_46 = arith.constant 0 : index
    %c0_47 = arith.constant 0 : index
    %160 = vector.load %arg3[%c4_45, %c0_46, %c0_47] : memref<5x16x128xf32, #tpu.memory_space<vmem>>, vector<1x16x128xf32>
    %161 = vector.shape_cast %160 : vector<1x16x128xf32> to vector<16x128xf32>
    %162 = arith.addf %126, %161 : vector<16x128xf32>
    %163 = arith.addf %127, %151 : vector<16x128xf32>
    %164 = arith.mulf %151, %161 : vector<16x128xf32>
    %165 = arith.addf %129, %164 : vector<16x128xf32>
    %166 = arith.mulf %151, %151 : vector<16x128xf32>
    %167 = arith.addf %131, %166 : vector<16x128xf32>
    %168 = arith.mulf %151, %155 : vector<16x128xf32>
    %169 = arith.addf %133, %168 : vector<16x128xf32>
    %170 = arith.mulf %151, %159 : vector<16x128xf32>
    %171 = arith.addf %135, %170 : vector<16x128xf32>
    %172 = arith.addf %136, %155 : vector<16x128xf32>
    %173 = arith.mulf %155, %161 : vector<16x128xf32>
    %174 = arith.addf %138, %173 : vector<16x128xf32>
    %175 = arith.mulf %155, %155 : vector<16x128xf32>
    %176 = arith.addf %140, %175 : vector<16x128xf32>
    %177 = arith.mulf %155, %159 : vector<16x128xf32>
    %178 = arith.addf %142, %177 : vector<16x128xf32>
    %179 = arith.addf %143, %159 : vector<16x128xf32>
    %180 = arith.mulf %159, %161 : vector<16x128xf32>
    %181 = arith.addf %145, %180 : vector<16x128xf32>
    %182 = arith.mulf %159, %159 : vector<16x128xf32>
    %183 = arith.addf %147, %182 : vector<16x128xf32>
    %cst_48 = arith.constant 3.800000e+02 : f32
    %184 = vector.broadcast %cst_48 : f32 to vector<16x128xf32>
    %185 = arith.mulf %184, %167 : vector<16x128xf32>
    %186 = arith.mulf %163, %163 : vector<16x128xf32>
    %cst_49 = arith.constant 2.000000e+01 : f32
    %187 = vector.broadcast %cst_49 : f32 to vector<16x128xf32>
    %188 = arith.mulf %187, %186 : vector<16x128xf32>
    %189 = arith.addf %185, %188 : vector<16x128xf32>
    %cst_50 = arith.constant 4.000000e+00 : f32
    %190 = vector.broadcast %cst_50 : f32 to vector<16x128xf32>
    %191 = arith.addf %189, %190 : vector<16x128xf32>
    %cst_51 = arith.constant 2.000000e+00 : f32
    %192 = vector.broadcast %cst_51 : f32 to vector<16x128xf32>
    %193 = arith.mulf %192, %191 : vector<16x128xf32>
    %cst_52 = arith.constant 3.800000e+02 : f32
    %194 = vector.broadcast %cst_52 : f32 to vector<16x128xf32>
    %195 = arith.mulf %194, %169 : vector<16x128xf32>
    %196 = arith.mulf %163, %172 : vector<16x128xf32>
    %cst_53 = arith.constant 2.000000e+01 : f32
    %197 = vector.broadcast %cst_53 : f32 to vector<16x128xf32>
    %198 = arith.mulf %197, %196 : vector<16x128xf32>
    %199 = arith.addf %195, %198 : vector<16x128xf32>
    %cst_54 = arith.constant 5.000000e-01 : f32
    %200 = vector.broadcast %cst_54 : f32 to vector<16x128xf32>
    %201 = arith.addf %199, %200 : vector<16x128xf32>
    %cst_55 = arith.constant 2.000000e+00 : f32
    %202 = vector.broadcast %cst_55 : f32 to vector<16x128xf32>
    %203 = arith.mulf %202, %201 : vector<16x128xf32>
    %cst_56 = arith.constant 3.800000e+02 : f32
    %204 = vector.broadcast %cst_56 : f32 to vector<16x128xf32>
    %205 = arith.mulf %204, %171 : vector<16x128xf32>
    %206 = arith.mulf %163, %179 : vector<16x128xf32>
    %cst_57 = arith.constant 2.000000e+01 : f32
    %207 = vector.broadcast %cst_57 : f32 to vector<16x128xf32>
    %208 = arith.mulf %207, %206 : vector<16x128xf32>
    %209 = arith.addf %205, %208 : vector<16x128xf32>
    %cst_58 = arith.constant 2.000000e-01 : f32
    %210 = vector.broadcast %cst_58 : f32 to vector<16x128xf32>
    %211 = arith.addf %209, %210 : vector<16x128xf32>
    %cst_59 = arith.constant 2.000000e+00 : f32
    %212 = vector.broadcast %cst_59 : f32 to vector<16x128xf32>
    %213 = arith.mulf %212, %211 : vector<16x128xf32>
    %cst_60 = arith.constant 3.800000e+02 : f32
    %214 = vector.broadcast %cst_60 : f32 to vector<16x128xf32>
    %215 = arith.mulf %214, %176 : vector<16x128xf32>
    %216 = arith.mulf %172, %172 : vector<16x128xf32>
    %cst_61 = arith.constant 2.000000e+01 : f32
    %217 = vector.broadcast %cst_61 : f32 to vector<16x128xf32>
    %218 = arith.mulf %217, %216 : vector<16x128xf32>
    %219 = arith.addf %215, %218 : vector<16x128xf32>
    %cst_62 = arith.constant 1.000000e+01 : f32
    %220 = vector.broadcast %cst_62 : f32 to vector<16x128xf32>
    %221 = arith.addf %219, %220 : vector<16x128xf32>
    %cst_63 = arith.constant 2.000000e+00 : f32
    %222 = vector.broadcast %cst_63 : f32 to vector<16x128xf32>
    %223 = arith.mulf %222, %221 : vector<16x128xf32>
    %cst_64 = arith.constant 3.800000e+02 : f32
    %224 = vector.broadcast %cst_64 : f32 to vector<16x128xf32>
    %225 = arith.mulf %224, %178 : vector<16x128xf32>
    %226 = arith.mulf %172, %179 : vector<16x128xf32>
    %cst_65 = arith.constant 2.000000e+01 : f32
    %227 = vector.broadcast %cst_65 : f32 to vector<16x128xf32>
    %228 = arith.mulf %227, %226 : vector<16x128xf32>
    %229 = arith.addf %225, %228 : vector<16x128xf32>
    %cst_66 = arith.constant 3.000000e-01 : f32
    %230 = vector.broadcast %cst_66 : f32 to vector<16x128xf32>
    %231 = arith.addf %229, %230 : vector<16x128xf32>
    %cst_67 = arith.constant 2.000000e+00 : f32
    %232 = vector.broadcast %cst_67 : f32 to vector<16x128xf32>
    %233 = arith.mulf %232, %231 : vector<16x128xf32>
    %cst_68 = arith.constant 3.800000e+02 : f32
    %234 = vector.broadcast %cst_68 : f32 to vector<16x128xf32>
    %235 = arith.mulf %234, %183 : vector<16x128xf32>
    %236 = arith.mulf %179, %179 : vector<16x128xf32>
    %cst_69 = arith.constant 2.000000e+01 : f32
    %237 = vector.broadcast %cst_69 : f32 to vector<16x128xf32>
    %238 = arith.mulf %237, %236 : vector<16x128xf32>
    %239 = arith.addf %235, %238 : vector<16x128xf32>
    %cst_70 = arith.constant 2.500000e+01 : f32
    %240 = vector.broadcast %cst_70 : f32 to vector<16x128xf32>
    %241 = arith.addf %239, %240 : vector<16x128xf32>
    %cst_71 = arith.constant 2.000000e+00 : f32
    %242 = vector.broadcast %cst_71 : f32 to vector<16x128xf32>
    %243 = arith.mulf %242, %241 : vector<16x128xf32>
    %cst_72 = arith.constant 3.800000e+02 : f32
    %244 = vector.broadcast %cst_72 : f32 to vector<16x128xf32>
    %245 = arith.mulf %244, %165 : vector<16x128xf32>
    %246 = arith.mulf %163, %162 : vector<16x128xf32>
    %cst_73 = arith.constant 2.000000e+01 : f32
    %247 = vector.broadcast %cst_73 : f32 to vector<16x128xf32>
    %248 = arith.mulf %247, %246 : vector<16x128xf32>
    %249 = arith.addf %245, %248 : vector<16x128xf32>
    %cst_74 = arith.constant 1.260000e+00 : f32
    %250 = vector.broadcast %cst_74 : f32 to vector<16x128xf32>
    %251 = arith.addf %249, %250 : vector<16x128xf32>
    %cst_75 = arith.constant 2.000000e+00 : f32
    %252 = vector.broadcast %cst_75 : f32 to vector<16x128xf32>
    %253 = arith.mulf %252, %251 : vector<16x128xf32>
    %cst_76 = arith.constant 3.800000e+02 : f32
    %254 = vector.broadcast %cst_76 : f32 to vector<16x128xf32>
    %255 = arith.mulf %254, %174 : vector<16x128xf32>
    %256 = arith.mulf %172, %162 : vector<16x128xf32>
    %cst_77 = arith.constant 2.000000e+01 : f32
    %257 = vector.broadcast %cst_77 : f32 to vector<16x128xf32>
    %258 = arith.mulf %257, %256 : vector<16x128xf32>
    %259 = arith.addf %255, %258 : vector<16x128xf32>
    %cst_78 = arith.constant 1.165000e+00 : f32
    %260 = vector.broadcast %cst_78 : f32 to vector<16x128xf32>
    %261 = arith.addf %259, %260 : vector<16x128xf32>
    %cst_79 = arith.constant 2.000000e+00 : f32
    %262 = vector.broadcast %cst_79 : f32 to vector<16x128xf32>
    %263 = arith.mulf %262, %261 : vector<16x128xf32>
    %cst_80 = arith.constant 3.800000e+02 : f32
    %264 = vector.broadcast %cst_80 : f32 to vector<16x128xf32>
    %265 = arith.mulf %264, %181 : vector<16x128xf32>
    %266 = arith.mulf %179, %162 : vector<16x128xf32>
    %cst_81 = arith.constant 2.000000e+01 : f32
    %267 = vector.broadcast %cst_81 : f32 to vector<16x128xf32>
    %268 = arith.mulf %267, %266 : vector<16x128xf32>
    %269 = arith.addf %265, %268 : vector<16x128xf32>
    %cst_82 = arith.constant 1.340000e+00 : f32
    %270 = vector.broadcast %cst_82 : f32 to vector<16x128xf32>
    %271 = arith.addf %269, %270 : vector<16x128xf32>
    %cst_83 = arith.constant 2.000000e+00 : f32
    %272 = vector.broadcast %cst_83 : f32 to vector<16x128xf32>
    %273 = arith.mulf %272, %271 : vector<16x128xf32>
    %cst_84 = arith.constant 3.000000e-01 : f32
    %274 = vector.broadcast %cst_84 : f32 to vector<16x128xf32>
    %cst_85 = arith.constant 1.000000e-01 : f32
    %275 = vector.broadcast %cst_85 : f32 to vector<16x128xf32>
    %cst_86 = arith.constant 5.000000e-02 : f32
    %276 = vector.broadcast %cst_86 : f32 to vector<16x128xf32>
    %cst_87 = arith.constant 1.000000e+00 : f32
    %cst_88 = arith.constant 1.000000e+00 : f32
    %c0_i32 = arith.constant 0 : i32
    %c25_i32 = arith.constant 25 : i32
    %277 = arith.addi %c0_i32, %c25_i32 : i32
    %c1_i32 = arith.constant 1 : i32
    %278:11 = scf.for %arg5 = %c0_i32 to %277 step %c1_i32 iter_args(%arg6 = %274, %arg7 = %275, %arg8 = %276, %arg9 = %3, %arg10 = %3, %arg11 = %3, %arg12 = %3, %arg13 = %3, %arg14 = %3, %arg15 = %cst_87, %arg16 = %cst_88) -> (vector<16x128xf32>, vector<16x128xf32>, vector<16x128xf32>, vector<16x128xf32>, vector<16x128xf32>, vector<16x128xf32>, vector<16x128xf32>, vector<16x128xf32>, vector<16x128xf32>, f32, f32)  : i32 {
      %cst_156 = arith.constant 0.899999976 : f32
      %410 = arith.mulf %arg15, %cst_156 : f32
      %cst_157 = arith.constant 9.990000e-01 : f32
      %411 = arith.mulf %arg16, %cst_157 : f32
      %cst_158 = arith.constant 1.000000e+00 : f32
      %412 = arith.subf %cst_158, %410 : f32
      %cst_159 = arith.constant 1.000000e+00 : f32
      %413 = arith.divf %cst_159, %412 : f32
      %cst_160 = arith.constant 1.000000e+00 : f32
      %414 = arith.subf %cst_160, %411 : f32
      %cst_161 = arith.constant 1.000000e+00 : f32
      %415 = arith.divf %cst_161, %414 : f32
      %cst_162 = arith.constant 0.00999999977 : f32
      %416 = arith.mulf %cst_162, %413 : f32
      %417 = arith.mulf %193, %arg6 : vector<16x128xf32>
      %418 = arith.mulf %203, %arg7 : vector<16x128xf32>
      %419 = arith.addf %417, %418 : vector<16x128xf32>
      %420 = arith.mulf %213, %arg8 : vector<16x128xf32>
      %421 = arith.addf %419, %420 : vector<16x128xf32>
      %422 = arith.subf %421, %253 : vector<16x128xf32>
      %423 = arith.mulf %203, %arg6 : vector<16x128xf32>
      %424 = arith.mulf %223, %arg7 : vector<16x128xf32>
      %425 = arith.addf %423, %424 : vector<16x128xf32>
      %426 = arith.mulf %233, %arg8 : vector<16x128xf32>
      %427 = arith.addf %425, %426 : vector<16x128xf32>
      %428 = arith.subf %427, %263 : vector<16x128xf32>
      %429 = arith.mulf %213, %arg6 : vector<16x128xf32>
      %430 = arith.mulf %233, %arg7 : vector<16x128xf32>
      %431 = arith.addf %429, %430 : vector<16x128xf32>
      %432 = arith.mulf %243, %arg8 : vector<16x128xf32>
      %433 = arith.addf %431, %432 : vector<16x128xf32>
      %434 = arith.subf %433, %273 : vector<16x128xf32>
      %cst_163 = arith.constant 0.899999976 : f32
      %435 = vector.broadcast %cst_163 : f32 to vector<16x128xf32>
      %436 = arith.mulf %435, %arg9 : vector<16x128xf32>
      %cst_164 = arith.constant 1.000000e-01 : f32
      %437 = vector.broadcast %cst_164 : f32 to vector<16x128xf32>
      %438 = arith.mulf %437, %422 : vector<16x128xf32>
      %439 = arith.addf %436, %438 : vector<16x128xf32>
      %cst_165 = arith.constant 9.990000e-01 : f32
      %440 = vector.broadcast %cst_165 : f32 to vector<16x128xf32>
      %441 = arith.mulf %440, %arg12 : vector<16x128xf32>
      %442 = arith.mulf %422, %422 : vector<16x128xf32>
      %cst_166 = arith.constant 1.000000e-03 : f32
      %443 = vector.broadcast %cst_166 : f32 to vector<16x128xf32>
      %444 = arith.mulf %443, %442 : vector<16x128xf32>
      %445 = arith.addf %441, %444 : vector<16x128xf32>
      %446 = vector.broadcast %415 : f32 to vector<16x128xf32>
      %447 = arith.mulf %445, %446 : vector<16x128xf32>
      %cst_167 = arith.constant 1.000000e-16 : f32
      %448 = vector.broadcast %cst_167 : f32 to vector<16x128xf32>
      %449 = arith.addf %447, %448 : vector<16x128xf32>
      %450 = math.rsqrt %449 : vector<16x128xf32>
      %451 = vector.broadcast %416 : f32 to vector<16x128xf32>
      %452 = arith.mulf %451, %439 : vector<16x128xf32>
      %453 = arith.mulf %452, %450 : vector<16x128xf32>
      %454 = arith.subf %arg6, %453 : vector<16x128xf32>
      %cst_168 = arith.constant 0.899999976 : f32
      %455 = vector.broadcast %cst_168 : f32 to vector<16x128xf32>
      %456 = arith.mulf %455, %arg10 : vector<16x128xf32>
      %cst_169 = arith.constant 1.000000e-01 : f32
      %457 = vector.broadcast %cst_169 : f32 to vector<16x128xf32>
      %458 = arith.mulf %457, %428 : vector<16x128xf32>
      %459 = arith.addf %456, %458 : vector<16x128xf32>
      %cst_170 = arith.constant 9.990000e-01 : f32
      %460 = vector.broadcast %cst_170 : f32 to vector<16x128xf32>
      %461 = arith.mulf %460, %arg13 : vector<16x128xf32>
      %462 = arith.mulf %428, %428 : vector<16x128xf32>
      %cst_171 = arith.constant 1.000000e-03 : f32
      %463 = vector.broadcast %cst_171 : f32 to vector<16x128xf32>
      %464 = arith.mulf %463, %462 : vector<16x128xf32>
      %465 = arith.addf %461, %464 : vector<16x128xf32>
      %466 = vector.broadcast %415 : f32 to vector<16x128xf32>
      %467 = arith.mulf %465, %466 : vector<16x128xf32>
      %cst_172 = arith.constant 1.000000e-16 : f32
      %468 = vector.broadcast %cst_172 : f32 to vector<16x128xf32>
      %469 = arith.addf %467, %468 : vector<16x128xf32>
      %470 = math.rsqrt %469 : vector<16x128xf32>
      %471 = vector.broadcast %416 : f32 to vector<16x128xf32>
      %472 = arith.mulf %471, %459 : vector<16x128xf32>
      %473 = arith.mulf %472, %470 : vector<16x128xf32>
      %474 = arith.subf %arg7, %473 : vector<16x128xf32>
      %cst_173 = arith.constant 0.899999976 : f32
      %475 = vector.broadcast %cst_173 : f32 to vector<16x128xf32>
      %476 = arith.mulf %475, %arg11 : vector<16x128xf32>
      %cst_174 = arith.constant 1.000000e-01 : f32
      %477 = vector.broadcast %cst_174 : f32 to vector<16x128xf32>
      %478 = arith.mulf %477, %434 : vector<16x128xf32>
      %479 = arith.addf %476, %478 : vector<16x128xf32>
      %cst_175 = arith.constant 9.990000e-01 : f32
      %480 = vector.broadcast %cst_175 : f32 to vector<16x128xf32>
      %481 = arith.mulf %480, %arg14 : vector<16x128xf32>
      %482 = arith.mulf %434, %434 : vector<16x128xf32>
      %cst_176 = arith.constant 1.000000e-03 : f32
      %483 = vector.broadcast %cst_176 : f32 to vector<16x128xf32>
      %484 = arith.mulf %483, %482 : vector<16x128xf32>
      %485 = arith.addf %481, %484 : vector<16x128xf32>
      %486 = vector.broadcast %415 : f32 to vector<16x128xf32>
      %487 = arith.mulf %485, %486 : vector<16x128xf32>
      %cst_177 = arith.constant 1.000000e-16 : f32
      %488 = vector.broadcast %cst_177 : f32 to vector<16x128xf32>
      %489 = arith.addf %487, %488 : vector<16x128xf32>
      %490 = math.rsqrt %489 : vector<16x128xf32>
      %491 = vector.broadcast %416 : f32 to vector<16x128xf32>
      %492 = arith.mulf %491, %479 : vector<16x128xf32>
      %493 = arith.mulf %492, %490 : vector<16x128xf32>
      %494 = arith.subf %arg8, %493 : vector<16x128xf32>
      %cst_178 = arith.constant 0.899999976 : f32
      %495 = arith.mulf %410, %cst_178 : f32
      %cst_179 = arith.constant 9.990000e-01 : f32
      %496 = arith.mulf %411, %cst_179 : f32
      %cst_180 = arith.constant 1.000000e+00 : f32
      %497 = arith.subf %cst_180, %495 : f32
      %cst_181 = arith.constant 1.000000e+00 : f32
      %498 = arith.divf %cst_181, %497 : f32
      %cst_182 = arith.constant 1.000000e+00 : f32
      %499 = arith.subf %cst_182, %496 : f32
      %cst_183 = arith.constant 1.000000e+00 : f32
      %500 = arith.divf %cst_183, %499 : f32
      %cst_184 = arith.constant 0.00999999977 : f32
      %501 = arith.mulf %cst_184, %498 : f32
      %502 = arith.mulf %193, %454 : vector<16x128xf32>
      %503 = arith.mulf %203, %474 : vector<16x128xf32>
      %504 = arith.addf %502, %503 : vector<16x128xf32>
      %505 = arith.mulf %213, %494 : vector<16x128xf32>
      %506 = arith.addf %504, %505 : vector<16x128xf32>
      %507 = arith.subf %506, %253 : vector<16x128xf32>
      %508 = arith.mulf %203, %454 : vector<16x128xf32>
      %509 = arith.mulf %223, %474 : vector<16x128xf32>
      %510 = arith.addf %508, %509 : vector<16x128xf32>
      %511 = arith.mulf %233, %494 : vector<16x128xf32>
      %512 = arith.addf %510, %511 : vector<16x128xf32>
      %513 = arith.subf %512, %263 : vector<16x128xf32>
      %514 = arith.mulf %213, %454 : vector<16x128xf32>
      %515 = arith.mulf %233, %474 : vector<16x128xf32>
      %516 = arith.addf %514, %515 : vector<16x128xf32>
      %517 = arith.mulf %243, %494 : vector<16x128xf32>
      %518 = arith.addf %516, %517 : vector<16x128xf32>
      %519 = arith.subf %518, %273 : vector<16x128xf32>
      %cst_185 = arith.constant 0.899999976 : f32
      %520 = vector.broadcast %cst_185 : f32 to vector<16x128xf32>
      %521 = arith.mulf %520, %439 : vector<16x128xf32>
      %cst_186 = arith.constant 1.000000e-01 : f32
      %522 = vector.broadcast %cst_186 : f32 to vector<16x128xf32>
      %523 = arith.mulf %522, %507 : vector<16x128xf32>
      %524 = arith.addf %521, %523 : vector<16x128xf32>
      %cst_187 = arith.constant 9.990000e-01 : f32
      %525 = vector.broadcast %cst_187 : f32 to vector<16x128xf32>
      %526 = arith.mulf %525, %445 : vector<16x128xf32>
      %527 = arith.mulf %507, %507 : vector<16x128xf32>
      %cst_188 = arith.constant 1.000000e-03 : f32
      %528 = vector.broadcast %cst_188 : f32 to vector<16x128xf32>
      %529 = arith.mulf %528, %527 : vector<16x128xf32>
      %530 = arith.addf %526, %529 : vector<16x128xf32>
      %531 = vector.broadcast %500 : f32 to vector<16x128xf32>
      %532 = arith.mulf %530, %531 : vector<16x128xf32>
      %cst_189 = arith.constant 1.000000e-16 : f32
      %533 = vector.broadcast %cst_189 : f32 to vector<16x128xf32>
      %534 = arith.addf %532, %533 : vector<16x128xf32>
      %535 = math.rsqrt %534 : vector<16x128xf32>
      %536 = vector.broadcast %501 : f32 to vector<16x128xf32>
      %537 = arith.mulf %536, %524 : vector<16x128xf32>
      %538 = arith.mulf %537, %535 : vector<16x128xf32>
      %539 = arith.subf %454, %538 : vector<16x128xf32>
      %cst_190 = arith.constant 0.899999976 : f32
      %540 = vector.broadcast %cst_190 : f32 to vector<16x128xf32>
      %541 = arith.mulf %540, %459 : vector<16x128xf32>
      %cst_191 = arith.constant 1.000000e-01 : f32
      %542 = vector.broadcast %cst_191 : f32 to vector<16x128xf32>
      %543 = arith.mulf %542, %513 : vector<16x128xf32>
      %544 = arith.addf %541, %543 : vector<16x128xf32>
      %cst_192 = arith.constant 9.990000e-01 : f32
      %545 = vector.broadcast %cst_192 : f32 to vector<16x128xf32>
      %546 = arith.mulf %545, %465 : vector<16x128xf32>
      %547 = arith.mulf %513, %513 : vector<16x128xf32>
      %cst_193 = arith.constant 1.000000e-03 : f32
      %548 = vector.broadcast %cst_193 : f32 to vector<16x128xf32>
      %549 = arith.mulf %548, %547 : vector<16x128xf32>
      %550 = arith.addf %546, %549 : vector<16x128xf32>
      %551 = vector.broadcast %500 : f32 to vector<16x128xf32>
      %552 = arith.mulf %550, %551 : vector<16x128xf32>
      %cst_194 = arith.constant 1.000000e-16 : f32
      %553 = vector.broadcast %cst_194 : f32 to vector<16x128xf32>
      %554 = arith.addf %552, %553 : vector<16x128xf32>
      %555 = math.rsqrt %554 : vector<16x128xf32>
      %556 = vector.broadcast %501 : f32 to vector<16x128xf32>
      %557 = arith.mulf %556, %544 : vector<16x128xf32>
      %558 = arith.mulf %557, %555 : vector<16x128xf32>
      %559 = arith.subf %474, %558 : vector<16x128xf32>
      %cst_195 = arith.constant 0.899999976 : f32
      %560 = vector.broadcast %cst_195 : f32 to vector<16x128xf32>
      %561 = arith.mulf %560, %479 : vector<16x128xf32>
      %cst_196 = arith.constant 1.000000e-01 : f32
      %562 = vector.broadcast %cst_196 : f32 to vector<16x128xf32>
      %563 = arith.mulf %562, %519 : vector<16x128xf32>
      %564 = arith.addf %561, %563 : vector<16x128xf32>
      %cst_197 = arith.constant 9.990000e-01 : f32
      %565 = vector.broadcast %cst_197 : f32 to vector<16x128xf32>
      %566 = arith.mulf %565, %485 : vector<16x128xf32>
      %567 = arith.mulf %519, %519 : vector<16x128xf32>
      %cst_198 = arith.constant 1.000000e-03 : f32
      %568 = vector.broadcast %cst_198 : f32 to vector<16x128xf32>
      %569 = arith.mulf %568, %567 : vector<16x128xf32>
      %570 = arith.addf %566, %569 : vector<16x128xf32>
      %571 = vector.broadcast %500 : f32 to vector<16x128xf32>
      %572 = arith.mulf %570, %571 : vector<16x128xf32>
      %cst_199 = arith.constant 1.000000e-16 : f32
      %573 = vector.broadcast %cst_199 : f32 to vector<16x128xf32>
      %574 = arith.addf %572, %573 : vector<16x128xf32>
      %575 = math.rsqrt %574 : vector<16x128xf32>
      %576 = vector.broadcast %501 : f32 to vector<16x128xf32>
      %577 = arith.mulf %576, %564 : vector<16x128xf32>
      %578 = arith.mulf %577, %575 : vector<16x128xf32>
      %579 = arith.subf %494, %578 : vector<16x128xf32>
      %cst_200 = arith.constant 0.899999976 : f32
      %580 = arith.mulf %495, %cst_200 : f32
      %cst_201 = arith.constant 9.990000e-01 : f32
      %581 = arith.mulf %496, %cst_201 : f32
      %cst_202 = arith.constant 1.000000e+00 : f32
      %582 = arith.subf %cst_202, %580 : f32
      %cst_203 = arith.constant 1.000000e+00 : f32
      %583 = arith.divf %cst_203, %582 : f32
      %cst_204 = arith.constant 1.000000e+00 : f32
      %584 = arith.subf %cst_204, %581 : f32
      %cst_205 = arith.constant 1.000000e+00 : f32
      %585 = arith.divf %cst_205, %584 : f32
      %cst_206 = arith.constant 0.00999999977 : f32
      %586 = arith.mulf %cst_206, %583 : f32
      %587 = arith.mulf %193, %539 : vector<16x128xf32>
      %588 = arith.mulf %203, %559 : vector<16x128xf32>
      %589 = arith.addf %587, %588 : vector<16x128xf32>
      %590 = arith.mulf %213, %579 : vector<16x128xf32>
      %591 = arith.addf %589, %590 : vector<16x128xf32>
      %592 = arith.subf %591, %253 : vector<16x128xf32>
      %593 = arith.mulf %203, %539 : vector<16x128xf32>
      %594 = arith.mulf %223, %559 : vector<16x128xf32>
      %595 = arith.addf %593, %594 : vector<16x128xf32>
      %596 = arith.mulf %233, %579 : vector<16x128xf32>
      %597 = arith.addf %595, %596 : vector<16x128xf32>
      %598 = arith.subf %597, %263 : vector<16x128xf32>
      %599 = arith.mulf %213, %539 : vector<16x128xf32>
      %600 = arith.mulf %233, %559 : vector<16x128xf32>
      %601 = arith.addf %599, %600 : vector<16x128xf32>
      %602 = arith.mulf %243, %579 : vector<16x128xf32>
      %603 = arith.addf %601, %602 : vector<16x128xf32>
      %604 = arith.subf %603, %273 : vector<16x128xf32>
      %cst_207 = arith.constant 0.899999976 : f32
      %605 = vector.broadcast %cst_207 : f32 to vector<16x128xf32>
      %606 = arith.mulf %605, %524 : vector<16x128xf32>
      %cst_208 = arith.constant 1.000000e-01 : f32
      %607 = vector.broadcast %cst_208 : f32 to vector<16x128xf32>
      %608 = arith.mulf %607, %592 : vector<16x128xf32>
      %609 = arith.addf %606, %608 : vector<16x128xf32>
      %cst_209 = arith.constant 9.990000e-01 : f32
      %610 = vector.broadcast %cst_209 : f32 to vector<16x128xf32>
      %611 = arith.mulf %610, %530 : vector<16x128xf32>
      %612 = arith.mulf %592, %592 : vector<16x128xf32>
      %cst_210 = arith.constant 1.000000e-03 : f32
      %613 = vector.broadcast %cst_210 : f32 to vector<16x128xf32>
      %614 = arith.mulf %613, %612 : vector<16x128xf32>
      %615 = arith.addf %611, %614 : vector<16x128xf32>
      %616 = vector.broadcast %585 : f32 to vector<16x128xf32>
      %617 = arith.mulf %615, %616 : vector<16x128xf32>
      %cst_211 = arith.constant 1.000000e-16 : f32
      %618 = vector.broadcast %cst_211 : f32 to vector<16x128xf32>
      %619 = arith.addf %617, %618 : vector<16x128xf32>
      %620 = math.rsqrt %619 : vector<16x128xf32>
      %621 = vector.broadcast %586 : f32 to vector<16x128xf32>
      %622 = arith.mulf %621, %609 : vector<16x128xf32>
      %623 = arith.mulf %622, %620 : vector<16x128xf32>
      %624 = arith.subf %539, %623 : vector<16x128xf32>
      %cst_212 = arith.constant 0.899999976 : f32
      %625 = vector.broadcast %cst_212 : f32 to vector<16x128xf32>
      %626 = arith.mulf %625, %544 : vector<16x128xf32>
      %cst_213 = arith.constant 1.000000e-01 : f32
      %627 = vector.broadcast %cst_213 : f32 to vector<16x128xf32>
      %628 = arith.mulf %627, %598 : vector<16x128xf32>
      %629 = arith.addf %626, %628 : vector<16x128xf32>
      %cst_214 = arith.constant 9.990000e-01 : f32
      %630 = vector.broadcast %cst_214 : f32 to vector<16x128xf32>
      %631 = arith.mulf %630, %550 : vector<16x128xf32>
      %632 = arith.mulf %598, %598 : vector<16x128xf32>
      %cst_215 = arith.constant 1.000000e-03 : f32
      %633 = vector.broadcast %cst_215 : f32 to vector<16x128xf32>
      %634 = arith.mulf %633, %632 : vector<16x128xf32>
      %635 = arith.addf %631, %634 : vector<16x128xf32>
      %636 = vector.broadcast %585 : f32 to vector<16x128xf32>
      %637 = arith.mulf %635, %636 : vector<16x128xf32>
      %cst_216 = arith.constant 1.000000e-16 : f32
      %638 = vector.broadcast %cst_216 : f32 to vector<16x128xf32>
      %639 = arith.addf %637, %638 : vector<16x128xf32>
      %640 = math.rsqrt %639 : vector<16x128xf32>
      %641 = vector.broadcast %586 : f32 to vector<16x128xf32>
      %642 = arith.mulf %641, %629 : vector<16x128xf32>
      %643 = arith.mulf %642, %640 : vector<16x128xf32>
      %644 = arith.subf %559, %643 : vector<16x128xf32>
      %cst_217 = arith.constant 0.899999976 : f32
      %645 = vector.broadcast %cst_217 : f32 to vector<16x128xf32>
      %646 = arith.mulf %645, %564 : vector<16x128xf32>
      %cst_218 = arith.constant 1.000000e-01 : f32
      %647 = vector.broadcast %cst_218 : f32 to vector<16x128xf32>
      %648 = arith.mulf %647, %604 : vector<16x128xf32>
      %649 = arith.addf %646, %648 : vector<16x128xf32>
      %cst_219 = arith.constant 9.990000e-01 : f32
      %650 = vector.broadcast %cst_219 : f32 to vector<16x128xf32>
      %651 = arith.mulf %650, %570 : vector<16x128xf32>
      %652 = arith.mulf %604, %604 : vector<16x128xf32>
      %cst_220 = arith.constant 1.000000e-03 : f32
      %653 = vector.broadcast %cst_220 : f32 to vector<16x128xf32>
      %654 = arith.mulf %653, %652 : vector<16x128xf32>
      %655 = arith.addf %651, %654 : vector<16x128xf32>
      %656 = vector.broadcast %585 : f32 to vector<16x128xf32>
      %657 = arith.mulf %655, %656 : vector<16x128xf32>
      %cst_221 = arith.constant 1.000000e-16 : f32
      %658 = vector.broadcast %cst_221 : f32 to vector<16x128xf32>
      %659 = arith.addf %657, %658 : vector<16x128xf32>
      %660 = math.rsqrt %659 : vector<16x128xf32>
      %661 = vector.broadcast %586 : f32 to vector<16x128xf32>
      %662 = arith.mulf %661, %649 : vector<16x128xf32>
      %663 = arith.mulf %662, %660 : vector<16x128xf32>
      %664 = arith.subf %579, %663 : vector<16x128xf32>
      %cst_222 = arith.constant 0.899999976 : f32
      %665 = arith.mulf %580, %cst_222 : f32
      %cst_223 = arith.constant 9.990000e-01 : f32
      %666 = arith.mulf %581, %cst_223 : f32
      %cst_224 = arith.constant 1.000000e+00 : f32
      %667 = arith.subf %cst_224, %665 : f32
      %cst_225 = arith.constant 1.000000e+00 : f32
      %668 = arith.divf %cst_225, %667 : f32
      %cst_226 = arith.constant 1.000000e+00 : f32
      %669 = arith.subf %cst_226, %666 : f32
      %cst_227 = arith.constant 1.000000e+00 : f32
      %670 = arith.divf %cst_227, %669 : f32
      %cst_228 = arith.constant 0.00999999977 : f32
      %671 = arith.mulf %cst_228, %668 : f32
      %672 = arith.mulf %193, %624 : vector<16x128xf32>
      %673 = arith.mulf %203, %644 : vector<16x128xf32>
      %674 = arith.addf %672, %673 : vector<16x128xf32>
      %675 = arith.mulf %213, %664 : vector<16x128xf32>
      %676 = arith.addf %674, %675 : vector<16x128xf32>
      %677 = arith.subf %676, %253 : vector<16x128xf32>
      %678 = arith.mulf %203, %624 : vector<16x128xf32>
      %679 = arith.mulf %223, %644 : vector<16x128xf32>
      %680 = arith.addf %678, %679 : vector<16x128xf32>
      %681 = arith.mulf %233, %664 : vector<16x128xf32>
      %682 = arith.addf %680, %681 : vector<16x128xf32>
      %683 = arith.subf %682, %263 : vector<16x128xf32>
      %684 = arith.mulf %213, %624 : vector<16x128xf32>
      %685 = arith.mulf %233, %644 : vector<16x128xf32>
      %686 = arith.addf %684, %685 : vector<16x128xf32>
      %687 = arith.mulf %243, %664 : vector<16x128xf32>
      %688 = arith.addf %686, %687 : vector<16x128xf32>
      %689 = arith.subf %688, %273 : vector<16x128xf32>
      %cst_229 = arith.constant 0.899999976 : f32
      %690 = vector.broadcast %cst_229 : f32 to vector<16x128xf32>
      %691 = arith.mulf %690, %609 : vector<16x128xf32>
      %cst_230 = arith.constant 1.000000e-01 : f32
      %692 = vector.broadcast %cst_230 : f32 to vector<16x128xf32>
      %693 = arith.mulf %692, %677 : vector<16x128xf32>
      %694 = arith.addf %691, %693 : vector<16x128xf32>
      %cst_231 = arith.constant 9.990000e-01 : f32
      %695 = vector.broadcast %cst_231 : f32 to vector<16x128xf32>
      %696 = arith.mulf %695, %615 : vector<16x128xf32>
      %697 = arith.mulf %677, %677 : vector<16x128xf32>
      %cst_232 = arith.constant 1.000000e-03 : f32
      %698 = vector.broadcast %cst_232 : f32 to vector<16x128xf32>
      %699 = arith.mulf %698, %697 : vector<16x128xf32>
      %700 = arith.addf %696, %699 : vector<16x128xf32>
      %701 = vector.broadcast %670 : f32 to vector<16x128xf32>
      %702 = arith.mulf %700, %701 : vector<16x128xf32>
      %cst_233 = arith.constant 1.000000e-16 : f32
      %703 = vector.broadcast %cst_233 : f32 to vector<16x128xf32>
      %704 = arith.addf %702, %703 : vector<16x128xf32>
      %705 = math.rsqrt %704 : vector<16x128xf32>
      %706 = vector.broadcast %671 : f32 to vector<16x128xf32>
      %707 = arith.mulf %706, %694 : vector<16x128xf32>
      %708 = arith.mulf %707, %705 : vector<16x128xf32>
      %709 = arith.subf %624, %708 : vector<16x128xf32>
      %cst_234 = arith.constant 0.899999976 : f32
      %710 = vector.broadcast %cst_234 : f32 to vector<16x128xf32>
      %711 = arith.mulf %710, %629 : vector<16x128xf32>
      %cst_235 = arith.constant 1.000000e-01 : f32
      %712 = vector.broadcast %cst_235 : f32 to vector<16x128xf32>
      %713 = arith.mulf %712, %683 : vector<16x128xf32>
      %714 = arith.addf %711, %713 : vector<16x128xf32>
      %cst_236 = arith.constant 9.990000e-01 : f32
      %715 = vector.broadcast %cst_236 : f32 to vector<16x128xf32>
      %716 = arith.mulf %715, %635 : vector<16x128xf32>
      %717 = arith.mulf %683, %683 : vector<16x128xf32>
      %cst_237 = arith.constant 1.000000e-03 : f32
      %718 = vector.broadcast %cst_237 : f32 to vector<16x128xf32>
      %719 = arith.mulf %718, %717 : vector<16x128xf32>
      %720 = arith.addf %716, %719 : vector<16x128xf32>
      %721 = vector.broadcast %670 : f32 to vector<16x128xf32>
      %722 = arith.mulf %720, %721 : vector<16x128xf32>
      %cst_238 = arith.constant 1.000000e-16 : f32
      %723 = vector.broadcast %cst_238 : f32 to vector<16x128xf32>
      %724 = arith.addf %722, %723 : vector<16x128xf32>
      %725 = math.rsqrt %724 : vector<16x128xf32>
      %726 = vector.broadcast %671 : f32 to vector<16x128xf32>
      %727 = arith.mulf %726, %714 : vector<16x128xf32>
      %728 = arith.mulf %727, %725 : vector<16x128xf32>
      %729 = arith.subf %644, %728 : vector<16x128xf32>
      %cst_239 = arith.constant 0.899999976 : f32
      %730 = vector.broadcast %cst_239 : f32 to vector<16x128xf32>
      %731 = arith.mulf %730, %649 : vector<16x128xf32>
      %cst_240 = arith.constant 1.000000e-01 : f32
      %732 = vector.broadcast %cst_240 : f32 to vector<16x128xf32>
      %733 = arith.mulf %732, %689 : vector<16x128xf32>
      %734 = arith.addf %731, %733 : vector<16x128xf32>
      %cst_241 = arith.constant 9.990000e-01 : f32
      %735 = vector.broadcast %cst_241 : f32 to vector<16x128xf32>
      %736 = arith.mulf %735, %655 : vector<16x128xf32>
      %737 = arith.mulf %689, %689 : vector<16x128xf32>
      %cst_242 = arith.constant 1.000000e-03 : f32
      %738 = vector.broadcast %cst_242 : f32 to vector<16x128xf32>
      %739 = arith.mulf %738, %737 : vector<16x128xf32>
      %740 = arith.addf %736, %739 : vector<16x128xf32>
      %741 = vector.broadcast %670 : f32 to vector<16x128xf32>
      %742 = arith.mulf %740, %741 : vector<16x128xf32>
      %cst_243 = arith.constant 1.000000e-16 : f32
      %743 = vector.broadcast %cst_243 : f32 to vector<16x128xf32>
      %744 = arith.addf %742, %743 : vector<16x128xf32>
      %745 = math.rsqrt %744 : vector<16x128xf32>
      %746 = vector.broadcast %671 : f32 to vector<16x128xf32>
      %747 = arith.mulf %746, %734 : vector<16x128xf32>
      %748 = arith.mulf %747, %745 : vector<16x128xf32>
      %749 = arith.subf %664, %748 : vector<16x128xf32>
      scf.yield %709, %729, %749, %694, %714, %734, %700, %720, %740, %665, %666 : vector<16x128xf32>, vector<16x128xf32>, vector<16x128xf32>, vector<16x128xf32>, vector<16x128xf32>, vector<16x128xf32>, vector<16x128xf32>, vector<16x128xf32>, vector<16x128xf32>, f32, f32
    }
    %c0_89 = arith.constant 0 : index
    %c0_90 = arith.constant 0 : index
    %c0_91 = arith.constant 0 : index
    %279 = vector.load %arg4[%c0_89, %c0_90, %c0_91] : memref<9x16x128xf32, #tpu.memory_space<vmem>>, vector<1x16x128xf32>
    %280 = vector.shape_cast %279 : vector<1x16x128xf32> to vector<16x128xf32>
    %281 = vector.shape_cast %278#0 : vector<16x128xf32> to vector<1x16x128xf32>
    tpu.vector_store %arg4[%c0_89, %c0_90, %c0_91], %281 {strides = array<i32>} : memref<9x16x128xf32, #tpu.memory_space<vmem>>, vector<1x16x128xf32>,
    %c9_92 = arith.constant 9 : index
    %282 = memref.load %arg1[%c9_92] : memref<14xf32, #tpu.memory_space<smem>>
    %cst_93 = arith.constant 3.000000e-02 : f32
    %283 = vector.broadcast %cst_93 : f32 to vector<16x128xf32>
    %284 = arith.mulf %283, %278#0 : vector<16x128xf32>
    %cst_94 = arith.constant 5.000000e-02 : f32
    %285 = vector.broadcast %cst_94 : f32 to vector<16x128xf32>
    %286 = arith.addf %285, %284 : vector<16x128xf32>
    %cst_95 = arith.constant 4.000000e-02 : f32
    %287 = vector.broadcast %cst_95 : f32 to vector<16x128xf32>
    %288 = arith.mulf %287, %278#1 : vector<16x128xf32>
    %289 = arith.addf %286, %288 : vector<16x128xf32>
    %cst_96 = arith.constant 5.000000e-02 : f32
    %290 = vector.broadcast %cst_96 : f32 to vector<16x128xf32>
    %291 = arith.mulf %290, %278#2 : vector<16x128xf32>
    %292 = arith.addf %289, %291 : vector<16x128xf32>
    %293 = vector.broadcast %282 : f32 to vector<16x128xf32>
    %294 = arith.mulf %293, %292 : vector<16x128xf32>
    %c1_97 = arith.constant 1 : index
    %c0_98 = arith.constant 0 : index
    %c0_99 = arith.constant 0 : index
    %295 = vector.load %arg4[%c1_97, %c0_98, %c0_99] : memref<9x16x128xf32, #tpu.memory_space<vmem>>, vector<1x16x128xf32>
    %296 = vector.shape_cast %295 : vector<1x16x128xf32> to vector<16x128xf32>
    %297 = vector.shape_cast %294 : vector<16x128xf32> to vector<1x16x128xf32>
    tpu.vector_store %arg4[%c1_97, %c0_98, %c0_99], %297 {strides = array<i32>} : memref<9x16x128xf32, #tpu.memory_space<vmem>>, vector<1x16x128xf32>,
    %c9_100 = arith.constant 9 : index
    %298 = memref.load %arg1[%c9_100] : memref<14xf32, #tpu.memory_space<smem>>
    %cst_101 = arith.constant 5.000000e-02 : f32
    %299 = vector.broadcast %cst_101 : f32 to vector<16x128xf32>
    %300 = arith.mulf %299, %278#0 : vector<16x128xf32>
    %cst_102 = arith.constant 4.500000e-02 : f32
    %301 = vector.broadcast %cst_102 : f32 to vector<16x128xf32>
    %302 = arith.addf %301, %300 : vector<16x128xf32>
    %cst_103 = arith.constant 6.000000e-02 : f32
    %303 = vector.broadcast %cst_103 : f32 to vector<16x128xf32>
    %304 = arith.mulf %303, %278#1 : vector<16x128xf32>
    %305 = arith.addf %302, %304 : vector<16x128xf32>
    %cst_104 = arith.constant 7.000000e-02 : f32
    %306 = vector.broadcast %cst_104 : f32 to vector<16x128xf32>
    %307 = arith.mulf %306, %278#2 : vector<16x128xf32>
    %308 = arith.addf %305, %307 : vector<16x128xf32>
    %309 = vector.broadcast %298 : f32 to vector<16x128xf32>
    %310 = arith.mulf %309, %308 : vector<16x128xf32>
    %c2_105 = arith.constant 2 : index
    %c0_106 = arith.constant 0 : index
    %c0_107 = arith.constant 0 : index
    %311 = vector.load %arg4[%c2_105, %c0_106, %c0_107] : memref<9x16x128xf32, #tpu.memory_space<vmem>>, vector<1x16x128xf32>
    %312 = vector.shape_cast %311 : vector<1x16x128xf32> to vector<16x128xf32>
    %313 = vector.shape_cast %310 : vector<16x128xf32> to vector<1x16x128xf32>
    tpu.vector_store %arg4[%c2_105, %c0_106, %c0_107], %313 {strides = array<i32>} : memref<9x16x128xf32, #tpu.memory_space<vmem>>, vector<1x16x128xf32>,
    %c9_108 = arith.constant 9 : index
    %314 = memref.load %arg1[%c9_108] : memref<14xf32, #tpu.memory_space<smem>>
    %cst_109 = arith.constant 7.000000e-02 : f32
    %315 = vector.broadcast %cst_109 : f32 to vector<16x128xf32>
    %316 = arith.mulf %315, %278#0 : vector<16x128xf32>
    %cst_110 = arith.constant 4.000000e-02 : f32
    %317 = vector.broadcast %cst_110 : f32 to vector<16x128xf32>
    %318 = arith.addf %317, %316 : vector<16x128xf32>
    %cst_111 = arith.constant 8.000000e-02 : f32
    %319 = vector.broadcast %cst_111 : f32 to vector<16x128xf32>
    %320 = arith.mulf %319, %278#1 : vector<16x128xf32>
    %321 = arith.addf %318, %320 : vector<16x128xf32>
    %cst_112 = arith.constant 9.000000e-02 : f32
    %322 = vector.broadcast %cst_112 : f32 to vector<16x128xf32>
    %323 = arith.mulf %322, %278#2 : vector<16x128xf32>
    %324 = arith.addf %321, %323 : vector<16x128xf32>
    %325 = vector.broadcast %314 : f32 to vector<16x128xf32>
    %326 = arith.mulf %325, %324 : vector<16x128xf32>
    %c3_113 = arith.constant 3 : index
    %c0_114 = arith.constant 0 : index
    %c0_115 = arith.constant 0 : index
    %327 = vector.load %arg4[%c3_113, %c0_114, %c0_115] : memref<9x16x128xf32, #tpu.memory_space<vmem>>, vector<1x16x128xf32>
    %328 = vector.shape_cast %327 : vector<1x16x128xf32> to vector<16x128xf32>
    %329 = vector.shape_cast %326 : vector<16x128xf32> to vector<1x16x128xf32>
    tpu.vector_store %arg4[%c3_113, %c0_114, %c0_115], %329 {strides = array<i32>} : memref<9x16x128xf32, #tpu.memory_space<vmem>>, vector<1x16x128xf32>,
    %c9_116 = arith.constant 9 : index
    %330 = memref.load %arg1[%c9_116] : memref<14xf32, #tpu.memory_space<smem>>
    %cst_117 = arith.constant 9.000000e-02 : f32
    %331 = vector.broadcast %cst_117 : f32 to vector<16x128xf32>
    %332 = arith.mulf %331, %278#0 : vector<16x128xf32>
    %cst_118 = arith.constant 4.200000e-02 : f32
    %333 = vector.broadcast %cst_118 : f32 to vector<16x128xf32>
    %334 = arith.addf %333, %332 : vector<16x128xf32>
    %cst_119 = arith.constant 1.000000e-01 : f32
    %335 = vector.broadcast %cst_119 : f32 to vector<16x128xf32>
    %336 = arith.mulf %335, %278#1 : vector<16x128xf32>
    %337 = arith.addf %334, %336 : vector<16x128xf32>
    %cst_120 = arith.constant 1.100000e-01 : f32
    %338 = vector.broadcast %cst_120 : f32 to vector<16x128xf32>
    %339 = arith.mulf %338, %278#2 : vector<16x128xf32>
    %340 = arith.addf %337, %339 : vector<16x128xf32>
    %341 = vector.broadcast %330 : f32 to vector<16x128xf32>
    %342 = arith.mulf %341, %340 : vector<16x128xf32>
    %c4_121 = arith.constant 4 : index
    %c0_122 = arith.constant 0 : index
    %c0_123 = arith.constant 0 : index
    %343 = vector.load %arg4[%c4_121, %c0_122, %c0_123] : memref<9x16x128xf32, #tpu.memory_space<vmem>>, vector<1x16x128xf32>
    %344 = vector.shape_cast %343 : vector<1x16x128xf32> to vector<16x128xf32>
    %345 = vector.shape_cast %342 : vector<16x128xf32> to vector<1x16x128xf32>
    tpu.vector_store %arg4[%c4_121, %c0_122, %c0_123], %345 {strides = array<i32>} : memref<9x16x128xf32, #tpu.memory_space<vmem>>, vector<1x16x128xf32>,
    %c9_124 = arith.constant 9 : index
    %346 = memref.load %arg1[%c9_124] : memref<14xf32, #tpu.memory_space<smem>>
    %cst_125 = arith.constant 1.100000e-01 : f32
    %347 = vector.broadcast %cst_125 : f32 to vector<16x128xf32>
    %348 = arith.mulf %347, %278#0 : vector<16x128xf32>
    %cst_126 = arith.constant 6.000000e-02 : f32
    %349 = vector.broadcast %cst_126 : f32 to vector<16x128xf32>
    %350 = arith.addf %349, %348 : vector<16x128xf32>
    %cst_127 = arith.constant 1.200000e-01 : f32
    %351 = vector.broadcast %cst_127 : f32 to vector<16x128xf32>
    %352 = arith.mulf %351, %278#1 : vector<16x128xf32>
    %353 = arith.addf %350, %352 : vector<16x128xf32>
    %cst_128 = arith.constant 1.300000e-01 : f32
    %354 = vector.broadcast %cst_128 : f32 to vector<16x128xf32>
    %355 = arith.mulf %354, %278#2 : vector<16x128xf32>
    %356 = arith.addf %353, %355 : vector<16x128xf32>
    %357 = vector.broadcast %346 : f32 to vector<16x128xf32>
    %358 = arith.mulf %357, %356 : vector<16x128xf32>
    %c5_129 = arith.constant 5 : index
    %c0_130 = arith.constant 0 : index
    %c0_131 = arith.constant 0 : index
    %359 = vector.load %arg4[%c5_129, %c0_130, %c0_131] : memref<9x16x128xf32, #tpu.memory_space<vmem>>, vector<1x16x128xf32>
    %360 = vector.shape_cast %359 : vector<1x16x128xf32> to vector<16x128xf32>
    %361 = vector.shape_cast %358 : vector<16x128xf32> to vector<1x16x128xf32>
    tpu.vector_store %arg4[%c5_129, %c0_130, %c0_131], %361 {strides = array<i32>} : memref<9x16x128xf32, #tpu.memory_space<vmem>>, vector<1x16x128xf32>,
    %c3_132 = arith.constant 3 : index
    %362 = memref.load %arg1[%c3_132] : memref<14xf32, #tpu.memory_space<smem>>
    %cst_133 = arith.constant 7.000000e-03 : f32
    %363 = vector.broadcast %cst_133 : f32 to vector<16x128xf32>
    %364 = arith.mulf %363, %278#0 : vector<16x128xf32>
    %cst_134 = arith.constant 0.00899999961 : f32
    %365 = vector.broadcast %cst_134 : f32 to vector<16x128xf32>
    %366 = arith.mulf %365, %278#1 : vector<16x128xf32>
    %367 = arith.addf %364, %366 : vector<16x128xf32>
    %cst_135 = arith.constant 1.100000e-02 : f32
    %368 = vector.broadcast %cst_135 : f32 to vector<16x128xf32>
    %369 = arith.mulf %368, %278#2 : vector<16x128xf32>
    %370 = arith.addf %367, %369 : vector<16x128xf32>
    %371 = vector.broadcast %362 : f32 to vector<16x128xf32>
    %372 = arith.mulf %371, %370 : vector<16x128xf32>
    %cst_136 = arith.constant 1.000000e-03 : f32
    %373 = vector.broadcast %cst_136 : f32 to vector<16x128xf32>
    %374 = arith.addf %373, %372 : vector<16x128xf32>
    %c6_137 = arith.constant 6 : index
    %c0_138 = arith.constant 0 : index
    %c0_139 = arith.constant 0 : index
    %375 = vector.load %arg4[%c6_137, %c0_138, %c0_139] : memref<9x16x128xf32, #tpu.memory_space<vmem>>, vector<1x16x128xf32>
    %376 = vector.shape_cast %375 : vector<1x16x128xf32> to vector<16x128xf32>
    %377 = vector.shape_cast %374 : vector<16x128xf32> to vector<1x16x128xf32>
    tpu.vector_store %arg4[%c6_137, %c0_138, %c0_139], %377 {strides = array<i32>} : memref<9x16x128xf32, #tpu.memory_space<vmem>>, vector<1x16x128xf32>,
    %c3_140 = arith.constant 3 : index
    %378 = memref.load %arg1[%c3_140] : memref<14xf32, #tpu.memory_space<smem>>
    %cst_141 = arith.constant 1.200000e-02 : f32
    %379 = vector.broadcast %cst_141 : f32 to vector<16x128xf32>
    %380 = arith.mulf %379, %278#0 : vector<16x128xf32>
    %cst_142 = arith.constant 1.400000e-02 : f32
    %381 = vector.broadcast %cst_142 : f32 to vector<16x128xf32>
    %382 = arith.mulf %381, %278#1 : vector<16x128xf32>
    %383 = arith.addf %380, %382 : vector<16x128xf32>
    %cst_143 = arith.constant 1.600000e-02 : f32
    %384 = vector.broadcast %cst_143 : f32 to vector<16x128xf32>
    %385 = arith.mulf %384, %278#2 : vector<16x128xf32>
    %386 = arith.addf %383, %385 : vector<16x128xf32>
    %387 = vector.broadcast %378 : f32 to vector<16x128xf32>
    %388 = arith.mulf %387, %386 : vector<16x128xf32>
    %cst_144 = arith.constant 1.200000e-03 : f32
    %389 = vector.broadcast %cst_144 : f32 to vector<16x128xf32>
    %390 = arith.addf %389, %388 : vector<16x128xf32>
    %c7_145 = arith.constant 7 : index
    %c0_146 = arith.constant 0 : index
    %c0_147 = arith.constant 0 : index
    %391 = vector.load %arg4[%c7_145, %c0_146, %c0_147] : memref<9x16x128xf32, #tpu.memory_space<vmem>>, vector<1x16x128xf32>
    %392 = vector.shape_cast %391 : vector<1x16x128xf32> to vector<16x128xf32>
    %393 = vector.shape_cast %390 : vector<16x128xf32> to vector<1x16x128xf32>
    tpu.vector_store %arg4[%c7_145, %c0_146, %c0_147], %393 {strides = array<i32>} : memref<9x16x128xf32, #tpu.memory_space<vmem>>, vector<1x16x128xf32>,
    %c3_148 = arith.constant 3 : index
    %394 = memref.load %arg1[%c3_148] : memref<14xf32, #tpu.memory_space<smem>>
    %cst_149 = arith.constant 1.700000e-02 : f32
    %395 = vector.broadcast %cst_149 : f32 to vector<16x128xf32>
    %396 = arith.mulf %395, %278#0 : vector<16x128xf32>
    %cst_150 = arith.constant 1.900000e-02 : f32
    %397 = vector.broadcast %cst_150 : f32 to vector<16x128xf32>
    %398 = arith.mulf %397, %278#1 : vector<16x128xf32>
    %399 = arith.addf %396, %398 : vector<16x128xf32>
    %cst_151 = arith.constant 2.100000e-02 : f32
    %400 = vector.broadcast %cst_151 : f32 to vector<16x128xf32>
    %401 = arith.mulf %400, %278#2 : vector<16x128xf32>
    %402 = arith.addf %399, %401 : vector<16x128xf32>
    %403 = vector.broadcast %394 : f32 to vector<16x128xf32>
    %404 = arith.mulf %403, %402 : vector<16x128xf32>
    %cst_152 = arith.constant 1.500000e-03 : f32
    %405 = vector.broadcast %cst_152 : f32 to vector<16x128xf32>
    %406 = arith.addf %405, %404 : vector<16x128xf32>
    %c8_153 = arith.constant 8 : index
    %c0_154 = arith.constant 0 : index
    %c0_155 = arith.constant 0 : index
    %407 = vector.load %arg4[%c8_153, %c0_154, %c0_155] : memref<9x16x128xf32, #tpu.memory_space<vmem>>, vector<1x16x128xf32>
    %408 = vector.shape_cast %407 : vector<1x16x128xf32> to vector<16x128xf32>
    %409 = vector.shape_cast %406 : vector<16x128xf32> to vector<1x16x128xf32>
    tpu.vector_store %arg4[%c8_153, %c0_154, %c0_155], %409 {strides = array<i32>} : memref<9x16x128xf32, #tpu.memory_space<vmem>>, vector<1x16x128xf32>,
    return
  }
  func.func @transform_0(%arg0: i32) -> i32 {
    %c0_i32 = arith.constant 0 : i32
    %c0_i32_0 = arith.constant 0 : i32
    return %c0_i32 : i32
  }
  func.func @transform_1(%arg0: i32) -> (i32, i32, i32) {
    %c0_i32 = arith.constant 0 : i32
    %c0_i32_0 = arith.constant 0 : i32
    %c0_i32_1 = arith.constant 0 : i32
    return %c0_i32, %arg0, %c0_i32_0 : i32, i32, i32
  }
  func.func @transform_2(%arg0: i32) -> (i32, i32, i32) {
    %c0_i32 = arith.constant 0 : i32
    %c0_i32_0 = arith.constant 0 : i32
    %c0_i32_1 = arith.constant 0 : i32
    return %c0_i32, %arg0, %c0_i32_0 : i32, i32, i32
  }
  func.func @transform_3(%arg0: i32) -> (i32, i32, i32) {
    %c0_i32 = arith.constant 0 : i32
    %c0_i32_0 = arith.constant 0 : i32
    %c0_i32_1 = arith.constant 0 : i32
    return %c0_i32, %arg0, %c0_i32_0 : i32, i32, i32
  }
}

</mosaic_0001>

<bundles_post_ra>
// kernel: tpu_custom_call.1
= control target key start
LH: loop header
LB: loop body
LE: loop exit
PB: predicated region body
PF: predicated region fallthrough
CT: control target
= control target key end

     0   :  { %8 = vsyncpa [#allocation5], 0  ;;  %s3409_s0 = inlined_call_operand.hbm [shape: f32[14], index: 0, kind: input, shape index: {}]   ;;  %s3410_s1 = inlined_call_operand.hbm [shape: f32[15,16,128], index: 1, kind: input, shape index: {}]   ;;  %s3411_s2 = inlined_call_operand.hbm [shape: f32[5,16,128], index: 2, kind: input, shape index: {}]   ;;  %s3412_s3 = inlined_call_operand.hbm [shape: f32[9,16,128], index: 3, kind: output, shape index: {}]  }
   0x1   :  { %9 = vsyncpa [#allocation3], 0 }
   0x2   :  { %10 = vsyncpa [#allocation8], 0 }
   0x3   :  { %11 = vsyncpa [#allocation4], 0  ;;  %s17_s14 = sshll.u32 %s3409_s0, 4  ;;  %s25_s17 = sshll.u32 %s3410_s1, 4  ;;  %s18_s14 = int_to_ptr.hbm [resolvable:$true] %s17_s14  ;;  %s26_s17 = int_to_ptr.hbm [resolvable:$true] %s25_s17 }
   0x4   :  { %s2100_s18 = smov [#allocation2]   ;;  %s2101_s19 = smov [#allocation6]  }
   0x5   :  { %20 = dma.hbm_to_smem %s18_s14, 16, %s2100_s18, [#allocation5]  }
   0x6   :  { %s27_s20 = sshll.u32 %s2101_s19, 4  ;;  %s2102_s21 = smov 128   ;;  %s28_s20 = int_to_ptr.vmem [resolvable:$true] %s27_s20 }
   0x7   :  { %s2103_s22 = smov 8   ;;  %s38_s0 = sshll.u32 %s3411_s2, 4  ;;  %s39_s0 = int_to_ptr.hbm [resolvable:$true] %s38_s0 }
   0x8   :  { %33 = dma.hbm_to_vmem [thread:$0]  %s26_s17, 3840, %s28_s20, [#allocation3], %s2102_s21, %s2102_s21, %s2103_s22  }
   0x9   :  { %s2104_s25 = smov [#allocation7]  }
   0xa   :  { %s40_s26 = sshll.u32 %s2104_s25, 4  ;;  %s41_s26 = int_to_ptr.vmem [resolvable:$true] %s40_s26 }
   0xb   :  { %46 = dma.hbm_to_vmem [thread:$0]  %s39_s0, 1280, %s41_s26, [#allocation8], %s2102_s21, %s2102_s21, %s2103_s22  }
   0xc   :  { %2008 = dma.done.wait [#allocation5], 16  }
   0xd   :  { %2009 = vsyncadd [#allocation5], 4294967280 }
   0xe   :  { %2010 = dma.done.wait [#allocation3], 3840  }
   0xf   :  { %2011 = vsyncadd [#allocation3], 4294963456 }
  0x10   :  { %2012 = dma.done.wait [#allocation8], 1280  }
  0x11   :  { %2013 = vsyncadd [#allocation8], 4294966016 }
  0x12   :  { %59 = sfence }
  0x13   :  { %s60_s1 = sld [smem:[#allocation2]]  ;;  %v63_v0 = vld [vmem:[#allocation6] sm:$0xff]  ;;  %v64_v1 = vld [vmem:[#allocation6 + $0x8] sm:$0xff]  ;;  %v80_v2 = vld [vmem:[#allocation7] sm:$0xff]  ;;  %s2301_s2 = smov 1.0  }
  0x14   :  { %s1576_s27 = sld [smem:[#allocation2 + $0xd]]  ;;  %v81_v3 = vld [vmem:[#allocation7 + $0x8] sm:$0xff]  ;;  %v69_v4 = vld [vmem:[#allocation6 + $0x10] sm:$0xff]  ;;  %v2141_v6 = vld [vmem:[#allocation7 + $0x10] sm:$0xff]  ;;  %s2303_s29 = smov 1.0  }
  0x15   :  { %s1577_s28 = sld [smem:[#allocation2 + $0x5]]  ;;  %v127_v5 = vld [vmem:[#allocation6 + $0x30] sm:$0xff]  ;;  %v70_v7 = vld [vmem:[#allocation6 + $0x18] sm:$0xff]  ;;  %v2143_v9 = vld [vmem:[#allocation7 + $0x18] sm:$0xff]  ;;  %v2148_v13 = vadd.f32 %v2141_v6, %v80_v2  ;;  %s2341_s30 = smov 0  }
  0x16   :  { %v128_v8 = vld [vmem:[#allocation6 + $0x38] sm:$0xff]  ;;  %v75_v11 = vld [vmem:[#allocation6 + $0x20] sm:$0xff]  ;;  %v76_v12 = vld [vmem:[#allocation6 + $0x28] sm:$0xff]  ;;  %v2151_v14 = vadd.f32 %v2143_v9, %v81_v3 }
  0x17   :  { %v132_v31 = vld [vmem:[#allocation6 + $0x40] sm:$0xff]  ;;  %v133_v36 = vld [vmem:[#allocation6 + $0x48] sm:$0xff]  ;;  %v137_v37 = vld [vmem:[#allocation6 + $0x50] sm:$0xff] }
  0x18   :  { %v138_v38 = vld [vmem:[#allocation6 + $0x58] sm:$0xff] }
  0x19   :  { %v2145_v10 = vstv %s60_s1 }
  0x1a   :  { %v66_v15 = vmul.f32 %v2145_v10, %v63_v0  ;;  %v67_v16 = vmul.f32 %v2145_v10, %v64_v1  ;;  %v2155_v17 = vstv %s1576_s27  ;;  %v129_v18 = vmul.f32 %v127_v5, %v2145_v10 }
  0x1b   :  { %v72_v19 = vmul.f32 %v2155_v17, %v69_v4  ;;  %v73_v20 = vmul.f32 %v2155_v17, %v70_v7  ;;  %v2160_v21 = vstv %s1577_s28  ;;  %v130_v22 = vmul.f32 %v128_v8, %v2145_v10 }
  0x1c   :  { %v78_v23 = vmul.f32 %v2160_v21, %v75_v11  ;;  %v79_v24 = vmul.f32 %v2160_v21, %v76_v12  ;;  %v86_v25 = vmul.f32 %v80_v2, %v66_v15  ;;  %v87_v26 = vmul.f32 %v81_v3, %v67_v16 }
  0x1d   :  { %v90_v27 = vmul.f32 %v66_v15, %v66_v15  ;;  %v91_v28 = vmul.f32 %v67_v16, %v67_v16  ;;  %v94_v29 = vmul.f32 %v72_v19, %v66_v15  ;;  %v95_v30 = vmul.f32 %v73_v20, %v67_v16 }
  0x1e   :  { %v98_v32 = vmul.f32 %v78_v23, %v66_v15  ;;  %v99_v33 = vmul.f32 %v79_v24, %v67_v16  ;;  %v104_v34 = vmul.f32 %v80_v2, %v72_v19  ;;  %v105_v35 = vmul.f32 %v81_v3, %v73_v20 }
  0x1f   :  { %v108_v39 = vmul.f32 %v72_v19, %v72_v19  ;;  %v109_v40 = vmul.f32 %v73_v20, %v73_v20  ;;  %v112_v41 = vmul.f32 %v78_v23, %v72_v19  ;;  %v113_v42 = vmul.f32 %v79_v24, %v73_v20 }
  0x20   :  { %v118_v43 = vmul.f32 %v80_v2, %v78_v23  ;;  %v119_v44 = vmul.f32 %v81_v3, %v79_v24  ;;  %v122_v45 = vmul.f32 %v78_v23, %v78_v23  ;;  %v123_v46 = vmul.f32 %v79_v24, %v79_v24 }
  0x21   :  { %v134_v47 = vmul.f32 %v132_v31, %v2155_v17  ;;  %v135_v48 = vmul.f32 %v133_v36, %v2155_v17  ;;  %v139_v49 = vmul.f32 %v137_v37, %v2160_v21  ;;  %v140_v50 = vmul.f32 %v138_v38, %v2160_v21  ;;  %v199_v38 = vld [vmem:[#allocation6 + $0x80] sm:$0xff] }
  0x22   :  { %v146_v51 = vadd.f32 %v129_v18, %v66_v15  ;;  %v147_v52 = vadd.f32 %v130_v22, %v67_v16  ;;  %v148_v53 = vmul.f32 %v2141_v6, %v129_v18  ;;  %v149_v54 = vmul.f32 %v2143_v9, %v130_v22 }
  0x23   :  { %v152_v55 = vmul.f32 %v129_v18, %v129_v18  ;;  %v153_v56 = vmul.f32 %v130_v22, %v130_v22  ;;  %v156_v57 = vmul.f32 %v134_v47, %v129_v18  ;;  %v157_v58 = vmul.f32 %v135_v48, %v130_v22 }
  0x24   :  { %v150_v59 = vadd.f32 %v148_v53, %v86_v25  ;;  %v151_v60 = vadd.f32 %v149_v54, %v87_v26  ;;  %v160_v61 = vmul.f32 %v139_v49, %v129_v18  ;;  %v161_v62 = vmul.f32 %v140_v50, %v130_v22  ;;  %v189_v18 = vld [vmem:[#allocation6 + $0x60] sm:$0xff]  ;;  %v190_v22 = vld [vmem:[#allocation6 + $0x68] sm:$0xff] }
  0x25   :  { %v154_v63 = vadd.f32 %v152_v55, %v90_v27  ;;  %v155_v0 = vadd.f32 %v153_v56, %v91_v28  ;;  %v158_v1 = vadd.f32 %v156_v57, %v94_v29  ;;  %v159_v2 = vadd.f32 %v157_v58, %v95_v30  ;;  %v200_v53 = vld [vmem:[#allocation6 + $0x88] sm:$0xff] }
  0x26   :  { %v162_v3 = vadd.f32 %v160_v61, %v98_v32  ;;  %v163_v4 = vadd.f32 %v161_v62, %v99_v33  ;;  %v164_v5 = vadd.f32 %v134_v47, %v72_v19  ;;  %v165_v7 = vadd.f32 %v135_v48, %v73_v20  ;;  %v194_v32 = vld [vmem:[#allocation6 + $0x70] sm:$0xff]  ;;  %v195_v33 = vld [vmem:[#allocation6 + $0x78] sm:$0xff] }
  0x27   :  { %v166_v8 = vmul.f32 %v2141_v6, %v134_v47  ;;  %v167_v11 = vmul.f32 %v2143_v9, %v135_v48  ;;  %v170_v12 = vmul.f32 %v134_v47, %v134_v47  ;;  %v171_v15 = vmul.f32 %v135_v48, %v135_v48 }
  0x28   :  { %v174_v16 = vmul.f32 %v139_v49, %v134_v47  ;;  %v175_v31 = vmul.f32 %v140_v50, %v135_v48  ;;  %v178_v25 = vadd.f32 %v139_v49, %v78_v23  ;;  %v179_v26 = vadd.f32 %v140_v50, %v79_v24 }
  0x29   :  { %v168_v27 = vadd.f32 %v166_v8, %v104_v34  ;;  %v169_v28 = vadd.f32 %v167_v11, %v105_v35  ;;  %v172_v29 = vadd.f32 %v170_v12, %v108_v39  ;;  %v173_v30 = vadd.f32 %v171_v15, %v109_v40  ;;  %v204_v34 = vld [vmem:[#allocation7 + $0x20] sm:$0xff]  ;;  %v205_v35 = vld [vmem:[#allocation7 + $0x28] sm:$0xff] }
  0x2a   :  { %v176_v19 = vadd.f32 %v174_v16, %v112_v41  ;;  %v177_v20 = vadd.f32 %v175_v31, %v113_v42  ;;  %v180_v36 = vmul.f32 %v2141_v6, %v139_v49  ;;  %v181_v37 = vmul.f32 %v2143_v9, %v140_v50 }
  0x2b   :  { %v184_v47 = vmul.f32 %v139_v49, %v139_v49  ;;  %v185_v48 = vmul.f32 %v140_v50, %v140_v50  ;;  %v191_v23 = vmul.f32 %v189_v18, %v2145_v10  ;;  %v192_v24 = vmul.f32 %v190_v22, %v2145_v10 }
  0x2c   :  { %v182_v39 = vadd.f32 %v180_v36, %v118_v43  ;;  %v183_v40 = vadd.f32 %v181_v37, %v119_v44  ;;  %v196_v54 = vmul.f32 %v194_v32, %v2155_v17  ;;  %v197_v41 = vmul.f32 %v195_v33, %v2155_v17 }
  0x2d   :  { %v186_v42 = vadd.f32 %v184_v47, %v122_v45  ;;  %v187_v6 = vadd.f32 %v185_v48, %v123_v46  ;;  %v201_v9 = vmul.f32 %v199_v38, %v2160_v21  ;;  %v202_v55 = vmul.f32 %v200_v53, %v2160_v21  ;;  %v251_v53 = vld [vmem:[#allocation6 + $0x90] sm:$0xff] }
  0x2e   :  { %v206_v49 = vadd.f32 %v204_v34, %v2148_v13  ;;  %v207_v50 = vadd.f32 %v205_v35, %v2151_v14  ;;  %v208_v56 = vadd.f32 %v191_v23, %v146_v51  ;;  %v209_v57 = vadd.f32 %v192_v24, %v147_v52 }
  0x2f   :  { %v210_v58 = vmul.f32 %v204_v34, %v191_v23  ;;  %v211_v61 = vmul.f32 %v205_v35, %v192_v24  ;;  %v214_v43 = vmul.f32 %v191_v23, %v191_v23  ;;  %v215_v44 = vmul.f32 %v192_v24, %v192_v24 }
  0x30   :  { %v218_v62 = vmul.f32 %v196_v54, %v191_v23  ;;  %v219_v8 = vmul.f32 %v197_v41, %v192_v24  ;;  %v222_v11 = vmul.f32 %v201_v9, %v191_v23  ;;  %v223_v12 = vmul.f32 %v202_v55, %v192_v24 }
  0x31   :  { %v212_v45 = vadd.f32 %v210_v58, %v150_v59  ;;  %v213_v46 = vadd.f32 %v211_v61, %v151_v60  ;;  %v216_v15 = vadd.f32 %v214_v43, %v154_v63  ;;  %v217_v16 = vadd.f32 %v215_v44, %v155_v0  ;;  %v252_v60 = vld [vmem:[#allocation6 + $0x98] sm:$0xff]  ;;  %v256_v63 = vld [vmem:[#allocation6 + $0xa0] sm:$0xff]  ;;  %v257_v0 = vld [vmem:[#allocation6 + $0xa8] sm:$0xff] }
  0x32   :  { %v220_v31 = vadd.f32 %v218_v62, %v158_v1  ;;  %v221_v18 = vadd.f32 %v219_v8, %v159_v2  ;;  %v224_v22 = vadd.f32 %v222_v11, %v162_v3  ;;  %v225_v13 = vadd.f32 %v223_v12, %v163_v4  ;;  %v262_v43 = vld [vmem:[#allocation6 + $0xb8] sm:$0xff] }
  0x33   :  { %v226_v32 = vadd.f32 %v196_v54, %v164_v5  ;;  %v227_v14 = vadd.f32 %v197_v41, %v165_v7  ;;  %v228_v51 = vmul.f32 %v204_v34, %v196_v54  ;;  %v229_v52 = vmul.f32 %v205_v35, %v197_v41  ;;  %v261_v5 = vld [vmem:[#allocation6 + $0xb0] sm:$0xff] }
  0x34   :  { %v232_v33 = vmul.f32 %v196_v54, %v196_v54  ;;  %v233_v36 = vmul.f32 %v197_v41, %v197_v41  ;;  %v236_v37 = vmul.f32 %v201_v9, %v196_v54  ;;  %v237_v38 = vmul.f32 %v202_v55, %v197_v41  ;;  %v266_v54 = vld [vmem:[#allocation7 + $0x30] sm:$0xff]  ;;  %v267_v41 = vld [vmem:[#allocation7 + $0x38] sm:$0xff] }
  0x35   :  { %v230_v47 = vadd.f32 %v228_v51, %v168_v27  ;;  %v231_v48 = vadd.f32 %v229_v52, %v169_v28  ;;  %v240_v23 = vadd.f32 %v201_v9, %v178_v25  ;;  %v241_v59 = vadd.f32 %v202_v55, %v179_v26 }
  0x36   :  { %v234_v1 = vadd.f32 %v232_v33, %v172_v29  ;;  %v235_v2 = vadd.f32 %v233_v36, %v173_v30  ;;  %v238_v3 = vadd.f32 %v236_v37, %v176_v19  ;;  %v239_v4 = vadd.f32 %v237_v38, %v177_v20 }
  0x37   :  { %v242_v7 = vmul.f32 %v204_v34, %v201_v9  ;;  %v243_v24 = vmul.f32 %v205_v35, %v202_v55  ;;  %v246_v58 = vmul.f32 %v201_v9, %v201_v9  ;;  %v247_v61 = vmul.f32 %v202_v55, %v202_v55 }
  0x38   :  { %v253_v27 = vmul.f32 %v251_v53, %v2145_v10  ;;  %v254_v25 = vmul.f32 %v252_v60, %v2145_v10  ;;  %v258_v26 = vmul.f32 %v256_v63, %v2155_v17  ;;  %v259_v28 = vmul.f32 %v257_v0, %v2155_v17 }
  0x39   :  { %v244_v29 = vadd.f32 %v242_v7, %v182_v39  ;;  %v245_v30 = vadd.f32 %v243_v24, %v183_v40  ;;  %v248_v19 = vadd.f32 %v246_v58, %v186_v42  ;;  %v249_v20 = vadd.f32 %v247_v61, %v187_v6 }
  0x3a   :  { %v263_v34 = vmul.f32 %v261_v5, %v2160_v21  ;;  %v264_v35 = vmul.f32 %v262_v43, %v2160_v21  ;;  %v268_v9 = vadd.f32 %v266_v54, %v206_v49  ;;  %v269_v55 = vadd.f32 %v267_v41, %v207_v50 }
  0x3b   :  { %v270_v44 = vadd.f32 %v253_v27, %v208_v56  ;;  %v271_v62 = vadd.f32 %v254_v25, %v209_v57  ;;  %v272_v8 = vmul.f32 %v266_v54, %v253_v27  ;;  %v273_v11 = vmul.f32 %v267_v41, %v254_v25 }
  0x3c   :  { %v276_v12 = vmul.f32 %v253_v27, %v253_v27  ;;  %v277_v51 = vmul.f32 %v254_v25, %v254_v25  ;;  %v280_v52 = vmul.f32 %v258_v26, %v253_v27  ;;  %v281_v33 = vmul.f32 %v259_v28, %v254_v25 }
  0x3d   :  { %v274_v36 = vadd.f32 %v272_v8, %v212_v45  ;;  %v275_v37 = vadd.f32 %v273_v11, %v213_v46  ;;  %v284_v39 = vmul.f32 %v263_v34, %v253_v27  ;;  %v285_v40 = vmul.f32 %v264_v35, %v254_v25  ;;  %v313_v45 = vld [vmem:[#allocation6 + $0xc0] sm:$0xff]  ;;  %v314_v46 = vld [vmem:[#allocation6 + $0xc8] sm:$0xff] }
  0x3e   :  { %v278_v42 = vadd.f32 %v276_v12, %v216_v15  ;;  %v279_v6 = vadd.f32 %v277_v51, %v217_v16  ;;  %v282_v38 = vadd.f32 %v280_v52, %v220_v31  ;;  %v283_v53 = vadd.f32 %v281_v33, %v221_v18  ;;  %v318_v31 = vld [vmem:[#allocation6 + $0xd0] sm:$0xff]  ;;  %v319_v18 = vld [vmem:[#allocation6 + $0xd8] sm:$0xff]  ;;  %v323_v25 = vld [vmem:[#allocation6 + $0xe0] sm:$0xff] }
  0x3f   :  { %v286_v60 = vadd.f32 %v284_v39, %v224_v22  ;;  %v287_v63 = vadd.f32 %v285_v40, %v225_v13  ;;  %v288_v49 = vadd.f32 %v258_v26, %v226_v32  ;;  %v289_v50 = vadd.f32 %v259_v28, %v227_v14  ;;  %v324_v8 = vld [vmem:[#allocation6 + $0xe8] sm:$0xff] }
  0x40   :  { %v290_v56 = vmul.f32 %v266_v54, %v258_v26  ;;  %v291_v57 = vmul.f32 %v267_v41, %v259_v28  ;;  %v294_v0 = vmul.f32 %v258_v26, %v258_v26  ;;  %v295_v5 = vmul.f32 %v259_v28, %v259_v28 }
  0x41   :  { %v298_v7 = vmul.f32 %v263_v34, %v258_v26  ;;  %v299_v24 = vmul.f32 %v264_v35, %v259_v28  ;;  %v302_v58 = vadd.f32 %v263_v34, %v240_v23  ;;  %v303_v61 = vadd.f32 %v264_v35, %v241_v59  ;;  %v328_v59 = vld [vmem:[#allocation7 + $0x40] sm:$0xff]  ;;  %v329_v28 = vld [vmem:[#allocation7 + $0x48] sm:$0xff] }
  0x42   :  { %v292_v43 = vadd.f32 %v290_v56, %v230_v47  ;;  %v293_v27 = vadd.f32 %v291_v57, %v231_v48  ;;  %v296_v15 = vadd.f32 %v294_v0, %v234_v1  ;;  %v297_v16 = vadd.f32 %v295_v5, %v235_v2 }
  0x43   :  { %v300_v22 = vadd.f32 %v298_v7, %v238_v3  ;;  %v301_v13 = vadd.f32 %v299_v24, %v239_v4  ;;  %v304_v32 = vmul.f32 %v266_v54, %v263_v34  ;;  %v305_v14 = vmul.f32 %v267_v41, %v264_v35 }
  0x44   :  { %v308_v11 = vmul.f32 %v263_v34, %v263_v34  ;;  %v309_v12 = vmul.f32 %v264_v35, %v264_v35  ;;  %v315_v26 = vmul.f32 %v313_v45, %v2145_v10  ;;  %v316_v23 = vmul.f32 %v314_v46, %v2145_v10 }
  0x45   :  { %v306_v47 = vadd.f32 %v304_v32, %v244_v29  ;;  %v307_v48 = vadd.f32 %v305_v14, %v245_v30  ;;  %v320_v1 = vmul.f32 %v318_v31, %v2155_v17  ;;  %v321_v2 = vmul.f32 %v319_v18, %v2155_v17 }
  0x46   :  { %v310_v3 = vadd.f32 %v308_v11, %v248_v19  ;;  %v311_v4 = vadd.f32 %v309_v12, %v249_v20  ;;  %v325_v54 = vmul.f32 %v323_v25, %v2160_v21  ;;  %v326_v41 = vmul.f32 %v324_v8, %v2160_v21 }
  0x47   :  { %v2195_v34 = vadd.f32 %v328_v59, %v268_v9  ;;  %v2197_v35 = vadd.f32 %v329_v28, %v269_v55  ;;  %v2199_v51 = vadd.f32 %v315_v26, %v270_v44  ;;  %v2201_v10 = vadd.f32 %v316_v23, %v271_v62 }
  0x48   :  { %v334_v29 = vmul.f32 %v328_v59, %v315_v26  ;;  %v335_v30 = vmul.f32 %v329_v28, %v316_v23  ;;  %v338_v52 = vmul.f32 %v315_v26, %v315_v26  ;;  %v339_v33 = vmul.f32 %v316_v23, %v316_v23 }
  0x49   :  { %v342_v39 = vmul.f32 %v320_v1, %v315_v26  ;;  %v343_v17 = vmul.f32 %v321_v2, %v316_v23  ;;  %v346_v19 = vmul.f32 %v325_v54, %v315_v26  ;;  %v347_v20 = vmul.f32 %v326_v41, %v316_v23 }
  0x4a   :  { %v2203_v40 = vadd.f32 %v334_v29, %v274_v36  ;;  %v2205_v56 = vadd.f32 %v335_v30, %v275_v37  ;;  %v340_v21 = vadd.f32 %v338_v52, %v278_v42  ;;  %v341_v9 = vadd.f32 %v339_v33, %v279_v6 }
  0x4b   :  { %v344_v55 = vadd.f32 %v342_v39, %v282_v38  ;;  %v345_v57 = vadd.f32 %v343_v17, %v283_v53  ;;  %v348_v44 = vadd.f32 %v346_v19, %v286_v60  ;;  %v349_v0 = vadd.f32 %v347_v20, %v287_v63 }
  0x4c   :  { %v2207_v62 = vadd.f32 %v320_v1, %v288_v49  ;;  %v2209_v5 = vadd.f32 %v321_v2, %v289_v50  ;;  %v352_v7 = vmul.f32 %v328_v59, %v320_v1  ;;  %v353_v24 = vmul.f32 %v329_v28, %v321_v2 }
  0x4d   :  { %v356_v45 = vmul.f32 %v320_v1, %v320_v1  ;;  %v357_v46 = vmul.f32 %v321_v2, %v321_v2  ;;  %v360_v31 = vmul.f32 %v325_v54, %v320_v1  ;;  %v361_v18 = vmul.f32 %v326_v41, %v321_v2 }
  0x4e   :  { %v2211_v36 = vadd.f32 %v352_v7, %v292_v43  ;;  %v2213_v37 = vadd.f32 %v353_v24, %v293_v27  ;;  %v2215_v42 = vadd.f32 %v325_v54, %v302_v58  ;;  %v2217_v6 = vadd.f32 %v326_v41, %v303_v61 }
  0x4f   :  { %v358_v38 = vadd.f32 %v356_v45, %v296_v15  ;;  %v359_v53 = vadd.f32 %v357_v46, %v297_v16  ;;  %v362_v60 = vadd.f32 %v360_v31, %v300_v22  ;;  %v363_v63 = vadd.f32 %v361_v18, %v301_v13 }
  0x50   :  { %v366_v49 = vmul.f32 %v328_v59, %v325_v54  ;;  %v367_v50 = vmul.f32 %v329_v28, %v326_v41  ;;  %v370_v32 = vmul.f32 %v325_v54, %v325_v54  ;;  %v371_v14 = vmul.f32 %v326_v41, %v326_v41 }
  0x51   :  { %v374_v25 = vmul.f32 380.0, %v340_v21  ;;  %v375_v8 = vmul.f32 380.0, %v341_v9  ;;  %v376_v43 = vmul.f32 %v2199_v51, %v2199_v51  ;;  %v377_v27 = vmul.f32 %v2201_v10, %v2201_v10 }
  0x52   :  { %v2223_v58 = vadd.f32 %v366_v49, %v306_v47  ;;  %v2225_v61 = vadd.f32 %v367_v50, %v307_v48  ;;  %v372_v15 = vadd.f32 %v370_v32, %v310_v3  ;;  %v373_v16 = vadd.f32 %v371_v14, %v311_v4 }
  0x53   :  { %v378_v22 = vmul.f32 20.0, %v376_v43  ;;  %v379_v13 = vmul.f32 20.0, %v377_v27  ;;  %v386_v11 = vmul.f32 380.0, %v344_v55  ;;  %v387_v12 = vmul.f32 380.0, %v345_v57 }
  0x54   :  { %v388_v26 = vmul.f32 %v2207_v62, %v2199_v51  ;;  %v389_v23 = vmul.f32 %v2209_v5, %v2201_v10  ;;  %v398_v59 = vmul.f32 380.0, %v348_v44  ;;  %v399_v28 = vmul.f32 380.0, %v349_v0 }
  0x55   :  { %v380_v1 = vadd.f32 %v378_v22, %v374_v25  ;;  %v381_v2 = vadd.f32 %v379_v13, %v375_v8  ;;  %v400_v47 = vmul.f32 %v2215_v42, %v2199_v51  ;;  %v401_v48 = vmul.f32 %v2217_v6, %v2201_v10 }
  0x56   :  { %v390_v3 = vmul.f32 20.0, %v388_v26  ;;  %v391_v4 = vmul.f32 20.0, %v389_v23  ;;  %v410_v54 = vmul.f32 380.0, %v358_v38  ;;  %v411_v41 = vmul.f32 380.0, %v359_v53 }
  0x57   :  { %v382_v29 = vadd.f32 4.0, %v380_v1  ;;  %v383_v30 = vadd.f32 4.0, %v381_v2  ;;  %v402_v52 = vmul.f32 20.0, %v400_v47  ;;  %v403_v33 = vmul.f32 20.0, %v401_v48 }
  0x58   :  { %v392_v39 = vadd.f32 %v390_v3, %v386_v11  ;;  %v393_v17 = vadd.f32 %v391_v4, %v387_v12  ;;  %v412_v19 = vmul.f32 %v2207_v62, %v2207_v62  ;;  %v413_v20 = vmul.f32 %v2209_v5, %v2209_v5 }
  0x59   :  { %v2239_v21 = vmul.f32 2.0, %v382_v29  ;;  %v2241_v9 = vmul.f32 2.0, %v383_v30  ;;  %v404_v55 = vadd.f32 %v402_v52, %v398_v59  ;;  %v405_v57 = vadd.f32 %v403_v33, %v399_v28 }
  0x5a   :  { %v394_v44 = vadd.f32 0.5, %v392_v39  ;;  %v395_v0 = vadd.f32 0.5, %v393_v17  ;;  %v414_v7 = vmul.f32 20.0, %v412_v19  ;;  %v415_v24 = vmul.f32 20.0, %v413_v20 }
  0x5b   :  { %3441 = vst [vmem:[#allocation14_spill] sm:$0xff] %v2239_v21  ;;  %v406_v45 = vadd.f32 0.2, %v404_v55  ;;  %v407_v46 = vadd.f32 0.2, %v405_v57  ;;  %v422_v31 = vmul.f32 380.0, %v362_v60  ;;  %v424_v25 = vmul.f32 %v2215_v42, %v2207_v62 }
  0x5c   :  { %3442 = vst [vmem:[#allocation15_spill] sm:$0xff] %v2241_v9  ;;  %v423_v18 = vmul.f32 380.0, %v363_v63  ;;  %v2243_v38 = vmul.f32 2.0, %v394_v44  ;;  %v2245_v53 = vmul.f32 2.0, %v395_v0  ;;  %v416_v49 = vadd.f32 %v414_v7, %v410_v54 }
  0x5d   :  { %v417_v50 = vadd.f32 %v415_v24, %v411_v41  ;;  %v2247_v32 = vmul.f32 2.0, %v406_v45  ;;  %v2249_v14 = vmul.f32 2.0, %v407_v46  ;;  %v425_v8 = vmul.f32 %v2217_v6, %v2209_v5 }
  0x5e   :  { %v418_v43 = vadd.f32 10.0, %v416_v49  ;;  %v434_v60 = vmul.f32 380.0, %v372_v15  ;;  %v435_v63 = vmul.f32 380.0, %v373_v16  ;;  %v426_v22 = vmul.f32 20.0, %v424_v25 }
  0x5f   :  { %3443 = vst [vmem:[#allocation16_spill] sm:$0xff] %v2249_v14  ;;  %v419_v27 = vadd.f32 10.0, %v417_v50  ;;  %v427_v13 = vmul.f32 20.0, %v425_v8  ;;  %v436_v11 = vmul.f32 %v2215_v42, %v2215_v42  ;;  %v437_v12 = vmul.f32 %v2217_v6, %v2217_v6 }
  0x60   :  { %v2259_v26 = vmul.f32 2.0, %v418_v43  ;;  %v446_v59 = vmul.f32 380.0, %v2203_v40  ;;  %v447_v28 = vmul.f32 380.0, %v2205_v56  ;;  %v428_v1 = vadd.f32 %v426_v22, %v422_v31 }
  0x61   :  { %v2261_v23 = vmul.f32 2.0, %v419_v27  ;;  %v429_v2 = vadd.f32 %v427_v13, %v423_v18  ;;  %v438_v15 = vmul.f32 20.0, %v436_v11  ;;  %v439_v16 = vmul.f32 20.0, %v437_v12 }
  0x62   :  { %3444 = vst [vmem:[#allocation17_spill] sm:$0xff] %v2259_v26  ;;  %v448_v47 = vmul.f32 %v2199_v51, %v2195_v34  ;;  %v449_v48 = vmul.f32 %v2201_v10, %v2197_v35  ;;  %v458_v3 = vmul.f32 380.0, %v2211_v36  ;;  %v459_v4 = vmul.f32 380.0, %v2213_v37 }
  0x63   :  { %3445 = vst [vmem:[#allocation18_spill] sm:$0xff] %v2261_v23  ;;  %v430_v54 = vadd.f32 0.3, %v428_v1  ;;  %v431_v41 = vadd.f32 0.3, %v429_v2  ;;  %v440_v29 = vadd.f32 %v438_v15, %v434_v60  ;;  %v441_v40 = vadd.f32 %v439_v16, %v435_v63 }
  0x64   :  { %v450_v30 = vmul.f32 20.0, %v448_v47  ;;  %v451_v56 = vmul.f32 20.0, %v449_v48  ;;  %v460_v52 = vmul.f32 %v2207_v62, %v2195_v34  ;;  %v461_v33 = vmul.f32 %v2209_v5, %v2197_v35 }
  0x65   :  { %v2275_v51 = vmul.f32 2.0, %v430_v54  ;;  %v2277_v39 = vmul.f32 2.0, %v431_v41  ;;  %v442_v10 = vadd.f32 25.0, %v440_v29  ;;  %v443_v36 = vadd.f32 25.0, %v441_v40 }
  0x66   :  { %v452_v17 = vadd.f32 %v450_v30, %v446_v59  ;;  %v453_v37 = vadd.f32 %v451_v56, %v447_v28  ;;  %v462_v19 = vmul.f32 20.0, %v460_v52  ;;  %v463_v20 = vmul.f32 20.0, %v461_v33 }
  0x67   :  { %v2279_v55 = vmul.f32 2.0, %v442_v10  ;;  %v2281_v57 = vmul.f32 2.0, %v443_v36  ;;  %v470_v5 = vmul.f32 380.0, %v2223_v58  ;;  %v471_v24 = vmul.f32 380.0, %v2225_v61 }
  0x68   :  { %v454_v44 = vadd.f32 1.26, %v452_v17  ;;  %v455_v0 = vadd.f32 1.26, %v453_v37  ;;  %v464_v62 = vadd.f32 %v462_v19, %v458_v3  ;;  %v465_v7 = vadd.f32 %v463_v20, %v459_v4 }
  0x69   :  { %v472_v45 = vmul.f32 %v2215_v42, %v2195_v34  ;;  %v473_v46 = vmul.f32 %v2217_v6, %v2197_v35  ;;  %v2305_v35 = vmov 0.0   ;;  %v2307_v6 = vmov 0.0  }
  0x6a   :  { %v2289_v31 = vmul.f32 2.0, %v454_v44  ;;  %v2291_v18 = vmul.f32 2.0, %v455_v0  ;;  %v466_v49 = vadd.f32 1.165, %v464_v62  ;;  %v467_v50 = vadd.f32 1.165, %v465_v7 }
  0x6b   :  { %v474_v25 = vmul.f32 20.0, %v472_v45  ;;  %v475_v8 = vmul.f32 20.0, %v473_v46  ;;  %v2309_v22 = vmov 0.0   ;;  %v2311_v13 = vmov 0.0  }
  0x6c   :  { %3446 = vst [vmem:[#allocation19_spill] sm:$0xff] %v2291_v18  ;;  %v2293_v43 = vmul.f32 2.0, %v466_v49  ;;  %v2295_v27 = vmul.f32 2.0, %v467_v50  ;;  %v2313_v11 = vmov 0.0   ;;  %v2315_v12 = vmov 0.0  }
  0x6d   :  { %v476_v58 = vadd.f32 %v474_v25, %v470_v5  ;;  %v477_v61 = vadd.f32 %v475_v8, %v471_v24  ;;  %v2317_v59 = vmov 0.0   ;;  %v2319_v28 = vmov 0.0  }
  0x6e   :  { %v2321_v1 = vmov 0.0   ;;  %v2323_v2 = vmov 0.0   ;;  %v2325_v15 = vmov 0.0   ;;  %v2327_v16 = vmov 0.0  }
  0x6f   :  { %v478_v60 = vadd.f32 1.34, %v476_v58  ;;  %v479_v63 = vadd.f32 1.34, %v477_v61  ;;  %v2329_v47 = vmov 0.05  }
  0x70   :  { %v2331_v48 = vmov 0.05   ;;  %v2333_v3 = vmov 0.1   ;;  %v2335_v4 = vmov 0.1  }
  0x71   :  { %v2297_v34 = vmul.f32 2.0, %v478_v60  ;;  %v2299_v42 = vmul.f32 2.0, %v479_v63  ;;  %v2337_v54 = vmov 0.3   ;;  %v2339_v41 = vmov 0.3  }
  0x73   :  { %3447 = vst [vmem:[#allocation20_spill] sm:$0xff] %v2297_v34 }
  0x74   :  { %3448 = vst [vmem:[#allocation21_spill] sm:$0xff] %v2299_v42 }
  0x75 LB: > { %v3449_v26 = vld [vmem:[#allocation17_spill] sm:$0xff]  ;;  %v3450_v23 = vld [vmem:[#allocation18_spill] sm:$0xff]  ;;  %v3452_v18 = vld [vmem:[#allocation19_spill] sm:$0xff]  ;;  %s508_s4 = smul.f32 0.9, %s2022_s29  ;;  %s487_s30 = sadd.s32 1, %s2098_s30   ;;  %v2038_v13 = vphi %v2311_v13, %v3529_v13   ;;  %v2034_v22 = vphi %v2309_v22, %v3528_v22   ;;  %v2030_v6 = vphi %v2307_v6, %v3179_v6   ;;  %v2026_v35 = vphi %v2305_v35, %v3527_v35   ;;  %s2022_s29 = sphi %s2303_s29, %s2706_s29   ;;  %s2018_s2 = sphi %s2301_s2, %s2764_s2   ;;  %s2098_s30 = sphi %s2341_s30, %s487_s30   ;;  %v2094_v41 = vphi %v2339_v41, %v3538_v41   ;;  %v2090_v54 = vphi %v2337_v54, %v3537_v54   ;;  %v2086_v4 = vphi %v2335_v4, %v3536_v4   ;;  %v2082_v3 = vphi %v2333_v3, %v3535_v3   ;;  %v2078_v48 = vphi %v2331_v48, %v3534_v48   ;;  %v2074_v47 = vphi %v2329_v47, %v3533_v47   ;;  %v2070_v16 = vphi %v2327_v16, %v3199_v16   ;;  %v2066_v15 = vphi %v2325_v15, %v3206_v15   ;;  %v2062_v2 = vphi %v2323_v2, %v3203_v2   ;;  %v2058_v1 = vphi %v2321_v1, %v3208_v1   ;;  %v2054_v28 = vphi %v2319_v28, %v3532_v28   ;;  %v2050_v59 = vphi %v2317_v59, %v3531_v59   ;;  %v2046_v12 = vphi %v2315_v12, %v3530_v12   ;;  %v2042_v11 = vphi %v2313_v11, %v3161_v11  }
  0x76   : > { %v3451_v21 = vld [vmem:[#allocation14_spill] sm:$0xff]  ;;  %v3453_v14 = vld [vmem:[#allocation16_spill] sm:$0xff]  ;;  %v3454_v9 = vld [vmem:[#allocation15_spill] sm:$0xff]  ;;  %s509_s6 = smul.f32 0.999, %s2018_s2  ;;  %p3270_p0 = scmp.ge.s32.totalorder %s487_s30, 25  }
  0x77   : > { %s510_s5 = ssub.f32 1.0, %s508_s4  ;;  %s2402_s7 = smul.f32 0.9, %s508_s4 }
  0x78   : > { %s527_s8 = ssub.f32 1.0, %s509_s6  ;;  %s2404_s9 = smul.f32 0.999, %s509_s6 }
  0x79   : > { %v511_v29 = vstv %s510_s5  ;;  %s717_s10 = ssub.f32 1.0, %s2402_s7  ;;  %s922_s12 = smul.f32 0.9, %s2402_s7 }
  0x7a   : > { %1776 = vrcp.f32 %v511_v29  ;;  %v528_v40 = vstv %s527_s8  ;;  %s734_s11 = ssub.f32 1.0, %s2404_s9  ;;  %v521_v52 = vand.u32 2147483647, %v511_v29  ;;  %v523_v33 = vand.u32 2147483648, %v511_v29  ;;  %s923_s14 = smul.f32 0.999, %s2404_s9 }
  0x7b   : > { %1778 = vrcp.f32 %v528_v40  ;;  %v718_v30 = vstv %s717_s10  ;;  %vm517_vm0 = vweird.f32 %v511_v29  ;;  %v540_v19 = vand.u32 2147483648, %v528_v40  ;;  %s924_s13 = ssub.f32 1.0, %s922_s12  ;;  %v3461_v34 = vld [vmem:[#allocation20_spill] sm:$0xff]  ;;  %v3462_v42 = vld [vmem:[#allocation21_spill] sm:$0xff]  ;;  %s2706_s29 = smul.f32 0.9, %s922_s12  }
  0x7c   : > { %v735_v56 = vstv %s734_s11  ;;  %1780 = vrcp.f32 %v718_v30  ;;  %vm2408_vm1 = vcmp.eq.f32.partialorder %v521_v52, 8.507059e+37  ;;  %v524_v44 = vor.u32 1.1754944e-38, %v523_v33  ;;  %s941_s15 = ssub.f32 1.0, %s923_s14  ;;  %s2764_s2 = smul.f32 0.999, %s923_s14  }
  0x7d   : > { %1782 = vrcp.f32 %v735_v56  ;;  %vm534_vm3 = vweird.f32 %v528_v40  ;;  %v538_v7 = vand.u32 2147483647, %v528_v40  ;;  %vm724_vm4 = vweird.f32 %v718_v30  ;;  %s1131_s24 = ssub.f32 1.0, %s2706_s29  ;;  %s2105_s29 = smov (%p3270_p0), [#allocation9]  }
  0x7e   : > { %v728_v5 = vand.u32 2147483647, %v718_v30  ;;  %v541_v25 = vor.u32 1.1754944e-38, %v540_v19  ;;  %v730_v8 = vand.u32 2147483648, %v718_v30  ;;  %v747_v61 = vand.u32 2147483648, %v735_v56  ;;  %s1148_s0 = ssub.f32 1.0, %s2764_s2 }
  0x7f   : > { %vm741_vm9 = vweird.f32 %v735_v56  ;;  %vm539_vm11 = vcmp.eq.f32.partialorder %v538_v7, 8.507059e+37  ;;  %v570_v33 = vmul.f32 %v2090_v54, %v3453_v14  ;;  %s1578_s6 = sld [smem:[#allocation2 + $0x9]] (%p3270_p0)  ;;  %s1494_s30 = sshll.u32 (%p3270_p0), %s2105_s29, 4  ;;  %s1495_s30 = int_to_ptr.vmem [resolvable:$true] %s1494_s30 }
  0x80   : > { %v1777_v10 = vpop.eup %1776  ;;  %vm729_vm13 = vcmp.eq.f32.partialorder %v728_v5, 8.507059e+37  ;;  %v748_v50 = vor.u32 1.1754944e-38, %v747_v61  ;;  %v548_v5 = vmul.f32 %v2082_v3, %v2245_v53  ;;  %v560_v61 = vmul.f32 %v2082_v3, %v3450_v23  ;;  %s3359_s2 = sld [smem:[#allocation2 + $0x3]] (%p3270_p0)  ;;  %s1496_s9 = sshll.u32 (%p3270_p0), %s3412_s3, 4  ;;  %s1497_s9 = int_to_ptr.hbm [resolvable:$true] %s1496_s9 }
  0x81   : > { %v513_v36 = vmul.f32 %v1777_v10, %v511_v29  ;;  %v1779_v17 = vpop.eup %1778  ;;  %vm518_vm2 = vweird.f32 %v1777_v10  ;;  %v745_v29 = vand.u32 2147483647, %v735_v56 }
  0x82   : > { %v530_v0 = vmul.f32 %v1779_v17, %v528_v40  ;;  %v1781_v62 = vpop.eup %1780  ;;  %vm535_vm5 = vweird.f32 %v1779_v17  ;;  %vm2413_vm6 = vmor %vm517_vm0, %vm518_vm2  ;;  %v731_v40 = vor.u32 1.1754944e-38, %v730_v8  ;;  %v545_v8 = vmul.f32 %v2094_v41, %v3451_v21 }
  0x83   : > { %v514_v20 = vsub.f32 1.0, %v513_v36  ;;  %v1783_v24 = vpop.eup %1782  ;;  %v720_v49 = vmul.f32 %v1781_v62, %v718_v30  ;;  %vm725_vm7 = vweird.f32 %v1781_v62  ;;  %vm2418_vm8 = vmor %vm534_vm3, %vm535_vm5  ;;  %vm746_vm15 = vcmp.eq.f32.partialorder %v745_v29, 8.507059e+37 }
  0x84   : > { %v531_v46 = vsub.f32 1.0, %v530_v0  ;;  %v737_v58 = vmul.f32 %v1783_v24, %v735_v56  ;;  %vm742_vm10 = vweird.f32 %v1783_v24  ;;  %vm726_vm12 = vmor %vm724_vm4, %vm725_vm7  ;;  %v547_v56 = vmul.f32 %v2086_v4, %v2243_v38 }
  0x85   : > { %v515_v45 = vmul.f32 %v1777_v10, %v514_v20  ;;  %v721_v52 = vsub.f32 1.0, %v720_v49  ;;  %vm743_vm14 = vmor %vm741_vm9, %vm742_vm10 }
  0x86   : > { %v532_v63 = vmul.f32 %v1779_v17, %v531_v46  ;;  %v738_v36 = vsub.f32 1.0, %v737_v58  ;;  %v549_v29 = vadd.f32 %v547_v56, %v545_v8 }
  0x87   : > { %v516_v60 = vadd.f32 %v1777_v10, %v515_v45  ;;  %v722_v0 = vmul.f32 %v1781_v62, %v721_v52  ;;  %v571_v52 = vmul.f32 %v2086_v4, %v2275_v51 }
  0x88   : > { %v533_v19 = vadd.f32 %v1779_v17, %v532_v63  ;;  %v739_v46 = vmul.f32 %v1783_v24, %v738_v36  ;;  %v569_v63 = vmul.f32 %v2094_v41, %v2247_v32  ;;  %v572_v36 = vmul.f32 %v2082_v3, %v2277_v39 }
  0x89   : > { %v520_v20 = vsel %vm2413_vm6, %v1777_v10, %v516_v60  ;;  %v723_v58 = vadd.f32 %v1781_v62, %v722_v0  ;;  %v552_v0 = vmul.f32 %v2074_v47, %v3453_v14 }
  0x8a   : > { %v525_v45 = vsel %vm2408_vm1, %v524_v44, %v520_v20  ;;  %v537_v49 = vsel %vm2418_vm8, %v1779_v17, %v533_v19  ;;  %v740_v60 = vadd.f32 %v1783_v24, %v739_v46  ;;  %v546_v17 = vmul.f32 %v2090_v54, %v3454_v9 }
  0x8b   : > { %1586 = vpush %v525_v45  ;;  %v542_v10 = vsel %vm539_vm11, %v541_v25, %v537_v49  ;;  %v727_v7 = vsel %vm726_vm12, %v1781_v62, %v723_v58  ;;  %v557_v62 = vmul.f32 %v2094_v41, %v2243_v38  ;;  %v559_v25 = vmul.f32 %v2086_v4, %v3449_v26 }
  0x8c   : > { %1588 = vpush %v542_v10  ;;  %v732_v37 = vsel %vm729_vm13, %v731_v40, %v727_v7  ;;  %v744_v30 = vsel %vm743_vm14, %v1783_v24, %v740_v60  ;;  %v558_v24 = vmul.f32 %v2090_v54, %v2245_v53  ;;  %v550_v20 = vadd.f32 %v548_v5, %v546_v17 }
  0x8d   : > { %1590 = vpush %v732_v37  ;;  %v749_v44 = vsel %vm746_vm15, %v748_v50, %v744_v30  ;;  %v551_v19 = vmul.f32 %v2078_v48, %v2247_v32  ;;  %v561_v45 = vadd.f32 %v559_v25, %v557_v62  ;;  %v563_v46 = vmul.f32 %v2078_v48, %v2275_v51 }
  0x8e   : > { %1592 = vpush %v749_v44  ;;  %v562_v40 = vadd.f32 %v560_v61, %v558_v24  ;;  %v564_v49 = vmul.f32 %v2074_v47, %v2277_v39  ;;  %v573_v58 = vadd.f32 %v571_v52, %v569_v63  ;;  %v575_v50 = vmul.f32 %v2078_v48, %v2279_v55 }
  0x8f   : > { %v574_v10 = vadd.f32 %v572_v36, %v570_v33  ;;  %v576_v60 = vmul.f32 %v2074_v47, %v2281_v57  ;;  %v553_v7 = vadd.f32 %v551_v19, %v549_v29  ;;  %v554_v37 = vadd.f32 %v552_v0, %v550_v20 }
  0x90   : > { %v565_v30 = vadd.f32 %v563_v46, %v561_v45  ;;  %v566_v44 = vadd.f32 %v564_v49, %v562_v40  ;;  %v577_v8 = vadd.f32 %v575_v50, %v573_v58  ;;  %v925_v17 = vstv %s924_s13 }
  0x91   : > { %v578_v56 = vadd.f32 %v576_v60, %v574_v10  ;;  %1784 = vrcp.f32 %v925_v17  ;;  %v555_v5 = vsub.f32 %v553_v7, %v2289_v31  ;;  %v556_v62 = vsub.f32 %v554_v37, %v3452_v18 }
  0x92   : > { %v567_v24 = vsub.f32 %v565_v30, %v2293_v43  ;;  %v568_v25 = vsub.f32 %v566_v44, %v2295_v27  ;;  %v2476_v61 = vstv %s941_s15  ;;  %v2479_v63 = vsub.f32 %v577_v8, %v3461_v34 }
  0x93   : > { %v2482_v52 = vsub.f32 %v578_v56, %v3462_v42  ;;  %1786 = vrcp.f32 %v2476_v61  ;;  %v2486_v33 = vmul.f32 0.9, %v2070_v16  ;;  %v2489_v36 = vmul.f32 0.9, %v2066_v15 }
  0x94   : > { %v2491_v29 = vmul.f32 0.1, %v555_v5  ;;  %v589_v20 = vmul.f32 %v555_v5, %v555_v5  ;;  %v2493_v0 = vmul.f32 0.1, %v556_v62  ;;  %v590_v45 = vmul.f32 %v556_v62, %v556_v62 }
  0x95   : > { %v587_v40 = vmul.f32 0.999, %v2046_v12  ;;  %v635_v46 = vmul.f32 %v567_v24, %v567_v24  ;;  %v636_v49 = vmul.f32 %v568_v25, %v568_v25  ;;  %v588_v50 = vmul.f32 0.999, %v2042_v11 }
  0x96   : > { %v633_v16 = vmul.f32 0.999, %v2038_v13  ;;  %v679_v15 = vmul.f32 %v2479_v63, %v2479_v63  ;;  %v680_v10 = vmul.f32 %v2482_v52, %v2482_v52  ;;  %v591_v60 = vmul.f32 0.001, %v589_v20 }
  0x97   : > { %v1785_v19 = vpop.eup %1784  ;;  %v634_v7 = vmul.f32 0.999, %v2034_v22  ;;  %v592_v12 = vmul.f32 0.001, %v590_v45  ;;  %v677_v44 = vmul.f32 0.999, %v2030_v6  ;;  %vm931_vm0 = vweird.f32 %v925_v17 }
  0x98   : > { %v927_v58 = vmul.f32 %v1785_v19, %v925_v17  ;;  %v678_v8 = vmul.f32 0.999, %v2026_v35  ;;  %v637_v11 = vmul.f32 0.001, %v635_v46  ;;  %v638_v56 = vmul.f32 0.001, %v636_v49 }
  0x99   : > { %v2503_v30 = vpop.eup %1786  ;;  %v681_v62 = vmul.f32 0.001, %v679_v15  ;;  %v682_v42 = vmul.f32 0.001, %v680_v10  ;;  %v937_v34 = vand.u32 2147483648, %v925_v17  ;;  %vm932_vm1 = vweird.f32 %v1785_v19 }
  0x9a   : > { %v928_v37 = vsub.f32 1.0, %v927_v58  ;;  %v944_v5 = vmul.f32 %v2503_v30, %v2476_v61  ;;  %v935_v22 = vand.u32 2147483647, %v925_v17  ;;  %v627_v45 = vmul.f32 0.9, %v2062_v2  ;;  %vm933_vm2 = vmor %vm931_vm0, %vm932_vm1 }
  0x9b   : > { %v2512_v6 = vadd.f32 %v591_v60, %v587_v40  ;;  %v938_v35 = vor.u32 1.1754944e-38, %v937_v34  ;;  %v2514_v49 = vadd.f32 %v592_v12, %v588_v50  ;;  %v2516_v58 = vadd.f32 %v637_v11, %v633_v16 }
  0x9c   : > { %v929_v13 = vmul.f32 %v1785_v19, %v928_v37  ;;  %v945_v46 = vsub.f32 1.0, %v944_v5  ;;  %vm936_vm3 = vcmp.eq.f32.partialorder %v935_v22, 8.507059e+37  ;;  %v2518_v10 = vadd.f32 %v638_v56, %v634_v7 }
  0x9d   : > { %v2520_v37 = vadd.f32 %v681_v62, %v677_v44  ;;  %v2522_v17 = vadd.f32 %v682_v42, %v678_v8  ;;  %v628_v2 = vmul.f32 0.9, %v2058_v1  ;;  %v629_v40 = vmul.f32 0.1, %v567_v24 }
  0x9e   : > { %v930_v20 = vadd.f32 %v1785_v19, %v929_v13  ;;  %v946_v34 = vmul.f32 %v2503_v30, %v945_v46  ;;  %v630_v50 = vmul.f32 0.1, %v568_v25  ;;  %v672_v16 = vmul.f32 0.9, %v2050_v59 }
  0x9f   : > { %3463 = vst [vmem:[#allocation22_spill] sm:$0xff] %v2520_v37  ;;  %vm948_vm4 = vweird.f32 %v2476_v61  ;;  %vm949_vm5 = vweird.f32 %v2503_v30  ;;  %v952_v1 = vand.u32 2147483647, %v2476_v61  ;;  %v954_v11 = vand.u32 2147483648, %v2476_v61 }
  0xa0   : > { %v934_v15 = vsel %vm933_vm2, %v1785_v19, %v930_v20  ;;  %3464 = vst [vmem:[#allocation23_spill] sm:$0xff] %v2522_v17  ;;  %v671_v19 = vmul.f32 0.9, %v2054_v28  ;;  %v947_v8 = vadd.f32 %v2503_v30, %v946_v34  ;;  %vm2550_vm6 = vmor %vm948_vm4, %vm949_vm5  ;;  %v673_v20 = vmul.f32 0.1, %v2479_v63 }
  0xa1   : > { %v939_v13 = vsel %vm936_vm3, %v938_v35, %v934_v15  ;;  %v674_v22 = vmul.f32 0.1, %v2482_v52  ;;  %v585_v46 = vadd.f32 %v2491_v29, %v2486_v33  ;;  %vm953_vm7 = vcmp.eq.f32.partialorder %v952_v1, 8.507059e+37 }
  0xa2   : > { %1594 = vpush %v939_v13  ;;  %v586_v61 = vadd.f32 %v2493_v0, %v2489_v36  ;;  %v951_v63 = vsel %vm2550_vm6, %v2503_v30, %v947_v8  ;;  %v955_v52 = vor.u32 1.1754944e-38, %v954_v11  ;;  %v2572_v34 = vadd.f32 %v630_v50, %v628_v2 }
  0xa3   : > { %v2575_v33 = vadd.f32 %v673_v20, %v671_v19  ;;  %v2577_v29 = vadd.f32 %v674_v22, %v672_v16  ;;  %v2606_v62 = vmul.f32 0.9, %v585_v46 }
  0xa4   : > { %v956_v36 = vsel %vm953_vm7, %v955_v52, %v951_v63 }
  0xa5   : > { %1596 = vpush %v956_v36 }
  0xa6   : > { %3467 = vst [vmem:[#allocation24_spill] sm:$0xff] %v2606_v62 }
  0xbc   : > { %s2509_s16 = spop %1586 }
  0xbd   : > { %s1589_s17 = spop %1588  ;;  %s544_s18 = smul.f32 0.01, %s2509_s16 }
  0xbe   : > { %v595_v60 = vstv %s1589_s17  ;;  %s2616_s19 = spop %1590 }
  0xbf   : > { %v596_v7 = vmul.f32 %v595_v60, %v2512_v6  ;;  %v597_v42 = vmul.f32 %v595_v60, %v2514_v49  ;;  %v641_v24 = vmul.f32 %v2516_v58, %v595_v60  ;;  %v642_v12 = vmul.f32 %v2518_v10, %v595_v60  ;;  %s751_s20 = smul.f32 0.01, %s2616_s19  ;;  %s1593_s23 = spop %1592 }
  0xc0   : > { %v685_v25 = vmul.f32 %v2520_v37, %v595_v60  ;;  %v686_v28 = vmul.f32 %v2522_v17, %v595_v60  ;;  %v620_v13 = vstv %s544_s18  ;;  %v2570_v60 = vadd.f32 %v629_v40, %v627_v45 }
  0xc1   : > { %v2537_v44 = vadd.f32 1e-16, %v596_v7  ;;  %v2539_v59 = vadd.f32 1e-16, %v597_v42  ;;  %v2544_v56 = vadd.f32 1e-16, %v641_v24  ;;  %v621_v30 = vmul.f32 %v620_v13, %v585_v46 }
  0xc2   : > { %v2546_v5 = vadd.f32 1e-16, %v642_v12  ;;  %v2557_v35 = vadd.f32 1e-16, %v685_v25  ;;  %v2562_v15 = vadd.f32 1e-16, %v686_v28  ;;  %v622_v42 = vmul.f32 %v620_v13, %v586_v61 }
  0xc3   : > { %1788 = vrsqrt.f32 %v2537_v44  ;;  %v2582_v45 = vmul.f32 %v2570_v60, %v620_v13  ;;  %v2585_v2 = vmul.f32 %v2572_v34, %v620_v13  ;;  %v2591_v19 = vmul.f32 %v2575_v33, %v620_v13 }
  0xc4   : > { %1790 = vrsqrt.f32 %v2539_v59  ;;  %v2594_v16 = vmul.f32 %v2577_v29, %v620_v13  ;;  %vm606_vm8 = vweird.f32 %v2537_v44  ;;  %vm616_vm9 = vweird.f32 %v2539_v59 }
  0xc5   : > { %1792 = vrsqrt.f32 %v2544_v56  ;;  %vm651_vm10 = vweird.f32 %v2544_v56  ;;  %vm661_vm11 = vweird.f32 %v2546_v5  ;;  %vm695_vm12 = vweird.f32 %v2557_v35 }
  0xc6   : > { %1794 = vrsqrt.f32 %v2546_v5  ;;  %v2612_v13 = vmul.f32 0.9, %v586_v61  ;;  %vm705_vm14 = vweird.f32 %v2562_v15 }
  0xc7   : > { %1796 = vrsqrt.f32 %v2557_v35 }
  0xc8   : > { %1798 = vrsqrt.f32 %v2562_v15  ;;  %3468 = vst [vmem:[#allocation25_spill] sm:$0xff] %v2612_v13 }
  0xc9   : > { %v1789_v0 = vpop.eup %1788 }
  0xca   : > { %v1791_v7 = vpop.eup %1790  ;;  %v601_v40 = vmul.f32 %v1789_v0, %v2537_v44  ;;  %vm607_vm13 = vweird.f32 %v1789_v0 }
  0xcb   : > { %v2588_v50 = vpop.eup %1792  ;;  %v611_v1 = vmul.f32 %v1791_v7, %v2539_v59  ;;  %vm617_vm15 = vweird.f32 %v1791_v7  ;;  %vm608_vm2 = vmor %vm606_vm8, %vm607_vm13 }
  0xcc   : > { %v1795_v24 = vpop.eup %1794  ;;  %v602_v12 = vmul.f32 %v1789_v0, %v601_v40  ;;  %v646_v25 = vmul.f32 %v2588_v50, %v2544_v56  ;;  %vm652_vm0 = vweird.f32 %v2588_v50  ;;  %vm618_vm4 = vmor %vm616_vm9, %vm617_vm15 }
  0xcd   : > { %v2602_v28 = vpop.eup %1796  ;;  %v612_v8 = vmul.f32 %v1791_v7, %v611_v1  ;;  %v656_v11 = vmul.f32 %v1795_v24, %v2546_v5  ;;  %vm662_vm1 = vweird.f32 %v1795_v24  ;;  %vm653_vm6 = vmor %vm651_vm10, %vm652_vm0 }
  0xce   : > { %v1799_v20 = vpop.eup %1798  ;;  %v603_v22 = vmul.f32 0.5, %v602_v12  ;;  %v647_v63 = vmul.f32 %v2588_v50, %v646_v25  ;;  %v690_v52 = vmul.f32 %v2602_v28, %v2557_v35  ;;  %vm696_vm3 = vweird.f32 %v2602_v28  ;;  %vm663_vm7 = vmor %vm661_vm11, %vm662_vm1 }
  0xcf   : > { %v613_v36 = vmul.f32 0.5, %v612_v8  ;;  %v657_v40 = vmul.f32 %v1795_v24, %v656_v11  ;;  %v700_v1 = vmul.f32 %v1799_v20, %v2562_v15  ;;  %vm706_vm5 = vweird.f32 %v1799_v20  ;;  %vm697_vm8 = vmor %vm695_vm12, %vm696_vm3 }
  0xd0   : > { %v604_v46 = vsub.f32 1.5, %v603_v22  ;;  %v648_v12 = vmul.f32 0.5, %v647_v63  ;;  %v691_v25 = vmul.f32 %v2602_v28, %v690_v52  ;;  %vm707_vm9 = vmor %vm705_vm14, %vm706_vm5 }
  0xd1   : > { %v614_v62 = vsub.f32 1.5, %v613_v36  ;;  %v658_v61 = vmul.f32 0.5, %v657_v40  ;;  %v701_v13 = vmul.f32 %v1799_v20, %v700_v1 }
  0xd2   : > { %v605_v17 = vmul.f32 %v1789_v0, %v604_v46  ;;  %v649_v8 = vsub.f32 1.5, %v648_v12  ;;  %v692_v11 = vmul.f32 0.5, %v691_v25 }
  0xd3   : > { %v615_v37 = vmul.f32 %v1791_v7, %v614_v62  ;;  %v659_v22 = vsub.f32 1.5, %v658_v61  ;;  %v702_v63 = vmul.f32 0.5, %v701_v13  ;;  %s3002_s25 = spop %1594 }
  0xd4   : > { %v609_v52 = vsel %vm608_vm2, %v1789_v0, %v605_v17  ;;  %v650_v36 = vmul.f32 %v2588_v50, %v649_v8  ;;  %v693_v40 = vsub.f32 1.5, %v692_v11  ;;  %v2638_v0 = vstv %s751_s20  ;;  %s958_s1 = smul.f32 0.01, %s3002_s25 }
  0xd5   : > { %v619_v1 = vsel %vm618_vm4, %v1791_v7, %v615_v37  ;;  %v623_v46 = vmul.f32 %v621_v30, %v609_v52  ;;  %v660_v44 = vmul.f32 %v1795_v24, %v659_v22  ;;  %v703_v62 = vsub.f32 1.5, %v702_v63 }
  0xd6   : > { %v624_v12 = vmul.f32 %v622_v42, %v619_v1  ;;  %v654_v17 = vsel %vm653_vm6, %v2588_v50, %v650_v36  ;;  %v694_v59 = vmul.f32 %v2602_v28, %v693_v40  ;;  %s1597_s26 = spop %1596 }
  0xd7   : > { %v2641_v37 = vsub.f32 %v2094_v41, %v623_v46  ;;  %v664_v30 = vsel %vm663_vm7, %v1795_v24, %v660_v44  ;;  %v667_v56 = vmul.f32 %v2582_v45, %v654_v17  ;;  %v704_v7 = vmul.f32 %v1799_v20, %v703_v62 }
  0xd8   : > { %v2649_v42 = vsub.f32 %v2090_v54, %v624_v12  ;;  %v668_v5 = vmul.f32 %v2585_v2, %v664_v30  ;;  %v698_v50 = vsel %vm697_vm8, %v2602_v28, %v694_v59  ;;  %v2657_v41 = vmul.f32 0.9, %v2570_v60 }
  0xd9   : > { %v2660_v45 = vsub.f32 %v2086_v4, %v667_v56  ;;  %v708_v35 = vsel %vm707_vm9, %v1799_v20, %v704_v7  ;;  %v711_v24 = vmul.f32 %v2591_v19, %v698_v50  ;;  %v752_v54 = vmul.f32 %v2641_v37, %v3451_v21 }
  0xda   : > { %v2666_v2 = vsub.f32 %v2082_v3, %v668_v5  ;;  %v712_v28 = vmul.f32 %v2594_v16, %v708_v35  ;;  %v753_v15 = vmul.f32 %v2649_v42, %v3454_v9  ;;  %v764_v60 = vmul.f32 %v2641_v37, %v2243_v38 }
  0xdb   : > { %v2674_v4 = vsub.f32 %v2078_v48, %v711_v24  ;;  %v754_v19 = vmul.f32 %v2660_v45, %v2243_v38  ;;  %v765_v20 = vmul.f32 %v2649_v42, %v2245_v53  ;;  %v766_v3 = vmul.f32 %v2660_v45, %v3449_v26 }
  0xdc   : > { %v2683_v16 = vsub.f32 %v2074_v47, %v712_v28  ;;  %v755_v13 = vmul.f32 %v2666_v2, %v2245_v53  ;;  %v767_v48 = vmul.f32 %v2666_v2, %v3450_v23  ;;  %v776_v25 = vmul.f32 %v2641_v37, %v2247_v32 }
  0xdd   : > { %v756_v61 = vadd.f32 %v754_v19, %v752_v54  ;;  %v758_v8 = vmul.f32 %v2674_v4, %v2247_v32  ;;  %v768_v11 = vadd.f32 %v766_v3, %v764_v60  ;;  %v770_v22 = vmul.f32 %v2674_v4, %v2275_v51 }
  0xde   : > { %v757_v47 = vadd.f32 %v755_v13, %v753_v15  ;;  %v759_v63 = vmul.f32 %v2683_v16, %v3453_v14  ;;  %v769_v52 = vadd.f32 %v767_v48, %v765_v20  ;;  %v771_v36 = vmul.f32 %v2683_v16, %v2277_v39  ;;  %v3469_v13 = vld [vmem:[#allocation20_spill] sm:$0xff] }
  0xdf   : > { %v760_v40 = vadd.f32 %v758_v8, %v756_v61  ;;  %v777_v1 = vmul.f32 %v2649_v42, %v3453_v14  ;;  %v778_v46 = vmul.f32 %v2660_v45, %v2275_v51  ;;  %v835_v44 = vmul.f32 0.9, %v2572_v34  ;;  %v3470_v8 = vld [vmem:[#allocation21_spill] sm:$0xff] }
  0xe0   : > { %v761_v62 = vadd.f32 %v759_v63, %v757_v47  ;;  %v772_v12 = vadd.f32 %v770_v22, %v768_v11  ;;  %v773_v17 = vadd.f32 %v771_v36, %v769_v52  ;;  %v779_v59 = vmul.f32 %v2666_v2, %v2277_v39  ;;  %v3472_v36 = vld [vmem:[#allocation23_spill] sm:$0xff] }
  0xe1   : > { %v762_v30 = vsub.f32 %v760_v40, %v2289_v31  ;;  %v780_v56 = vadd.f32 %v778_v46, %v776_v25  ;;  %v782_v7 = vmul.f32 %v2674_v4, %v2279_v55  ;;  %v878_v5 = vmul.f32 0.9, %v2575_v33 }
  0xe2   : > { %v763_v34 = vsub.f32 %v761_v62, %v3452_v18  ;;  %v781_v50 = vadd.f32 %v779_v59, %v777_v1  ;;  %v783_v35 = vmul.f32 %v2683_v16, %v2281_v57  ;;  %v879_v24 = vmul.f32 0.9, %v2577_v29 }
  0xe3   : > { %v784_v54 = vadd.f32 %v782_v7, %v780_v56  ;;  %v794_v28 = vmul.f32 0.999, %v2512_v6  ;;  %v795_v15 = vmul.f32 0.999, %v2514_v49  ;;  %v796_v60 = vmul.f32 %v762_v30, %v762_v30  ;;  %v3471_v49 = vld [vmem:[#allocation22_spill] sm:$0xff] }
  0xe4   : > { %v774_v19 = vsub.f32 %v772_v12, %v2293_v43  ;;  %v775_v33 = vsub.f32 %v773_v17, %v2295_v27  ;;  %v785_v20 = vadd.f32 %v783_v35, %v781_v50  ;;  %v797_v3 = vmul.f32 %v763_v34, %v763_v34 }
  0xe5   : > { %v786_v48 = vsub.f32 %v784_v54, %v3469_v13  ;;  %v798_v25 = vmul.f32 0.001, %v796_v60  ;;  %v802_v61 = vstv %s1593_s23  ;;  %v840_v29 = vmul.f32 0.999, %v2516_v58  ;;  %v3474_v54 = vld [vmem:[#allocation24_spill] sm:$0xff] }
  0xe6   : > { %v787_v11 = vsub.f32 %v785_v20, %v3470_v8  ;;  %v799_v22 = vmul.f32 0.001, %v797_v3  ;;  %v841_v6 = vmul.f32 0.999, %v2518_v10  ;;  %v884_v47 = vmul.f32 0.999, %v3471_v49 }
  0xe7   : > { %v790_v63 = vmul.f32 0.1, %v762_v30  ;;  %v2728_v52 = vadd.f32 %v798_v25, %v794_v28  ;;  %v885_v40 = vmul.f32 0.999, %v3472_v36  ;;  %v2731_v1 = vstv %s1131_s24  ;;  %v3477_v25 = vld [vmem:[#allocation25_spill] sm:$0xff] }
  0xe8   : > { %v791_v46 = vmul.f32 0.1, %v763_v34  ;;  %v836_v62 = vmul.f32 0.1, %v774_v19  ;;  %v837_v12 = vmul.f32 0.1, %v775_v33  ;;  %v2733_v17 = vadd.f32 %v799_v22, %v795_v15 }
  0xe9   : > { %v880_v58 = vmul.f32 0.1, %v786_v48  ;;  %v803_v59 = vmul.f32 %v802_v61, %v2728_v52  ;;  %v842_v56 = vmul.f32 %v774_v19, %v774_v19  ;;  %v843_v7 = vmul.f32 %v775_v33, %v775_v33 }
  0xea   : > { %3473 = vst [vmem:[#allocation22_spill] sm:$0xff] %v2733_v17  ;;  %v881_v10 = vmul.f32 0.1, %v787_v11  ;;  %v804_v50 = vmul.f32 %v802_v61, %v2733_v17  ;;  %v886_v30 = vmul.f32 %v786_v48, %v786_v48  ;;  %v887_v35 = vmul.f32 %v787_v11, %v787_v11 }
  0xeb   : > { %v2738_v28 = vadd.f32 %v790_v63, %v3474_v54  ;;  %v2740_v60 = vadd.f32 1e-16, %v803_v59  ;;  %v844_v34 = vmul.f32 0.001, %v842_v56  ;;  %v845_v20 = vmul.f32 0.001, %v843_v7 }
  0xec   : > { %v2743_v15 = vadd.f32 %v836_v62, %v2657_v41  ;;  %v2745_v3 = vadd.f32 1e-16, %v804_v50  ;;  %v888_v19 = vmul.f32 0.001, %v886_v30  ;;  %v889_v33 = vmul.f32 0.001, %v887_v35 }
  0xed   : > { %3475 = vst [vmem:[#allocation23_spill] sm:$0xff] %v2738_v28  ;;  %v2748_v22 = vadd.f32 %v791_v46, %v3477_v25  ;;  %1800 = vrsqrt.f32 %v2740_v60  ;;  %v2751_v48 = vadd.f32 %v844_v34, %v840_v29  ;;  %v2753_v11 = vadd.f32 %v845_v20, %v841_v6 }
  0xee   : > { %3476 = vst [vmem:[#allocation24_spill] sm:$0xff] %v2743_v15  ;;  %v2755_v49 = vadd.f32 %v837_v12, %v835_v44  ;;  %1802 = vrsqrt.f32 %v2745_v3  ;;  %v2758_v63 = vadd.f32 %v888_v19, %v884_v47  ;;  %v2760_v41 = vadd.f32 %v889_v33, %v885_v40 }
  0xef   : > { %3478 = vst [vmem:[#allocation25_spill] sm:$0xff] %v2748_v22  ;;  %v2766_v36 = vadd.f32 %v880_v58, %v878_v5  ;;  %v848_v46 = vmul.f32 %v2751_v48, %v802_v61  ;;  %v849_v29 = vmul.f32 %v2753_v11, %v802_v61  ;;  %1804 = vrcp.f32 %v2731_v1 }
  0xf0   : > { %3479 = vst [vmem:[#allocation26_spill] sm:$0xff] %v2751_v48  ;;  %v2771_v44 = vadd.f32 %v881_v10, %v879_v24  ;;  %v892_v6 = vmul.f32 %v2758_v63, %v802_v61  ;;  %v893_v47 = vmul.f32 %v2760_v41, %v802_v61  ;;  %v2777_v40 = vmul.f32 %v2638_v0, %v2738_v28 }
  0xf1   : > { %3480 = vst [vmem:[#allocation27_spill] sm:$0xff] %v2753_v11  ;;  %v2779_v62 = vadd.f32 1e-16, %v848_v46  ;;  %v2781_v5 = vadd.f32 1e-16, %v849_v29  ;;  %v2785_v12 = vmul.f32 %v2638_v0, %v2748_v22  ;;  %v2789_v24 = vmul.f32 %v2743_v15, %v2638_v0 }
  0xf2   : > { %3481 = vst [vmem:[#allocation28_spill] sm:$0xff] %v2755_v49  ;;  %v2791_v58 = vadd.f32 1e-16, %v892_v6  ;;  %v2793_v59 = vadd.f32 1e-16, %v893_v47  ;;  %v2800_v56 = vmul.f32 %v2755_v49, %v2638_v0  ;;  %v2804_v7 = vmul.f32 %v2766_v36, %v2638_v0 }
  0xf3   : > { %3482 = vst [vmem:[#allocation29_spill] sm:$0xff] %v2758_v63  ;;  %v2796_v61 = vpop.eup %1800  ;;  %1806 = vrsqrt.f32 %v2779_v62  ;;  %v1142_v10 = vand.u32 2147483647, %v2731_v1  ;;  %v2812_v30 = vmul.f32 %v2771_v44, %v2638_v0  ;;  %v1144_v54 = vand.u32 2147483648, %v2731_v1 }
  0xf4   : > { %3483 = vst [vmem:[#allocation30_spill] sm:$0xff] %v2760_v41  ;;  %v2808_v50 = vpop.eup %1802  ;;  %v808_v35 = vmul.f32 %v2796_v61, %v2740_v60  ;;  %1808 = vrsqrt.f32 %v2781_v5  ;;  %vm813_vm10 = vweird.f32 %v2740_v60  ;;  %vm823_vm11 = vweird.f32 %v2745_v3 }
  0xf5   : > { %3484 = vst [vmem:[#allocation31_spill] sm:$0xff] %v2766_v36  ;;  %v2818_v34 = vpop.eup %1804  ;;  %v818_v20 = vmul.f32 %v2808_v50, %v2745_v3  ;;  %1810 = vrsqrt.f32 %v2791_v58  ;;  %v2829_v33 = vstv %s1148_s0  ;;  %vm1138_vm12 = vweird.f32 %v2731_v1 }
  0xf6   : > { %3485 = vst [vmem:[#allocation32_spill] sm:$0xff] %v2771_v44  ;;  %v809_v0 = vmul.f32 %v2796_v61, %v808_v35  ;;  %1812 = vrsqrt.f32 %v2793_v59  ;;  %v1134_v19 = vmul.f32 %v2818_v34, %v2731_v1  ;;  %vm2833_vm13 = vcmp.eq.f32.partialorder %v1142_v10, 8.507059e+37 }
  0xf7   : > { %v819_v25 = vmul.f32 %v2808_v50, %v818_v20  ;;  %v1161_v29 = vand.u32 2147483648, %v2829_v33  ;;  %vm814_vm14 = vweird.f32 %v2796_v61  ;;  %v1145_v35 = vor.u32 1.1754944e-38, %v1144_v54 }
  0xf8   : > { %v810_v6 = vmul.f32 0.5, %v809_v0  ;;  %v1135_v47 = vsub.f32 1.0, %v1134_v19  ;;  %vm824_vm15 = vweird.f32 %v2808_v50  ;;  %vm1139_vm0 = vweird.f32 %v2818_v34  ;;  %vm2866_vm4 = vmor %vm813_vm10, %vm814_vm14 }
  0xf9   : > { %v2839_v44 = vpop.eup %1806  ;;  %v820_v36 = vmul.f32 0.5, %v819_v25  ;;  %1814 = vrcp.f32 %v2829_v33  ;;  %vm858_vm1 = vweird.f32 %v2779_v62  ;;  %v1159_v54 = vand.u32 2147483647, %v2829_v33  ;;  %vm2886_vm10 = vmor %vm1138_vm12, %vm1139_vm0 }
  0xfa   : > { %v2844_v10 = vpop.eup %1808  ;;  %v811_v20 = vsub.f32 1.5, %v810_v6  ;;  %v853_v49 = vmul.f32 %v2839_v44, %v2779_v62  ;;  %v1136_v0 = vmul.f32 %v2818_v34, %v1135_v47  ;;  %vm859_vm2 = vweird.f32 %v2839_v44  ;;  %vm825_vm14 = vmor %vm823_vm11, %vm824_vm15 }
  0xfb   : > { %v2851_v19 = vpop.eup %1810  ;;  %v821_v25 = vsub.f32 1.5, %v820_v36  ;;  %v863_v41 = vmul.f32 %v2844_v10, %v2781_v5  ;;  %vm868_vm3 = vweird.f32 %v2781_v5  ;;  %v2857_v6 = vor.u32 1.1754944e-38, %v1161_v29  ;;  %vm860_vm12 = vmor %vm858_vm1, %vm859_vm2 }
  0xfc   : > { %v2859_v15 = vpop.eup %1812  ;;  %v812_v63 = vmul.f32 %v2796_v61, %v811_v20  ;;  %v854_v36 = vmul.f32 %v2839_v44, %v853_v49  ;;  %vm869_vm5 = vweird.f32 %v2844_v10  ;;  %v897_v29 = vmul.f32 %v2851_v19, %v2791_v58 }
  0xfd   : > { %vm902_vm6 = vweird.f32 %v2791_v58  ;;  %vm1155_vm7 = vweird.f32 %v2829_v33  ;;  %v822_v20 = vmul.f32 %v2808_v50, %v821_v25  ;;  %v864_v11 = vmul.f32 %v2844_v10, %v863_v41  ;;  %vm870_vm0 = vmor %vm868_vm3, %vm869_vm5 }
  0xfe   : > { %vm903_vm8 = vweird.f32 %v2851_v19  ;;  %v907_v60 = vmul.f32 %v2859_v15, %v2793_v59  ;;  %vm912_vm9 = vweird.f32 %v2793_v59  ;;  %v816_v25 = vsel %vm2866_vm4, %v2796_v61, %v812_v63 }
  0xff   : > { %v855_v41 = vmul.f32 0.5, %v854_v36  ;;  %v898_v48 = vmul.f32 %v2851_v19, %v897_v29  ;;  %v1137_v22 = vadd.f32 %v2818_v34, %v1136_v0  ;;  %v1815_v28 = vpop.eup %1814  ;;  %v826_v1 = vsel %vm825_vm14, %v2808_v50, %v822_v20  ;;  %vm904_vm1 = vmor %vm902_vm6, %vm903_vm8 }
 0x100   : > { %v830_v8 = vmul.f32 %v2777_v40, %v816_v25  ;;  %v865_v17 = vmul.f32 0.5, %v864_v11  ;;  %v908_v13 = vmul.f32 %v2859_v15, %v907_v60  ;;  %v831_v63 = vmul.f32 %v2785_v12, %v826_v1 }
 0x101   : > { %v856_v61 = vsub.f32 1.5, %v855_v41  ;;  %v899_v47 = vmul.f32 0.5, %v898_v48  ;;  %v1141_v3 = vsel %vm2886_vm10, %v2818_v34, %v1137_v22  ;;  %vm2906_vm11 = vcmp.eq.f32.partialorder %v1159_v54, 8.507059e+37 }
 0x102   : > { %v2911_v0 = vsub.f32 %v2641_v37, %v830_v8  ;;  %v866_v50 = vsub.f32 1.5, %v865_v17  ;;  %v909_v40 = vmul.f32 0.5, %v908_v13  ;;  %v1146_v11 = vsel %vm2833_vm13, %v1145_v35, %v1141_v3 }
 0x103   : > { %v2916_v12 = vsub.f32 %v2649_v42, %v831_v63  ;;  %v857_v48 = vmul.f32 %v2839_v44, %v856_v61  ;;  %v900_v29 = vsub.f32 1.5, %v899_v47  ;;  %1598 = vpush %v1146_v11  ;;  %v1151_v22 = vmul.f32 %v1815_v28, %v2829_v33 }
 0x104   : > { %v867_v37 = vmul.f32 %v2844_v10, %v866_v50  ;;  %v910_v13 = vsub.f32 1.5, %v909_v40  ;;  %vm913_vm15 = vweird.f32 %v2859_v15  ;;  %vm1156_vm13 = vweird.f32 %v1815_v28 }
 0x105   : > { %v861_v42 = vsel %vm860_vm12, %v2839_v44, %v857_v48  ;;  %v901_v8 = vmul.f32 %v2851_v19, %v900_v29  ;;  %v1152_v17 = vsub.f32 1.0, %v1151_v22  ;;  %v959_v62 = vmul.f32 %v2911_v0, %v3451_v21  ;;  %vm914_vm2 = vmor %vm912_vm9, %vm913_vm15 }
 0x106   : > { %v871_v34 = vsel %vm870_vm0, %v2844_v10, %v867_v37  ;;  %v874_v46 = vmul.f32 %v2789_v24, %v861_v42  ;;  %v911_v44 = vmul.f32 %v2859_v15, %v910_v13  ;;  %v960_v5 = vmul.f32 %v2916_v12, %v3454_v9  ;;  %vm1157_vm3 = vmor %vm1155_vm7, %vm1156_vm13 }
 0x107   : > { %v875_v35 = vmul.f32 %v2800_v56, %v871_v34  ;;  %v905_v54 = vsel %vm904_vm1, %v2851_v19, %v901_v8  ;;  %v1153_v10 = vmul.f32 %v1815_v28, %v1152_v17  ;;  %v971_v24 = vmul.f32 %v2911_v0, %v2243_v38 }
 0x108   : > { %v2950_v20 = vsub.f32 %v2660_v45, %v874_v46  ;;  %v915_v58 = vsel %vm914_vm2, %v2859_v15, %v911_v44  ;;  %v918_v60 = vmul.f32 %v2804_v7, %v905_v54  ;;  %v972_v56 = vmul.f32 %v2916_v12, %v2245_v53 }
 0x109   : > { %v2960_v59 = vsub.f32 %v2666_v2, %v875_v35  ;;  %v919_v19 = vmul.f32 %v2812_v30, %v915_v58  ;;  %v1154_v49 = vadd.f32 %v1815_v28, %v1153_v10  ;;  %v983_v45 = vmul.f32 %v2911_v0, %v2247_v32  ;;  %v3494_v58 = vld [vmem:[#allocation20_spill] sm:$0xff] }
 0x10a   : > { %v2966_v15 = vsub.f32 %v2674_v4, %v918_v60  ;;  %v961_v7 = vmul.f32 %v2950_v20, %v2243_v38  ;;  %v973_v33 = vmul.f32 %v2950_v20, %v3449_v26  ;;  %v985_v25 = vmul.f32 %v2950_v20, %v2275_v51 }
 0x10b   : > { %v2975_v2 = vsub.f32 %v2683_v16, %v919_v19  ;;  %v1158_v30 = vsel %vm1157_vm3, %v1815_v28, %v1154_v49  ;;  %v962_v41 = vmul.f32 %v2960_v59, %v2245_v53  ;;  %v974_v4 = vmul.f32 %v2960_v59, %v3450_v23 }
 0x10c   : > { %v1163_v1 = vsel %vm2906_vm11, %v2857_v6, %v1158_v30  ;;  %v963_v63 = vadd.f32 %v961_v7, %v959_v62  ;;  %v965_v61 = vmul.f32 %v2966_v15, %v2247_v32  ;;  %v984_v47 = vmul.f32 %v2916_v12, %v3453_v14  ;;  %v3497_v30 = vld [vmem:[#allocation23_spill] sm:$0xff] }
 0x10d   : > { %1600 = vpush %v1163_v1  ;;  %v964_v16 = vadd.f32 %v962_v41, %v960_v5  ;;  %v966_v28 = vmul.f32 %v2975_v2, %v3453_v14  ;;  %v975_v50 = vadd.f32 %v973_v33, %v971_v24  ;;  %v976_v40 = vadd.f32 %v974_v4, %v972_v56  ;;  %v3495_v56 = vld [vmem:[#allocation22_spill] sm:$0xff]  ;;  %v3498_v1 = vld [vmem:[#allocation25_spill] sm:$0xff] }
 0x10e   : > { %v967_v3 = vadd.f32 %v965_v61, %v963_v63  ;;  %v986_v11 = vmul.f32 %v2960_v59, %v2277_v39  ;;  %v987_v6 = vadd.f32 %v985_v25, %v983_v45  ;;  %v977_v29 = vmul.f32 %v2966_v15, %v2275_v51  ;;  %v3496_v45 = vld [vmem:[#allocation21_spill] sm:$0xff] }
 0x10f   : > { %v968_v36 = vadd.f32 %v966_v28, %v964_v16  ;;  %v978_v22 = vmul.f32 %v2975_v2, %v2277_v39  ;;  %v989_v42 = vmul.f32 %v2966_v15, %v2279_v55  ;;  %v990_v62 = vmul.f32 %v2975_v2, %v2281_v57  ;;  %v3499_v28 = vld [vmem:[#allocation26_spill] sm:$0xff] }
 0x110   : > { %v969_v48 = vsub.f32 %v967_v3, %v2289_v31  ;;  %v988_v37 = vadd.f32 %v986_v11, %v984_v47  ;;  %v979_v8 = vadd.f32 %v977_v29, %v975_v50  ;;  %v1001_v10 = vmul.f32 0.999, %v2728_v52  ;;  %v3500_v50 = vld [vmem:[#allocation27_spill] sm:$0xff] }
 0x111   : > { %v970_v13 = vsub.f32 %v968_v36, %v3452_v18  ;;  %v980_v17 = vadd.f32 %v978_v22, %v976_v40  ;;  %v991_v34 = vadd.f32 %v989_v42, %v987_v6  ;;  %v1002_v19 = vmul.f32 0.999, %v3495_v56  ;;  %v3501_v42 = vld [vmem:[#allocation29_spill] sm:$0xff] }
 0x112   : > { %v992_v46 = vadd.f32 %v990_v62, %v988_v37  ;;  %v1003_v44 = vmul.f32 %v969_v48, %v969_v48  ;;  %v981_v35 = vsub.f32 %v979_v8, %v2293_v43  ;;  %v1009_v25 = vstv %s1597_s26  ;;  %v3502_v62 = vld [vmem:[#allocation24_spill] sm:$0xff] }
 0x113   : > { %v1004_v5 = vmul.f32 %v970_v13, %v970_v13  ;;  %v982_v54 = vsub.f32 %v980_v17, %v2295_v27  ;;  %v993_v60 = vsub.f32 %v991_v34, %v3494_v58  ;;  %v995_v41 = vmul.f32 0.9, %v3497_v30 }
 0x114   : > { %v1005_v24 = vmul.f32 0.001, %v1003_v44  ;;  %v994_v7 = vsub.f32 %v992_v46, %v3496_v45  ;;  %v996_v63 = vmul.f32 0.9, %v3498_v1  ;;  %v1049_v61 = vmul.f32 %v981_v35, %v981_v35 }
 0x115   : > { %v1006_v49 = vmul.f32 0.001, %v1004_v5  ;;  %v1050_v47 = vmul.f32 %v982_v54, %v982_v54  ;;  %v1047_v3 = vmul.f32 0.999, %v3499_v28  ;;  %v1048_v40 = vmul.f32 0.999, %v3500_v50 }
 0x116   : > { %v3010_v33 = vadd.f32 %v1005_v24, %v1001_v10  ;;  %v1093_v11 = vmul.f32 %v993_v60, %v993_v60  ;;  %v1051_v6 = vmul.f32 0.001, %v1049_v61  ;;  %v1094_v22 = vmul.f32 %v994_v7, %v994_v7  ;;  %v3504_v5 = vld [vmem:[#allocation30_spill] sm:$0xff] }
 0x117   : > { %v3013_v4 = vadd.f32 %v1006_v49, %v1002_v19  ;;  %v1052_v29 = vmul.f32 0.001, %v1050_v47  ;;  %v1091_v8 = vmul.f32 0.999, %v3501_v42  ;;  %v1041_v34 = vmul.f32 0.9, %v3502_v62 }
 0x118   : > { %v1010_v52 = vmul.f32 %v1009_v25, %v3010_v33  ;;  %v1095_v17 = vmul.f32 0.001, %v1093_v11  ;;  %v3028_v46 = vadd.f32 %v1051_v6, %v1047_v3  ;;  %v1092_v10 = vmul.f32 0.999, %v3504_v5  ;;  %v3506_v49 = vld [vmem:[#allocation28_spill] sm:$0xff]  ;;  %v3508_v6 = vld [vmem:[#allocation31_spill] sm:$0xff] }
 0x119   : > { %v1011_v16 = vmul.f32 %v1009_v25, %v3013_v4  ;;  %v3030_v44 = vadd.f32 %v1052_v29, %v1048_v40  ;;  %v1096_v24 = vmul.f32 0.001, %v1094_v22  ;;  %v997_v19 = vmul.f32 0.1, %v969_v48 }
 0x11a   : > { %v3020_v36 = vadd.f32 1e-16, %v1010_v52  ;;  %v3034_v56 = vadd.f32 %v1095_v17, %v1091_v8  ;;  %v1042_v30 = vmul.f32 0.9, %v3506_v49  ;;  %v1055_v1 = vmul.f32 %v3028_v46, %v1009_v25 }
 0x11b   : > { %v3022_v37 = vadd.f32 1e-16, %v1011_v16  ;;  %3503 = vst [vmem:[#allocation22_spill] sm:$0xff] %v3030_v44  ;;  %v1056_v52 = vmul.f32 %v3030_v44, %v1009_v25  ;;  %v998_v61 = vmul.f32 0.1, %v970_v13  ;;  %v3039_v16 = vadd.f32 %v1096_v24, %v1092_v10 }
 0x11c   : > { %1816 = vrsqrt.f32 %v3020_v36  ;;  %3505 = vst [vmem:[#allocation23_spill] sm:$0xff] %v3034_v56  ;;  %v1043_v47 = vmul.f32 0.1, %v981_v35  ;;  %v1099_v28 = vmul.f32 %v3034_v56, %v1009_v25  ;;  %v1034_v3 = vstv %s958_s1  ;;  %v3509_v35 = vld [vmem:[#allocation32_spill] sm:$0xff] }
 0x11d   : > { %1818 = vrsqrt.f32 %v3022_v37  ;;  %3507 = vst [vmem:[#allocation25_spill] sm:$0xff] %v3039_v16  ;;  %v1044_v50 = vmul.f32 0.1, %v982_v54  ;;  %v3042_v40 = vadd.f32 1e-16, %v1055_v1  ;;  %v1100_v22 = vmul.f32 %v3039_v16, %v1009_v25 }
 0x11e   : > { %v3044_v11 = vadd.f32 1e-16, %v1056_v52  ;;  %v1085_v48 = vmul.f32 0.9, %v3508_v6  ;;  %v1087_v29 = vmul.f32 0.1, %v993_v60  ;;  %v3050_v13 = vadd.f32 %v997_v19, %v995_v41 }
 0x11f   : > { %v3048_v42 = vadd.f32 1e-16, %v1099_v28  ;;  %v1086_v17 = vmul.f32 0.9, %v3509_v35  ;;  %v1088_v62 = vmul.f32 0.1, %v994_v7  ;;  %1820 = vrsqrt.f32 %v3042_v40 }
 0x120   : > { %v3054_v5 = vadd.f32 %v998_v61, %v996_v63  ;;  %1822 = vrsqrt.f32 %v3044_v11  ;;  %v3058_v60 = vadd.f32 1e-16, %v1100_v22  ;;  %v3060_v25 = vadd.f32 %v1043_v47, %v1041_v34 }
 0x121   : > { %v3062_v24 = vadd.f32 %v1044_v50, %v1042_v30  ;;  %1824 = vrsqrt.f32 %v3048_v42  ;;  %v3066_v7 = vadd.f32 %v1087_v29, %v1085_v48  ;;  %v3069_v63 = vadd.f32 %v1088_v62, %v1086_v17 }
 0x122   : > { %v1817_v8 = vpop.eup %1816  ;;  %3510 = vst [vmem:[#allocation26_spill] sm:$0xff] %v3060_v25  ;;  %1826 = vrsqrt.f32 %v3058_v60  ;;  %v1035_v1 = vmul.f32 %v1034_v3, %v3050_v13  ;;  %v1036_v34 = vmul.f32 %v1034_v3, %v3054_v5  ;;  %v1079_v30 = vmul.f32 %v3060_v25, %v1034_v3 }
 0x123   : > { %v1819_v54 = vpop.eup %1818  ;;  %v1015_v10 = vmul.f32 %v1817_v8, %v3020_v36  ;;  %3511 = vst [vmem:[#allocation27_spill] sm:$0xff] %v3062_v24  ;;  %v1080_v47 = vmul.f32 %v3062_v24, %v1034_v3  ;;  %v3076_v6 = vmul.f32 %v3066_v7, %v1034_v3  ;;  %vm1021_vm4 = vweird.f32 %v1817_v8 }
 0x124   : > { %v1025_v41 = vmul.f32 %v1819_v54, %v3022_v37  ;;  %3512 = vst [vmem:[#allocation29_spill] sm:$0xff] %v3066_v7  ;;  %v1124_v35 = vmul.f32 %v3069_v63, %v1034_v3  ;;  %vm1031_vm5 = vweird.f32 %v1819_v54  ;;  %vm1020_vm6 = vweird.f32 %v3020_v36 }
 0x125   : > { %v1016_v19 = vmul.f32 %v1817_v8, %v1015_v10  ;;  %3513 = vst [vmem:[#allocation24_spill] sm:$0xff] %v3069_v63  ;;  %v1821_v61 = vpop.eup %1820  ;;  %vm1022_vm7 = vmor %vm1020_vm6, %vm1021_vm4  ;;  %vm1030_vm8 = vweird.f32 %v3022_v37  ;;  %vm1065_vm10 = vweird.f32 %v3042_v40  ;;  %vm1075_vm13 = vweird.f32 %v3044_v11 }
 0x126   : > { %v1026_v49 = vmul.f32 %v1819_v54, %v1025_v41  ;;  %v1823_v50 = vpop.eup %1822  ;;  %v1060_v29 = vmul.f32 %v1821_v61, %v3042_v40  ;;  %vm1032_vm9 = vmor %vm1030_vm8, %vm1031_vm5  ;;  %vm1066_vm14 = vweird.f32 %v1821_v61  ;;  %vm1109_vm2 = vweird.f32 %v3048_v42 }
 0x127   : > { %v1017_v52 = vmul.f32 0.5, %v1016_v19  ;;  %v1825_v22 = vpop.eup %1824  ;;  %v1070_v62 = vmul.f32 %v1823_v50, %v3044_v11  ;;  %vm1076_vm11 = vweird.f32 %v1823_v50  ;;  %vm1067_vm15 = vmor %vm1065_vm10, %vm1066_vm14  ;;  %vm1119_vm3 = vweird.f32 %v3058_v60 }
 0x128   : > { %v1027_v28 = vmul.f32 0.5, %v1026_v49  ;;  %v1827_v10 = vpop.eup %1826  ;;  %v1061_v19 = vmul.f32 %v1821_v61, %v1060_v29  ;;  %v1104_v49 = vmul.f32 %v1825_v22, %v3048_v42  ;;  %vm1110_vm12 = vweird.f32 %v1825_v22  ;;  %vm1077_vm1 = vmor %vm1075_vm13, %vm1076_vm11 }
 0x129   : > { %v1018_v48 = vsub.f32 1.5, %v1017_v52  ;;  %v1071_v52 = vmul.f32 %v1823_v50, %v1070_v62  ;;  %v1114_v24 = vmul.f32 %v1827_v10, %v3058_v60  ;;  %vm1120_vm0 = vweird.f32 %v1827_v10  ;;  %vm1111_vm4 = vmor %vm1109_vm2, %vm1110_vm12 }
 0x12a   : > { %v1028_v17 = vsub.f32 1.5, %v1027_v28  ;;  %v1062_v3 = vmul.f32 0.5, %v1061_v19  ;;  %v1105_v28 = vmul.f32 %v1825_v22, %v1104_v49  ;;  %vm1121_vm5 = vmor %vm1119_vm3, %vm1120_vm0 }
 0x12b   : > { %v1019_v41 = vmul.f32 %v1817_v8, %v1018_v48  ;;  %v1072_v16 = vmul.f32 0.5, %v1071_v52  ;;  %v1115_v36 = vmul.f32 %v1827_v10, %v1114_v24 }
 0x12c   : > { %v1029_v7 = vmul.f32 %v1819_v54, %v1028_v17  ;;  %v1063_v56 = vsub.f32 1.5, %v1062_v3  ;;  %v1106_v44 = vmul.f32 0.5, %v1105_v28 }
 0x12d   : > { %v1023_v25 = vsel %vm1022_vm7, %v1817_v8, %v1019_v41  ;;  %v1073_v37 = vsub.f32 1.5, %v1072_v16  ;;  %v1116_v62 = vmul.f32 0.5, %v1115_v36 }
 0x12e   : > { %v1033_v63 = vsel %vm1032_vm9, %v1819_v54, %v1029_v7  ;;  %v1037_v48 = vmul.f32 %v1035_v1, %v1023_v25  ;;  %v1064_v41 = vmul.f32 %v1821_v61, %v1063_v56  ;;  %v1107_v19 = vsub.f32 1.5, %v1106_v44 }
 0x12f   : > { %v1038_v29 = vmul.f32 %v1036_v34, %v1033_v63  ;;  %v1074_v54 = vmul.f32 %v1823_v50, %v1073_v37  ;;  %v1117_v25 = vsub.f32 1.5, %v1116_v62 }
 0x130   : > { %v3087_v17 = vsub.f32 %v2911_v0, %v1037_v48  ;;  %v1068_v24 = vsel %vm1067_vm15, %v1821_v61, %v1064_v41  ;;  %v1108_v0 = vmul.f32 %v1825_v22, %v1107_v19 }
 0x131   : > { %v3090_v8 = vsub.f32 %v2916_v12, %v1038_v29  ;;  %v1078_v12 = vsel %vm1077_vm1, %v1823_v50, %v1074_v54  ;;  %v1081_v16 = vmul.f32 %v1079_v30, %v1068_v24  ;;  %v1118_v44 = vmul.f32 %v1827_v10, %v1117_v25 }
 0x132   : > { %v1166_v56 = vmul.f32 %v3087_v17, %v3451_v21  ;;  %v1082_v40 = vmul.f32 %v1080_v47, %v1078_v12  ;;  %v1112_v7 = vsel %vm1111_vm4, %v1825_v22, %v1108_v0  ;;  %v1178_v63 = vmul.f32 %v3087_v17, %v2243_v38 }
 0x133   : > { %v1167_v11 = vmul.f32 %v3090_v8, %v3454_v9  ;;  %v3104_v42 = vsub.f32 %v2950_v20, %v1081_v16  ;;  %v1122_v60 = vsel %vm1121_vm5, %v1827_v10, %v1118_v44  ;;  %v1125_v1 = vmul.f32 %v3076_v6, %v1112_v7 }
 0x134   : > { %v1179_v61 = vmul.f32 %v3090_v8, %v2245_v53  ;;  %v3110_v34 = vsub.f32 %v2960_v59, %v1082_v40  ;;  %v1126_v30 = vmul.f32 %v1124_v35, %v1122_v60  ;;  %v1190_v47 = vmul.f32 %v3087_v17, %v2247_v32  ;;  %s3148_s27 = spop %1598 }
 0x135   : > { %v1191_v50 = vmul.f32 %v3090_v8, %v3453_v14  ;;  %v3117_v22 = vsub.f32 %v2966_v15, %v1125_v1  ;;  %v1168_v20 = vmul.f32 %v3104_v42, %v2243_v38  ;;  %v1180_v6 = vmul.f32 %v3104_v42, %v3449_v26  ;;  %s1165_s4 = smul.f32 0.01, %s3148_s27 }
 0x136   : > { %v1192_v59 = vmul.f32 %v3104_v42, %v2275_v51  ;;  %v3126_v35 = vsub.f32 %v2975_v2, %v1126_v30  ;;  %v1169_v10 = vmul.f32 %v3110_v34, %v2245_v53  ;;  %v1181_v49 = vmul.f32 %v3110_v34, %v3450_v23 }
 0x137   : > { %v1193_v15 = vmul.f32 %v3110_v34, %v2277_v39  ;;  %v1170_v52 = vadd.f32 %v1168_v20, %v1166_v56  ;;  %v1172_v3 = vmul.f32 %v3117_v22, %v2247_v32  ;;  %v1182_v28 = vadd.f32 %v1180_v6, %v1178_v63 }
 0x138   : > { %v1184_v48 = vmul.f32 %v3117_v22, %v2275_v51  ;;  %v1171_v36 = vadd.f32 %v1169_v10, %v1167_v11  ;;  %v1173_v2 = vmul.f32 %v3126_v35, %v3453_v14  ;;  %v1183_v29 = vadd.f32 %v1181_v49, %v1179_v61 }
 0x139   : > { %v1185_v37 = vmul.f32 %v3126_v35, %v2277_v39  ;;  %v1174_v62 = vadd.f32 %v1172_v3, %v1170_v52  ;;  %v1194_v19 = vadd.f32 %v1192_v59, %v1190_v47  ;;  %v1195_v54 = vadd.f32 %v1193_v15, %v1191_v50 }
 0x13a   : > { %v1186_v41 = vadd.f32 %v1184_v48, %v1182_v28  ;;  %v1175_v25 = vadd.f32 %v1173_v2, %v1171_v36  ;;  %v1196_v24 = vmul.f32 %v3117_v22, %v2279_v55  ;;  %v1197_v0 = vmul.f32 %v3126_v35, %v2281_v57  ;;  %v3514_v28 = vld [vmem:[#allocation22_spill] sm:$0xff]  ;;  %v3515_v48 = vld [vmem:[#allocation23_spill] sm:$0xff] }
 0x13b   : > { %v1176_v12 = vsub.f32 %v1174_v62, %v2289_v31  ;;  %v1187_v16 = vadd.f32 %v1185_v37, %v1183_v29  ;;  %v1208_v63 = vmul.f32 0.999, %v3010_v33  ;;  %v1209_v6 = vmul.f32 0.999, %v3013_v4 }
 0x13c   : > { %v1188_v44 = vsub.f32 %v1186_v41, %v2293_v43  ;;  %v1177_v56 = vsub.f32 %v1175_v25, %v3452_v18  ;;  %v1198_v40 = vadd.f32 %v1196_v24, %v1194_v19  ;;  %v1199_v7 = vadd.f32 %v1197_v0, %v1195_v54  ;;  %v3517_v54 = vld [vmem:[#allocation26_spill] sm:$0xff] }
 0x13d   : > { %v1210_v11 = vmul.f32 %v1176_v12, %v1176_v12  ;;  %v1189_v60 = vsub.f32 %v1187_v16, %v2295_v27  ;;  %v1202_v49 = vmul.f32 0.9, %v3050_v13  ;;  %v1203_v15 = vmul.f32 0.9, %v3054_v5 }
 0x13e   : > { %s1601_s28 = spop %1600  ;;  %v1211_v1 = vmul.f32 %v1177_v56, %v1177_v56  ;;  %v1256_v30 = vmul.f32 %v1188_v44, %v1188_v44  ;;  %v1200_v47 = vsub.f32 %v1198_v40, %v3494_v58  ;;  %v1201_v50 = vsub.f32 %v1199_v7, %v3496_v45 }
 0x13f   : > { %v1212_v61 = vmul.f32 0.001, %v1210_v11  ;;  %v1216_v20 = vstv %s1601_s28  ;;  %v1254_v33 = vmul.f32 0.999, %v3028_v46  ;;  %v1257_v3 = vmul.f32 %v1189_v60, %v1189_v60  ;;  %v3516_v46 = vld [vmem:[#allocation25_spill] sm:$0xff] }
 0x140   : > { %v1213_v59 = vmul.f32 0.001, %v1211_v1  ;;  %v1258_v58 = vmul.f32 0.001, %v1256_v30  ;;  %v1255_v45 = vmul.f32 0.999, %v3514_v28  ;;  %v1300_v4 = vmul.f32 %v1200_v47, %v1200_v47 }
 0x141   : > { %v3156_v10 = vadd.f32 %v1212_v61, %v1208_v63   ;;  %v1298_v36 = vmul.f32 0.999, %v3515_v48  ;;  %v1301_v2 = vmul.f32 %v1201_v50, %v1201_v50  ;;  %v1259_v5 = vmul.f32 0.001, %v1257_v3 }
 0x142   : > { %v3161_v11 = vadd.f32 %v1213_v59, %v1209_v6   ;;  %v3169_v37 = vadd.f32 %v1258_v58, %v1254_v33   ;;  %v1299_v62 = vmul.f32 0.999, %v3516_v46  ;;  %v1302_v41 = vmul.f32 0.001, %v1300_v4 }
 0x143   : > { %v1217_v52 = vmul.f32 %v1216_v20, %v3156_v10  ;;  %v1303_v19 = vmul.f32 0.001, %v1301_v2  ;;  %v1248_v25 = vmul.f32 0.9, %v3517_v54  ;;  %v3176_v0 = vadd.f32 %v1259_v5, %v1255_v45   ;;  %v3519_v45 = vld [vmem:[#allocation29_spill] sm:$0xff] }
 0x144   : > { %v1218_v29 = vmul.f32 %v1216_v20, %v3161_v11  ;;  %v1204_v16 = vmul.f32 0.1, %v1176_v12  ;;  %v1262_v40 = vmul.f32 %v3169_v37, %v1216_v20  ;;  %v3179_v6 = vadd.f32 %v1302_v41, %v1298_v36   ;;  %v3520_v41 = vld [vmem:[#allocation24_spill] sm:$0xff] }
 0x145   : > { %v3167_v13 = vadd.f32 1e-16, %v1217_v52  ;;  %v3181_v7 = vadd.f32 %v1303_v19, %v1299_v62   ;;  %v1205_v63 = vmul.f32 0.1, %v1177_v56  ;;  %v1250_v1 = vmul.f32 0.1, %v1188_v44 }
 0x146   : > { %v3173_v24 = vadd.f32 1e-16, %v1218_v29  ;;  %v1263_v61 = vmul.f32 %v3176_v0, %v1216_v20  ;;  %v1251_v30 = vmul.f32 0.1, %v1189_v60  ;;  %v3186_v59 = vadd.f32 1e-16, %v1262_v40 }
 0x147   : > { %1828 = vrsqrt.f32 %v3167_v13  ;;  %v1306_v33 = vmul.f32 %v3179_v6, %v1216_v20  ;;  %v1307_v12 = vmul.f32 %v3181_v7, %v1216_v20  ;;  %v3518_v52 = vld [vmem:[#allocation27_spill] sm:$0xff]  ;;  %v1294_v58 = vmul.f32 0.1, %v1200_v47 }
 0x148   : > { %1830 = vrsqrt.f32 %v3173_v24  ;;  %v1249_v3 = vmul.f32 0.9, %v3518_v52  ;;  %v3191_v28 = vadd.f32 1e-16, %v1263_v61  ;;  %v1292_v48 = vmul.f32 0.9, %v3519_v45 }
 0x149   : > { %1832 = vrsqrt.f32 %v3186_v59  ;;  %v3195_v44 = vadd.f32 1e-16, %v1306_v33  ;;  %v3197_v56 = vadd.f32 1e-16, %v1307_v12  ;;  %v3199_v16 = vadd.f32 %v1204_v16, %v1202_v49  }
 0x14a   : > { %v3201_v36 = vstv %s1165_s4  ;;  %v3203_v2 = vadd.f32 %v1250_v1, %v1248_v25   ;;  %1834 = vrsqrt.f32 %v3191_v28  ;;  %v3206_v15 = vadd.f32 %v1205_v63, %v1203_v15  }
 0x14b   : > { %v3208_v1 = vadd.f32 %v1251_v30, %v1249_v3   ;;  %1836 = vrsqrt.f32 %v3195_v44  ;;  %v1295_v4 = vmul.f32 0.1, %v1201_v50  ;;  %v3212_v29 = vadd.f32 %v1294_v58, %v1292_v48  }
 0x14c   : > { %1838 = vrsqrt.f32 %v3197_v56  ;;  %v1242_v46 = vmul.f32 %v3201_v36, %v3199_v16  ;;  %v1286_v62 = vmul.f32 %v3203_v2, %v3201_v36  ;;  %v1293_v19 = vmul.f32 0.9, %v3520_v41 }
 0x14d   : > { %v1829_v60 = vpop.eup %1828  ;;  %v1243_v25 = vmul.f32 %v3201_v36, %v3206_v15  ;;  %v1287_v50 = vmul.f32 %v3208_v1, %v3201_v36  ;;  %v1330_v33 = vmul.f32 %v3212_v29, %v3201_v36  ;;  %vm1227_vm6 = vweird.f32 %v3167_v13 }
 0x14e   : > { %v1222_v47 = vmul.f32 %v1829_v60, %v3167_v13  ;;  %v1831_v20 = vpop.eup %1830  ;;  %v3225_v30 = vadd.f32 %v1295_v4, %v1293_v19   ;;  %vm1228_vm7 = vweird.f32 %v1829_v60  ;;  %vm1237_vm8 = vweird.f32 %v3173_v24 }
 0x14f   : > { %v1232_v5 = vmul.f32 %v1831_v20, %v3173_v24  ;;  %v1833_v54 = vpop.eup %1832  ;;  %vm1238_vm9 = vweird.f32 %v1831_v20  ;;  %vm1229_vm10 = vmor %vm1227_vm6, %vm1228_vm7  ;;  %vm1272_vm14 = vweird.f32 %v3186_v59  ;;  %vm1282_vm1 = vweird.f32 %v3191_v28 }
 0x150   : > { %v1223_v49 = vmul.f32 %v1829_v60, %v1222_v47  ;;  %v1835_v61 = vpop.eup %1834  ;;  %v1267_v12 = vmul.f32 %v1833_v54, %v3186_v59  ;;  %vm1273_vm11 = vweird.f32 %v1833_v54  ;;  %vm1239_vm12 = vmor %vm1237_vm8, %vm1238_vm9  ;;  %vm1316_vm4 = vweird.f32 %v3195_v44 }
 0x151   : > { %v1233_v63 = vmul.f32 %v1831_v20, %v1232_v5  ;;  %v1837_v52 = vpop.eup %1836  ;;  %v1277_v45 = vmul.f32 %v1835_v61, %v3191_v28  ;;  %vm1283_vm15 = vweird.f32 %v1835_v61  ;;  %vm1274_vm0 = vmor %vm1272_vm14, %vm1273_vm11  ;;  %vm1326_vm6 = vweird.f32 %v3197_v56 }
 0x152   : > { %v1224_v40 = vmul.f32 0.5, %v1223_v49  ;;  %v1839_v48 = vpop.eup %1838  ;;  %v1268_v47 = vmul.f32 %v1833_v54, %v1267_v12  ;;  %v1311_v4 = vmul.f32 %v1837_v52, %v3195_v44  ;;  %vm1317_vm13 = vweird.f32 %v1837_v52  ;;  %vm1284_vm3 = vmor %vm1282_vm1, %vm1283_vm15 }
 0x153   : > { %v1234_v58 = vmul.f32 0.5, %v1233_v63  ;;  %v1278_v41 = vmul.f32 %v1835_v61, %v1277_v45  ;;  %v1321_v19 = vmul.f32 %v1839_v48, %v3197_v56  ;;  %vm1327_vm2 = vweird.f32 %v1839_v48  ;;  %vm1318_vm5 = vmor %vm1316_vm4, %vm1317_vm13 }
 0x154   : > { %v1225_v3 = vsub.f32 1.5, %v1224_v40  ;;  %v1269_v40 = vmul.f32 0.5, %v1268_v47  ;;  %v1312_v63 = vmul.f32 %v1837_v52, %v1311_v4  ;;  %v1331_v28 = vmul.f32 %v3225_v30, %v3201_v36  ;;  %vm1328_vm7 = vmor %vm1326_vm6, %vm1327_vm2 }
 0x155   : > { %v1235_v5 = vsub.f32 1.5, %v1234_v58  ;;  %v1279_v18 = vmul.f32 0.5, %v1278_v41  ;;  %v1322_v21 = vmul.f32 %v1839_v48, %v1321_v19  ;;  %v3352_v27 = vstv (%p3270_p0), %s1578_s6 }
 0x156   : > { %v1226_v49 = vmul.f32 %v1829_v60, %v1225_v3  ;;  %v1270_v3 = vsub.f32 1.5, %v1269_v40  ;;  %v1313_v58 = vmul.f32 0.5, %v1312_v63 }
 0x157   : > { %v1236_v14 = vmul.f32 %v1831_v20, %v1235_v5  ;;  %v1280_v13 = vsub.f32 1.5, %v1279_v18  ;;  %v1323_v47 = vmul.f32 0.5, %v1322_v21 }
 0x158   : > { %v1230_v9 = vsel %vm1229_vm10, %v1829_v60, %v1226_v49  ;;  %v1271_v60 = vmul.f32 %v1833_v54, %v1270_v3  ;;  %v1314_v4 = vsub.f32 1.5, %v1313_v58 }
 0x159   : > { %v1244_v12 = vmul.f32 %v1242_v46, %v1230_v9  ;;  %v1240_v45 = vsel %vm1239_vm12, %v1831_v20, %v1236_v14  ;;  %v1281_v24 = vmul.f32 %v1835_v61, %v1280_v13  ;;  %v1324_v9 = vsub.f32 1.5, %v1323_v47 }
 0x15a   : > { %v1245_v23 = vmul.f32 %v1243_v25, %v1240_v45  ;;  %v1275_v18 = vsel %vm1274_vm0, %v1833_v54, %v1271_v60  ;;  %v1315_v21 = vmul.f32 %v1837_v52, %v1314_v4  ;;  %v3529_v13 = vmov %v3169_v37 }
 0x15b   : > { %v3242_v41 = vsub.f32 %v3087_v17, %v1244_v12   ;;  %v1285_v17 = vsel %vm1284_vm3, %v1835_v61, %v1281_v24  ;;  %v1288_v20 = vmul.f32 %v1286_v62, %v1275_v18  ;;  %v1325_v59 = vmul.f32 %v1839_v48, %v1324_v9 }
 0x15c   : > { %v3249_v14 = vsub.f32 %v3090_v8, %v1245_v23   ;;  %v1289_v46 = vmul.f32 %v1287_v50, %v1285_v17  ;;  %v1319_v25 = vsel %vm1318_vm5, %v1837_v52, %v1315_v21  ;;  %v3530_v12 = vmov %v3156_v10 }
 0x15d   : > { %v3521_v26 = vmov %v3242_v41  ;;  %v3258_v4 = vsub.f32 %v3104_v42, %v1288_v20   ;;  %v1329_v8 = vsel %vm1328_vm7, %v1839_v48, %v1325_v59  ;;  %v1332_v54 = vmul.f32 %v1330_v33, %v1319_v25 }
 0x15e   : > { %v3261_v3 = vsub.f32 %v3110_v34, %v1289_v46   ;;  %v1333_v62 = vmul.f32 %v1331_v28, %v1329_v8  ;;  %v3531_v59 = vmov %v3225_v30  ;;  %v3532_v28 = vmov %v3212_v29  ;;  %1336 = vst [vmem:[#allocation9] sm:$0xff] (%p3270_p0), %v3521_v26 }
 0x15f   : > { %v3522_v23 = vmov %v3258_v4  ;;  %v3264_v48 = vsub.f32 %v3117_v22, %v1332_v54   ;;  %v3528_v22 = vmov %v3176_v0  ;;  %v3537_v54 = vmov %v3249_v14  ;;  %486 = sbr.rel (!%p3270_p0) target bundleno = 117 (0x75), region = 77  ;;  %1337 = vst [vmem:[#allocation9 + $0x8] sm:$0xff] (%p3270_p0), %v3249_v14 }
 0x160   : > { %v3523_v44 = vmov %v3261_v3  ;;  %v3267_v47 = vsub.f32 %v3126_v35, %v1333_v62   ;;  %v3527_v35 = vmov %v3181_v7  ;;  %v3536_v4 = vmov %v3522_v23 }
 0x161   : > { %v3524_v61 = vmov %v3264_v48  ;;  %v3535_v3 = vmov %v3523_v44  ;;  %v3538_v41 = vmov %v3521_v26  ;;  %v1339_v42 = vmul.f32 (%p3270_p0), 0.03, %v3521_v26 }
 0x162   : > { %v3525_v56 = vmov %v3267_v47  ;;  %v3534_v48 = vmov %v3524_v61  ;;  %v1343_v34 = vmul.f32 (%p3270_p0), 0.04, %v3522_v23  ;;  %v1347_v10 = vmul.f32 (%p3270_p0), 0.05, %v3524_v61 }
 0x163   : > { %v3533_v47 = vmov %v3525_v56  ;;  %v1341_v37 = vadd.f32 (%p3270_p0), 0.05, %v1339_v42  ;;  %v1340_v0 = vmul.f32 (%p3270_p0), 0.03, %v3249_v14  ;;  %v1344_v7 = vmul.f32 (%p3270_p0), 0.04, %v3523_v44 }
 0x164   :  { %v1348_v36 = vmul.f32 0.05, %v3525_v56  ;;  %v1358_v29 = vmul.f32 0.05, %v3521_v26  ;;  %v1362_v38 = vmul.f32 0.06, %v3522_v23 }
 0x165   :  { %v1345_v53 = vadd.f32 %v1343_v34, %v1341_v37  ;;  %v1342_v32 = vadd.f32 0.05, %v1340_v0  ;;  %v1366_v51 = vmul.f32 0.07, %v3524_v61  ;;  %v1359_v39 = vmul.f32 0.05, %v3249_v14 }
 0x166   :  { %v1360_v55 = vadd.f32 0.045, %v1358_v29  ;;  %v1363_v57 = vmul.f32 0.06, %v3523_v44  ;;  %v1367_v31 = vmul.f32 0.07, %v3525_v56  ;;  %v1444_v37 = vstv %s3359_s2 }
 0x167   :  { %v1349_v43 = vadd.f32 %v1347_v10, %v1345_v53  ;;  %v1346_v22 = vadd.f32 %v1344_v7, %v1342_v32  ;;  %v1361_v35 = vadd.f32 0.045, %v1359_v39  ;;  %v1377_v6 = vmul.f32 0.07, %v3521_v26 }
 0x168   :  { %v1364_v11 = vadd.f32 %v1362_v38, %v1360_v55  ;;  %v1381_v15 = vmul.f32 0.08, %v3522_v23  ;;  %v1385_v2 = vmul.f32 0.09, %v3524_v61  ;;  %v1378_v30 = vmul.f32 0.07, %v3249_v14 }
 0x169   :  { %v1352_v16 = vmul.f32 %v3352_v27, %v1349_v43  ;;  %v1350_v1 = vadd.f32 %v1348_v36, %v1346_v22  ;;  %v1365_v50 = vadd.f32 %v1363_v57, %v1361_v35  ;;  %v1379_v52 = vadd.f32 0.04, %v1377_v6 }
 0x16a   :  { %v1368_v33 = vadd.f32 %v1366_v51, %v1364_v11  ;;  %v1382_v48 = vmul.f32 0.08, %v3523_v44  ;;  %v1386_v49 = vmul.f32 0.09, %v3525_v56  ;;  %v1380_v19 = vadd.f32 0.04, %v1378_v30 }
 0x16b   :  { %1355 = vst [vmem:[#allocation9 + $0x10] sm:$0xff] %v1352_v16  ;;  %v1353_v5 = vmul.f32 %v3352_v27, %v1350_v1  ;;  %v1369_v41 = vadd.f32 %v1367_v31, %v1365_v50  ;;  %v1396_v40 = vmul.f32 0.09, %v3521_v26  ;;  %v1383_v12 = vadd.f32 %v1381_v15, %v1379_v52 }
 0x16c   :  { %v1371_v63 = vmul.f32 %v1368_v33, %v3352_v27  ;;  %v1400_v3 = vmul.f32 0.1, %v3522_v23  ;;  %v1404_v58 = vmul.f32 0.11, %v3524_v61  ;;  %v1384_v13 = vadd.f32 %v1382_v48, %v1380_v19 }
 0x16d   :  { %1356 = vst [vmem:[#allocation9 + $0x18] sm:$0xff] %v1353_v5  ;;  %v1372_v45 = vmul.f32 %v1369_v41, %v3352_v27  ;;  %v1398_v47 = vadd.f32 0.042, %v1396_v40  ;;  %v1397_v60 = vmul.f32 0.09, %v3249_v14  ;;  %v1387_v4 = vadd.f32 %v1385_v2, %v1383_v12 }
 0x16e   :  { %1374 = vst [vmem:[#allocation9 + $0x20] sm:$0xff] %v1371_v63  ;;  %v1401_v24 = vmul.f32 0.1, %v3523_v44  ;;  %v1405_v9 = vmul.f32 0.11, %v3525_v56  ;;  %v1388_v18 = vadd.f32 %v1386_v49, %v1384_v13 }
 0x16f   :  { %1375 = vst [vmem:[#allocation9 + $0x28] sm:$0xff] %v1372_v45  ;;  %v1402_v21 = vadd.f32 %v1400_v3, %v1398_v47  ;;  %v1399_v17 = vadd.f32 0.042, %v1397_v60  ;;  %v1415_v20 = vmul.f32 0.11, %v3521_v26  ;;  %v1390_v59 = vmul.f32 %v1387_v4, %v3352_v27 }
 0x170   :  { %v1419_v28 = vmul.f32 0.12, %v3522_v23  ;;  %v1423_v46 = vmul.f32 0.13, %v3524_v61  ;;  %v1416_v25 = vmul.f32 0.11, %v3249_v14  ;;  %v1391_v8 = vmul.f32 %v1388_v18, %v3352_v27 }
 0x171   :  { %v1406_v54 = vadd.f32 %v1404_v58, %v1402_v21  ;;  %v1403_v62 = vadd.f32 %v1401_v24, %v1399_v17  ;;  %v1417_v42 = vadd.f32 0.06, %v1415_v20  ;;  %1393 = vst [vmem:[#allocation9 + $0x30] sm:$0xff] %v1390_v59  ;;  %v1420_v10 = vmul.f32 0.12, %v3523_v44 }
 0x172   :  { %v1418_v34 = vadd.f32 0.06, %v1416_v25  ;;  %1394 = vst [vmem:[#allocation9 + $0x38] sm:$0xff] %v1391_v8  ;;  %v1424_v29 = vmul.f32 0.13, %v3525_v56 }
 0x173   :  { %v1409_v0 = vmul.f32 %v1406_v54, %v3352_v27  ;;  %v1407_v7 = vadd.f32 %v1405_v9, %v1403_v62  ;;  %v1421_v36 = vadd.f32 %v1419_v28, %v1417_v42  ;;  %v1434_v53 = vmul.f32 0.007, %v3521_v26 }
 0x174   :  { %v1422_v38 = vadd.f32 %v1420_v10, %v1418_v34  ;;  %v1436_v32 = vmul.f32 0.009, %v3522_v23  ;;  %v1440_v51 = vmul.f32 0.011, %v3524_v61  ;;  %v1435_v57 = vmul.f32 0.007, %v3249_v14 }
 0x175   :  { %1412 = vst [vmem:[#allocation9 + $0x40] sm:$0xff] %v1409_v0  ;;  %v1410_v39 = vmul.f32 %v1407_v7, %v3352_v27  ;;  %v1425_v55 = vadd.f32 %v1423_v46, %v1421_v36  ;;  %v1437_v31 = vmul.f32 0.009, %v3523_v44  ;;  %v1441_v35 = vmul.f32 0.011, %v3525_v56 }
 0x176   :  { %v1426_v43 = vadd.f32 %v1424_v29, %v1422_v38  ;;  %v1438_v22 = vadd.f32 %v1436_v32, %v1434_v53  ;;  %v1453_v11 = vmul.f32 0.012, %v3521_v26  ;;  %v1455_v2 = vmul.f32 0.014, %v3522_v23 }
 0x177   :  { %1413 = vst [vmem:[#allocation9 + $0x48] sm:$0xff] %v1410_v39  ;;  %v1428_v6 = vmul.f32 %v1425_v55, %v3352_v27  ;;  %v1439_v15 = vadd.f32 %v1437_v31, %v1435_v57  ;;  %v1459_v16 = vmul.f32 0.016, %v3524_v61  ;;  %v1454_v30 = vmul.f32 0.012, %v3249_v14 }
 0x178   :  { %v1429_v1 = vmul.f32 %v1426_v43, %v3352_v27  ;;  %v1442_v50 = vadd.f32 %v1440_v51, %v1438_v22  ;;  %v1456_v33 = vmul.f32 0.014, %v3523_v44  ;;  %v1457_v48 = vadd.f32 %v1455_v2, %v1453_v11 }
 0x179   :  { %1431 = vst [vmem:[#allocation9 + $0x50] sm:$0xff] %v1428_v6  ;;  %v1443_v52 = vadd.f32 %v1441_v35, %v1439_v15  ;;  %v1460_v49 = vmul.f32 0.016, %v3525_v56  ;;  %v1472_v5 = vmul.f32 0.017, %v3521_v26 }
 0x17a   :  { %1432 = vst [vmem:[#allocation9 + $0x58] sm:$0xff] %v1429_v1  ;;  %v1445_v41 = vmul.f32 %v1444_v37, %v1442_v50  ;;  %v1458_v19 = vadd.f32 %v1456_v33, %v1454_v30  ;;  %v1474_v40 = vmul.f32 0.019, %v3522_v23  ;;  %v1478_v63 = vmul.f32 0.021, %v3524_v61 }
 0x17b   :  { %v1446_v27 = vmul.f32 %v1444_v37, %v1443_v52  ;;  %v1461_v12 = vadd.f32 %v1459_v16, %v1457_v48  ;;  %v1473_v3 = vmul.f32 0.017, %v3249_v14  ;;  %v1475_v58 = vmul.f32 0.019, %v3523_v44 }
 0x17c   :  { %v1447_v45 = vadd.f32 0.001, %v1445_v41  ;;  %v1462_v13 = vadd.f32 %v1460_v49, %v1458_v19  ;;  %v1476_v47 = vadd.f32 %v1474_v40, %v1472_v5  ;;  %v1479_v60 = vmul.f32 0.021, %v3525_v56 }
 0x17d   :  { %v1448_v4 = vadd.f32 0.001, %v1446_v27  ;;  %v1464_v26 = vmul.f32 %v1461_v12, %v1444_v37  ;;  %v1477_v24 = vadd.f32 %v1475_v58, %v1473_v3 }
 0x17e   :  { %1450 = vst [vmem:[#allocation9 + $0x60] sm:$0xff] %v1447_v45  ;;  %v1465_v9 = vmul.f32 %v1462_v13, %v1444_v37  ;;  %v1480_v18 = vadd.f32 %v1478_v63, %v1476_v47 }
 0x17f   :  { %1451 = vst [vmem:[#allocation9 + $0x68] sm:$0xff] %v1448_v4  ;;  %v1466_v23 = vadd.f32 0.0012, %v1464_v26  ;;  %v1481_v61 = vadd.f32 %v1479_v60, %v1477_v24 }
 0x180   :  { %v1467_v21 = vadd.f32 0.0012, %v1465_v9  ;;  %v1483_v17 = vmul.f32 %v1480_v18, %v1444_v37 }
 0x181   :  { %1469 = vst [vmem:[#allocation9 + $0x70] sm:$0xff] %v1466_v23  ;;  %v1484_v14 = vmul.f32 %v1481_v61, %v1444_v37 }
 0x182   :  { %1470 = vst [vmem:[#allocation9 + $0x78] sm:$0xff] %v1467_v21  ;;  %v1485_v44 = vadd.f32 0.0015, %v1483_v17 }
 0x183   :  { %v1486_v56 = vadd.f32 0.0015, %v1484_v14 }
 0x184   :  { %1488 = vst [vmem:[#allocation9 + $0x80] sm:$0xff] %v1485_v44 }
 0x185   :  { %1489 = vst [vmem:[#allocation9 + $0x88] sm:$0xff] %v1486_v56 }
 0x186   :  { %1502 = dma.vmem_to_hbm [thread:$0]  %s1495_s30, 2304, %s1497_s9, [#allocation4], %s2102_s21, %s2102_s21, %s2103_s22  }
 0x187   :  { %2014 = dma.done.wait [#allocation4], 2304  }
 0x188   :  { %2015 = vsyncadd [#allocation4], 4294964992 }
 0x189   :  { %1507 = vsyncpa [#allocation3], 1 }
 0x18a   :  { %1508 = vsyncpa [#allocation8], 1 }
 0x18b   :  { %1509 = vsyncpa [#allocation4], 1 }
 0x18c   :  { %1510 = vsyncpa [#allocation5], 1 }

</bundles_post_ra>
